<compile_context>
chip_gen: v7x
topology: tpu7x:2x2x1
jax: 0.10.0
libtpu: 0.0.40
codegen_flags: <defaults>
</compile_context>

<pallas_src>
import math
import jax
import jax.numpy as jnp
from jax.experimental import pallas as pl
from jax.experimental.pallas import tpu as pltpu


def _round_up(x, m):
    return ((x + m - 1) // m) * m


def _pick_tb(B, target=32):
    """Batch rows per grid step. Must divide B; prefer multiples of 8 (sublane)."""
    if B <= target:
        return B
    for tb in range(min(B, target), 7, -1):
        if B % tb == 0 and tb % 8 == 0:
            return tb
    return B  # fall back: whole batch in one grid step


# --------------------------- static shape bookkeeping ------------------------ #

def _layer_meta(cfg, T):
    """cfg entries: (cin, cout, kernel, stride, padding, residual)."""
    meta = []
    L = T
    for (cin, cout, K, s, p, res) in cfg:
        L_out = (L + 2 * p - K) // s + 1
        if res:
            assert s == 1 and cin == cout and L_out == L, "residual layer must preserve shape"
        meta.append(dict(cin=cin, cout=cout, k=K, s=s, p=p, res=res,
                         lin=L, lout=L_out, direct=(K == 1 and s == 1 and p == 0)))
        L = L_out
    assert not meta[0]["direct"], "first layer must be a real conv"
    return meta, L


# ------------------------------ fused kernel --------------------------------- #

def _make_encoder_kernel(layer_meta, TB, L_f, D_out):
    """One kernel: all Conv1d+BN+ReLU layers, residuals, NCL flatten, L2 norm."""
    n_layers = len(layer_meta)

    def kernel(x_ref, *refs):
        w_refs = refs[:3 * n_layers]
        out_ref = refs[3 * n_layers]
        pad_ref = refs[3 * n_layers + 1]   # (Lpad_max*TB, Cmax) bf16 zero-padded activation
        tap_ref = refs[3 * n_layers + 2]   # (Lout_s2*TB, Cs2) bf16 stride-2 tap gather

        # Stacked activation value, row = position*TB + batch, shape (L*TB, C), f32.
        x = None

        for li, m in enumerate(layer_meta):
            cin, cout = m["cin"], m["cout"]
            K, stride, pad = m["k"], m["s"], m["p"]
            L_in, L_out = m["lin"], m["lout"]
            Lp = L_in + 2 * pad
            M = L_out * TB
            w_ref = w_refs[3 * li]          # (K, cin, cout) bf16
            sc_ref = w_refs[3 * li + 1]     # (1, cout) f32 folded BN scale
            sh_ref = w_refs[3 * li + 2]     # (1, cout) f32 folded BN shift (+ conv bias)

            if m["direct"]:
                # 1x1 conv, stride 1, no padding: plain matmul on the activation.
                acc = jnp.dot(x.astype(jnp.bfloat16), w_ref[0],
                              preferred_element_type=jnp.float32)
            else:
                # Zero-padded activation in bf16 scratch. Exactly the rows/cols that
                # are later read are written here (no full memset needed).
                if pad > 0:
                    z = jnp.zeros((pad * TB, cin), jnp.bfloat16)
                    pad_ref[0:pad * TB, 0:cin] = z
                    pad_ref[(pad + L_in) * TB:Lp * TB, 0:cin] = z
                if li == 0:
                    # input block is (T, TB, C0): one contiguous store per position.
                    for t in range(L_in):
                        pad_ref[(pad + t) * TB:(pad + t + 1) * TB, 0:cin] = (
                            x_ref[t].astype(jnp.bfloat16))
                else:
                    pad_ref[pad * TB:(pad + L_in) * TB, 0:cin] = x.astype(jnp.bfloat16)

                # K accumulating MXU matmuls (bf16 x bf16, f32 accumulate).
                acc = None
                for k in range(K):
                    if stride == 1:
                        lhs = pad_ref[k * TB:k * TB + M, 0:cin]          # contiguous tap
                    else:
                        # gather tap k as contiguous TB-row blocks (no strided reads)
                        for l in range(L_out):
                            src = (l * stride + k) * TB
                            tap_ref[l * TB:(l + 1) * TB, 0:cin] = pad_ref[src:src + TB, 0:cin]
                        lhs = tap_ref[0:M, 0:cin]
                    term = jnp.dot(lhs, w_ref[k], preferred_element_type=jnp.float32)
                    acc = term if acc is None else acc + term

            y = acc * sc_ref[...] + sh_ref[...]        # folded conv-bias + eval BN
            if m["res"]:
                y = y + x                              # residual add before ReLU (matches ref)
            x = jnp.maximum(y, 0.0)

        # PyTorch: .view(B, C*L) on an NCL tensor == channel-major flatten, then
        # F.normalize(p=2, dim=1) = v / max(||v||_2, 1e-12).
        if L_f == 1:
            flat = x                                   # (TB, D_out), row = batch index
        else:
            # TODO(synk): L_f > 1 flatten path (channel-major) is not exercised here.
            rows = []
            for b in range(TB):
                xb = jnp.stack([x[l * TB + b, :] for l in range(L_f)], axis=0)  # (L_f, C)
                rows.append(jnp.transpose(xb).reshape(1, D_out))
            flat = jnp.concatenate(rows, axis=0)

        nrm2 = jnp.sum(flat * flat, axis=-1, keepdims=True)
        inv = jax.lax.rsqrt(jnp.maximum(nrm2, 1e-24))  # == 1/max(||v||, 1e-12), EUP slot
        out_ref[...] = flat * inv

    return kernel


# ------------------------------ encoder wrapper ------------------------------ #

def _prepare_layer_params(raw_params, meta, w_dtype=jnp.bfloat16):
    """Inference-ready tensors: bf16 (K, cin, cout) weights, f32 (1, cout) scale/shift."""
    prepared = []
    for (w, scale, shift), m in zip(raw_params, meta):
        prepared.append((w.astype(w_dtype),
                         scale.reshape(1, m["cout"]).astype(jnp.float32),
                         shift.reshape(1, m["cout"]).astype(jnp.float32)))
    return prepared


def encoder_forward(x, prepared_params, meta, L_f):
    """x: (B, T, C0) f32 -> (B, C_last * L_f) L2-normalized embedding."""
    B, T, C0 = x.shape
    assert C0 == meta[0]["cin"] and T == meta[0]["lin"]
    C_last = meta[-1]["cout"]
    D_out = C_last * L_f

    TB = _pick_tb(B)
    assert B % TB == 0

    conv = [m for m in meta if not m["direct"]]
    pad_rows = _round_up(max(m["lin"] + 2 * m["p"] for m in conv) * TB, 16)
    pad_cols = _round_up(max(m["cin"] for m in conv), 128)
    s2 = [m for m in conv if m["s"] > 1]
    tap_rows = _round_up(max([m["lout"] for m in s2], default=1) * TB, 16)
    tap_cols = _round_up(max([m["cin"] for m in s2], default=1), 128)

    kernel = _make_encoder_kernel(meta, TB, L_f, D_out)

    # (B, T, C) -> (T, B, C): positions major so every grid block is (T, TB, C0)
    # and per-position stores inside the kernel are contiguous TB-row blocks.
    xT = jnp.transpose(x, (1, 0, 2))

    in_specs = [pl.BlockSpec((T, TB, C0), lambda i: (0, i, 0))]
    args = [xT]
    for w, sc, sh in prepared_params:
        # Constant index maps => weights stay VMEM-resident across the grid.
        # TODO(synk): consider pipeline_mode=pl.Buffered(1) on v7x to single-buffer.
        in_specs.append(pl.BlockSpec(w.shape, lambda i: (0, 0, 0)))
        in_specs.append(pl.BlockSpec(sc.shape, lambda i: (0, 0)))
        in_specs.append(pl.BlockSpec(sh.shape, lambda i: (0, 0)))
        args += [w, sc, sh]

    out = pl.pallas_call(
        kernel,
        out_shape=jax.ShapeDtypeStruct((B, D_out), jnp.float32),
        grid_spec=pltpu.PrefetchScalarGridSpec(
            num_scalar_prefetch=0,
            grid=(B // TB,),
            in_specs=in_specs,
            out_specs=pl.BlockSpec((TB, D_out), lambda i: (i, 0)),
            scratch_shapes=[
                pltpu.VMEM((pad_rows, pad_cols), jnp.bfloat16),
                pltpu.VMEM((tap_rows, tap_cols), jnp.bfloat16),
            ],
        ),
        compiler_params=pltpu.CompilerParams(
            dimension_semantics=("parallel",),
            vmem_limit_bytes=48 * 1024 * 1024,
        ),
    )(*args)
    return out


# --------------------------- model configuration ----------------------------- #

def hubert_layer_cfg(audio_dim, H, nl, out_dim):
    cfg = [(audio_dim, H, 3, 1, 1, False), (H, H, 3, 1, 1, False)]
    cfg += [(H, H, 3, 1, 1, True)] * (nl - 1)
    cfg += [(H, 2 * H, 3, 2, 1, False)]
    cfg += [(2 * H, 2 * H, 3, 1, 1, True)] * (nl - 1)
    cfg += [(2 * H, 4 * H, 3, 2, 1, False)]
    cfg += [(4 * H, 4 * H, 3, 1, 1, True)] * (nl - 1)
    cfg += [(4 * H, 4 * H, 3, 1, 1, False), (4 * H, 4 * H, 3, 1, 0, False),
            (4 * H, 4 * H, 1, 1, 0, False), (4 * H, out_dim, 1, 1, 0, False)]
    return cfg


def mouth_layer_cfg(lm_dim, mid, H, nl, out_dim):
    cfg = [(lm_dim, mid, 3, 1, 1, False), (mid, H, 3, 1, 1, False)]
    cfg += [(H, H, 3, 1, 1, True)] * (nl - 1)
    cfg += [(H, 2 * H, 3, 2, 1, False)]
    cfg += [(2 * H, 2 * H, 3, 1, 1, True)] * (nl - 1)
    cfg += [(2 * H, 4 * H, 3, 1, 1, False)]
    cfg += [(4 * H, 4 * H, 3, 1, 1, True)] * (nl - 1)
    cfg += [(4 * H, 4 * H, 3, 1, 1, False), (4 * H, 4 * H, 3, 1, 0, False),
            (4 * H, 4 * H, 1, 1, 0, False), (4 * H, out_dim, 1, 1, 0, False)]
    return cfg


def make_layer_params(key, cin, cout, k):
    """Deterministic synthetic params. Conv bias + eval-mode BN folded to scale/shift."""
    kw, kb, kg, kbt = jax.random.split(key, 4)
    w = jax.random.normal(kw, (k, cin, cout), jnp.float32) * math.sqrt(2.0 / (cin * k))
    b = jax.random.normal(kb, (cout,), jnp.float32) * 0.01
    gamma = 1.0 + 0.1 * jax.random.normal(kg, (cout,), jnp.float32)
    beta = 0.1 * jax.random.normal(kbt, (cout,), jnp.float32)
    running_mean = jnp.zeros((cout,), jnp.float32)
    running_var = jnp.ones((cout,), jnp.float32)
    eps = 1e-5
    scale = gamma / jnp.sqrt(running_var + eps)
    shift = beta + (b - running_mean) * scale
    return w, scale, shift


def landmark_hubert_syncnet_forward(hubert, mouth_lm, hubert_params, mouth_params,
                                    hubert_meta, mouth_meta, L_fa, L_fm):
    # NOTE: logit_scale / CLIPLoss / BCE loss methods are not part of forward().
    mouth_embedding = encoder_forward(mouth_lm, mouth_params, mouth_meta, L_fm)
    audio_embedding = encoder_forward(hubert, hubert_params, hubert_meta, L_fa)
    return audio_embedding, mouth_embedding


# ------------------------------ pure-JAX reference --------------------------- #

def encoder_reference(x, raw_params, cfg):
    h = x  # (B, L, C)
    for (w, scale, shift), (cin, cout, K, s, p, res) in zip(raw_params, cfg):
        w_bf = w.astype(jnp.bfloat16).astype(jnp.float32)   # match kernel's bf16 weights
        out = jax.lax.conv_general_dilated(
            h, w_bf, window_strides=(s,), padding=[(p, p)],
            dimension_numbers=("NWC", "WIO", "NWC"))
        out = out * scale[None, None, :] + shift[None, None, :]
        if res:
            out = out + h
        h = jnp.maximum(out, 0.0)
    flat = jnp.transpose(h, (0, 2, 1)).reshape(h.shape[0], -1)   # channel-major (NCL view)
    nrm = jnp.sqrt(jnp.sum(flat * flat, axis=-1, keepdims=True))
    return flat / jnp.maximum(nrm, 1e-12)


# ----------------------------------- main ------------------------------------ #

if __name__ == "__main__":
    # Small but structure-preserving configuration.
    B = 2
    lm_dim, audio_dim = 12, 32
    H, nl, out_dim = 16, 2, 32
    mouth_mid = 12            # plays the role of the original "96" intermediate width
    T_a, T_m = 10, 5          # both encoders collapse to temporal length 1

    hubert_cfg = hubert_layer_cfg(audio_dim, H, nl, out_dim)
    mouth_cfg = mouth_layer_cfg(lm_dim, mouth_mid, H, nl, out_dim)

    hubert_meta, L_fa = _layer_meta(hubert_cfg, T_a)
    mouth_meta, L_fm = _layer_meta(mouth_cfg, T_m)

    key = jax.random.PRNGKey(0)
    k_hp, k_mp, k_in = jax.random.split(key, 3)
    hubert_raw = [make_layer_params(jax.random.fold_in(k_hp, i), c[0], c[1], c[2])
                  for i, c in enumerate(hubert_cfg)]
    mouth_raw = [make_layer_params(jax.random.fold_in(k_mp, i), c[0], c[1], c[2])
                 for i, c in enumerate(mouth_cfg)]
    hubert_params = _prepare_layer_params(hubert_raw, hubert_meta)
    mouth_params = _prepare_layer_params(mouth_raw, mouth_meta)

    k1, k2 = jax.random.split(k_in)
    hubert = jax.random.normal(k1, (B, T_a, audio_dim), jnp.float32)
    mouth_lm = jax.random.normal(k2, (B, T_m, lm_dim), jnp.float32)

    audio_embedding, mouth_embedding = landmark_hubert_syncnet_forward(
        hubert, mouth_lm, hubert_params, mouth_params,
        hubert_meta, mouth_meta, L_fa, L_fm)
    jax.block_until_ready((audio_embedding, mouth_embedding))

    assert audio_embedding.shape == (B, out_dim * L_fa)
    assert mouth_embedding.shape == (B, out_dim * L_fm)
    assert bool(jnp.all(jnp.isfinite(audio_embedding)))
    assert bool(jnp.all(jnp.isfinite(mouth_embedding)))

    # Correctness check vs a pure-JAX reference (bf16 weights, f32 activations).
    audio_ref = encoder_reference(hubert, hubert_raw, hubert_cfg)
    mouth_ref = encoder_reference(mouth_lm, mouth_raw, mouth_cfg)
    assert float(jnp.max(jnp.abs(audio_embedding - audio_ref))) < 0.1
    assert float(jnp.max(jnp.abs(mouth_embedding - mouth_ref))) < 0.1

    print("KERNEL_OK")
</pallas_src>

<mosaic_0001>
module attributes {stable_mosaic.version = 11 : i64} {
  func.func @kernel(%arg0: i32, %arg1: memref<5x2x12xf32, #tpu.memory_space<vmem>>, %arg2: memref<3x12x12xbf16, #tpu.memory_space<vmem>>, %arg3: memref<1x12xf32, #tpu.memory_space<vmem>>, %arg4: memref<1x12xf32, #tpu.memory_space<vmem>>, %arg5: memref<3x12x16xbf16, #tpu.memory_space<vmem>>, %arg6: memref<1x16xf32, #tpu.memory_space<vmem>>, %arg7: memref<1x16xf32, #tpu.memory_space<vmem>>, %arg8: memref<3x16x16xbf16, #tpu.memory_space<vmem>>, %arg9: memref<1x16xf32, #tpu.memory_space<vmem>>, %arg10: memref<1x16xf32, #tpu.memory_space<vmem>>, %arg11: memref<3x16x32xbf16, #tpu.memory_space<vmem>>, %arg12: memref<1x32xf32, #tpu.memory_space<vmem>>, %arg13: memref<1x32xf32, #tpu.memory_space<vmem>>, %arg14: memref<3x32x32xbf16, #tpu.memory_space<vmem>>, %arg15: memref<1x32xf32, #tpu.memory_space<vmem>>, %arg16: memref<1x32xf32, #tpu.memory_space<vmem>>, %arg17: memref<3x32x64xbf16, #tpu.memory_space<vmem>>, %arg18: memref<1x64xf32, #tpu.memory_space<vmem>>, %arg19: memref<1x64xf32, #tpu.memory_space<vmem>>, %arg20: memref<3x64x64xbf16, #tpu.memory_space<vmem>>, %arg21: memref<1x64xf32, #tpu.memory_space<vmem>>, %arg22: memref<1x64xf32, #tpu.memory_space<vmem>>, %arg23: memref<3x64x64xbf16, #tpu.memory_space<vmem>>, %arg24: memref<1x64xf32, #tpu.memory_space<vmem>>, %arg25: memref<1x64xf32, #tpu.memory_space<vmem>>, %arg26: memref<3x64x64xbf16, #tpu.memory_space<vmem>>, %arg27: memref<1x64xf32, #tpu.memory_space<vmem>>, %arg28: memref<1x64xf32, #tpu.memory_space<vmem>>, %arg29: memref<1x64x64xbf16, #tpu.memory_space<vmem>>, %arg30: memref<1x64xf32, #tpu.memory_space<vmem>>, %arg31: memref<1x64xf32, #tpu.memory_space<vmem>>, %arg32: memref<1x64x32xbf16, #tpu.memory_space<vmem>>, %arg33: memref<1x32xf32, #tpu.memory_space<vmem>>, %arg34: memref<1x32xf32, #tpu.memory_space<vmem>>, %arg35: memref<2x32xf32, #tpu.memory_space<vmem>>, %arg36: memref<16x128xbf16, #tpu.memory_space<vmem>>, %arg37: memref<16x128xbf16, #tpu.memory_space<vmem>>) attributes {dimension_semantics = [#tpu.dimension_semantics<parallel>], iteration_bounds = array<i64: 1>, scalar_prefetch = 0 : i64, scratch_operands = 2 : i64, tpu.core_type = #tpu.core_type<tc>, window_params = [{transform_indices = @transform_0, window_bounds = array<i64: 5, 2, 12>}, {pipeline_mode = #tpu.pipeline_mode<synchronous>, transform_indices = @transform_1, window_bounds = array<i64: 3, 12, 12>}, {pipeline_mode = #tpu.pipeline_mode<synchronous>, transform_indices = @transform_2, window_bounds = array<i64: 1, 12>}, {pipeline_mode = #tpu.pipeline_mode<synchronous>, transform_indices = @transform_3, window_bounds = array<i64: 1, 12>}, {pipeline_mode = #tpu.pipeline_mode<synchronous>, transform_indices = @transform_4, window_bounds = array<i64: 3, 12, 16>}, {pipeline_mode = #tpu.pipeline_mode<synchronous>, transform_indices = @transform_5, window_bounds = array<i64: 1, 16>}, {pipeline_mode = #tpu.pipeline_mode<synchronous>, transform_indices = @transform_6, window_bounds = array<i64: 1, 16>}, {pipeline_mode = #tpu.pipeline_mode<synchronous>, transform_indices = @transform_7, window_bounds = array<i64: 3, 16, 16>}, {pipeline_mode = #tpu.pipeline_mode<synchronous>, transform_indices = @transform_8, window_bounds = array<i64: 1, 16>}, {pipeline_mode = #tpu.pipeline_mode<synchronous>, transform_indices = @transform_9, window_bounds = array<i64: 1, 16>}, {pipeline_mode = #tpu.pipeline_mode<synchronous>, transform_indices = @transform_10, window_bounds = array<i64: 3, 16, 32>}, {pipeline_mode = #tpu.pipeline_mode<synchronous>, transform_indices = @transform_11, window_bounds = array<i64: 1, 32>}, {pipeline_mode = #tpu.pipeline_mode<synchronous>, transform_indices = @transform_12, window_bounds = array<i64: 1, 32>}, {pipeline_mode = #tpu.pipeline_mode<synchronous>, transform_indices = @transform_13, window_bounds = array<i64: 3, 32, 32>}, {pipeline_mode = #tpu.pipeline_mode<synchronous>, transform_indices = @transform_14, window_bounds = array<i64: 1, 32>}, {pipeline_mode = #tpu.pipeline_mode<synchronous>, transform_indices = @transform_15, window_bounds = array<i64: 1, 32>}, {pipeline_mode = #tpu.pipeline_mode<synchronous>, transform_indices = @transform_16, window_bounds = array<i64: 3, 32, 64>}, {pipeline_mode = #tpu.pipeline_mode<synchronous>, transform_indices = @transform_17, window_bounds = array<i64: 1, 64>}, {pipeline_mode = #tpu.pipeline_mode<synchronous>, transform_indices = @transform_18, window_bounds = array<i64: 1, 64>}, {pipeline_mode = #tpu.pipeline_mode<synchronous>, transform_indices = @transform_19, window_bounds = array<i64: 3, 64, 64>}, {pipeline_mode = #tpu.pipeline_mode<synchronous>, transform_indices = @transform_20, window_bounds = array<i64: 1, 64>}, {pipeline_mode = #tpu.pipeline_mode<synchronous>, transform_indices = @transform_21, window_bounds = array<i64: 1, 64>}, {pipeline_mode = #tpu.pipeline_mode<synchronous>, transform_indices = @transform_22, window_bounds = array<i64: 3, 64, 64>}, {pipeline_mode = #tpu.pipeline_mode<synchronous>, transform_indices = @transform_23, window_bounds = array<i64: 1, 64>}, {pipeline_mode = #tpu.pipeline_mode<synchronous>, transform_indices = @transform_24, window_bounds = array<i64: 1, 64>}, {pipeline_mode = #tpu.pipeline_mode<synchronous>, transform_indices = @transform_25, window_bounds = array<i64: 3, 64, 64>}, {pipeline_mode = #tpu.pipeline_mode<synchronous>, transform_indices = @transform_26, window_bounds = array<i64: 1, 64>}, {pipeline_mode = #tpu.pipeline_mode<synchronous>, transform_indices = @transform_27, window_bounds = array<i64: 1, 64>}, {pipeline_mode = #tpu.pipeline_mode<synchronous>, transform_indices = @transform_28, window_bounds = array<i64: 1, 64, 64>}, {pipeline_mode = #tpu.pipeline_mode<synchronous>, transform_indices = @transform_29, window_bounds = array<i64: 1, 64>}, {pipeline_mode = #tpu.pipeline_mode<synchronous>, transform_indices = @transform_30, window_bounds = array<i64: 1, 64>}, {pipeline_mode = #tpu.pipeline_mode<synchronous>, transform_indices = @transform_31, window_bounds = array<i64: 1, 64, 32>}, {pipeline_mode = #tpu.pipeline_mode<synchronous>, transform_indices = @transform_32, window_bounds = array<i64: 1, 32>}, {pipeline_mode = #tpu.pipeline_mode<synchronous>, transform_indices = @transform_33, window_bounds = array<i64: 1, 32>}, {transform_indices = @transform_34, window_bounds = array<i64: 2, 32>}]} {
    %cst = arith.constant 0.000000e+00 : bf16
    %0 = vector.broadcast %cst : bf16 to vector<2x12xbf16>
    %c0 = arith.constant 0 : index
    %c0_0 = arith.constant 0 : index
    %1 = vector.load %arg36[%c0, %c0_0] : memref<16x128xbf16, #tpu.memory_space<vmem>>, vector<2x12xbf16>
    tpu.vector_store %arg36[%c0, %c0_0], %0 {strides = array<i32>} : memref<16x128xbf16, #tpu.memory_space<vmem>>, vector<2x12xbf16>,
    %c12 = arith.constant 12 : index
    %c0_1 = arith.constant 0 : index
    %2 = vector.load %arg36[%c12, %c0_1] : memref<16x128xbf16, #tpu.memory_space<vmem>>, vector<2x12xbf16>
    tpu.vector_store %arg36[%c12, %c0_1], %0 {strides = array<i32>} : memref<16x128xbf16, #tpu.memory_space<vmem>>, vector<2x12xbf16>,
    %c0_2 = arith.constant 0 : index
    %c0_3 = arith.constant 0 : index
    %c0_4 = arith.constant 0 : index
    %3 = vector.load %arg1[%c0_2, %c0_3, %c0_4] : memref<5x2x12xf32, #tpu.memory_space<vmem>>, vector<1x2x12xf32>
    %4 = vector.shape_cast %3 : vector<1x2x12xf32> to vector<2x12xf32>
    %5 = arith.truncf %4 : vector<2x12xf32> to vector<2x12xbf16>
    %c2 = arith.constant 2 : index
    %c0_5 = arith.constant 0 : index
    %6 = vector.load %arg36[%c2, %c0_5] : memref<16x128xbf16, #tpu.memory_space<vmem>>, vector<2x12xbf16>
    tpu.vector_store %arg36[%c2, %c0_5], %5 {strides = array<i32>} : memref<16x128xbf16, #tpu.memory_space<vmem>>, vector<2x12xbf16>,
    %c1 = arith.constant 1 : index
    %c0_6 = arith.constant 0 : index
    %c0_7 = arith.constant 0 : index
    %7 = vector.load %arg1[%c1, %c0_6, %c0_7] : memref<5x2x12xf32, #tpu.memory_space<vmem>>, vector<1x2x12xf32>
    %8 = vector.shape_cast %7 : vector<1x2x12xf32> to vector<2x12xf32>
    %9 = arith.truncf %8 : vector<2x12xf32> to vector<2x12xbf16>
    %c4 = arith.constant 4 : index
    %c0_8 = arith.constant 0 : index
    %10 = vector.load %arg36[%c4, %c0_8] : memref<16x128xbf16, #tpu.memory_space<vmem>>, vector<2x12xbf16>
    tpu.vector_store %arg36[%c4, %c0_8], %9 {strides = array<i32>} : memref<16x128xbf16, #tpu.memory_space<vmem>>, vector<2x12xbf16>,
    %c2_9 = arith.constant 2 : index
    %c0_10 = arith.constant 0 : index
    %c0_11 = arith.constant 0 : index
    %11 = vector.load %arg1[%c2_9, %c0_10, %c0_11] : memref<5x2x12xf32, #tpu.memory_space<vmem>>, vector<1x2x12xf32>
    %12 = vector.shape_cast %11 : vector<1x2x12xf32> to vector<2x12xf32>
    %13 = arith.truncf %12 : vector<2x12xf32> to vector<2x12xbf16>
    %c6 = arith.constant 6 : index
    %c0_12 = arith.constant 0 : index
    %14 = vector.load %arg36[%c6, %c0_12] : memref<16x128xbf16, #tpu.memory_space<vmem>>, vector<2x12xbf16>
    tpu.vector_store %arg36[%c6, %c0_12], %13 {strides = array<i32>} : memref<16x128xbf16, #tpu.memory_space<vmem>>, vector<2x12xbf16>,
    %c3 = arith.constant 3 : index
    %c0_13 = arith.constant 0 : index
    %c0_14 = arith.constant 0 : index
    %15 = vector.load %arg1[%c3, %c0_13, %c0_14] : memref<5x2x12xf32, #tpu.memory_space<vmem>>, vector<1x2x12xf32>
    %16 = vector.shape_cast %15 : vector<1x2x12xf32> to vector<2x12xf32>
    %17 = arith.truncf %16 : vector<2x12xf32> to vector<2x12xbf16>
    %c8 = arith.constant 8 : index
    %c0_15 = arith.constant 0 : index
    %18 = vector.load %arg36[%c8, %c0_15] : memref<16x128xbf16, #tpu.memory_space<vmem>>, vector<2x12xbf16>
    tpu.vector_store %arg36[%c8, %c0_15], %17 {strides = array<i32>} : memref<16x128xbf16, #tpu.memory_space<vmem>>, vector<2x12xbf16>,
    %c4_16 = arith.constant 4 : index
    %c0_17 = arith.constant 0 : index
    %c0_18 = arith.constant 0 : index
    %19 = vector.load %arg1[%c4_16, %c0_17, %c0_18] : memref<5x2x12xf32, #tpu.memory_space<vmem>>, vector<1x2x12xf32>
    %20 = vector.shape_cast %19 : vector<1x2x12xf32> to vector<2x12xf32>
    %21 = arith.truncf %20 : vector<2x12xf32> to vector<2x12xbf16>
    %c10 = arith.constant 10 : index
    %c0_19 = arith.constant 0 : index
    %22 = vector.load %arg36[%c10, %c0_19] : memref<16x128xbf16, #tpu.memory_space<vmem>>, vector<2x12xbf16>
    tpu.vector_store %arg36[%c10, %c0_19], %21 {strides = array<i32>} : memref<16x128xbf16, #tpu.memory_space<vmem>>, vector<2x12xbf16>,
    %c0_20 = arith.constant 0 : index
    %c0_21 = arith.constant 0 : index
    %23 = vector.load %arg36[%c0_20, %c0_21] : memref<16x128xbf16, #tpu.memory_space<vmem>>, vector<10x12xbf16>
    %c0_22 = arith.constant 0 : index
    %c0_23 = arith.constant 0 : index
    %c0_24 = arith.constant 0 : index
    %24 = vector.load %arg2[%c0_22, %c0_23, %c0_24] : memref<3x12x12xbf16, #tpu.memory_space<vmem>>, vector<1x12x12xbf16>
    %25 = vector.shape_cast %24 : vector<1x12x12xbf16> to vector<12x12xbf16>
    %cst_25 = arith.constant dense<0.000000e+00> : vector<10x12xf32>
    %26 = tpu.matmul %23, %25, %cst_25 {dimension_numbers = #tpu.dot_dimension_numbers<[1], [0], [0], [1], [0, 0, 1, 1], [], []>} : vector<10x12xbf16>, vector<12x12xbf16>, vector<10x12xf32> -> vector<10x12xf32>
    %c2_26 = arith.constant 2 : index
    %c0_27 = arith.constant 0 : index
    %27 = vector.load %arg36[%c2_26, %c0_27] : memref<16x128xbf16, #tpu.memory_space<vmem>>, vector<10x12xbf16>
    %c1_28 = arith.constant 1 : index
    %c0_29 = arith.constant 0 : index
    %c0_30 = arith.constant 0 : index
    %28 = vector.load %arg2[%c1_28, %c0_29, %c0_30] : memref<3x12x12xbf16, #tpu.memory_space<vmem>>, vector<1x12x12xbf16>
    %29 = vector.shape_cast %28 : vector<1x12x12xbf16> to vector<12x12xbf16>
    %cst_31 = arith.constant dense<0.000000e+00> : vector<10x12xf32>
    %30 = tpu.matmul %27, %29, %cst_31 {dimension_numbers = #tpu.dot_dimension_numbers<[1], [0], [0], [1], [0, 0, 1, 1], [], []>} : vector<10x12xbf16>, vector<12x12xbf16>, vector<10x12xf32> -> vector<10x12xf32>
    %31 = arith.addf %26, %30 : vector<10x12xf32>
    %c4_32 = arith.constant 4 : index
    %c0_33 = arith.constant 0 : index
    %32 = vector.load %arg36[%c4_32, %c0_33] : memref<16x128xbf16, #tpu.memory_space<vmem>>, vector<10x12xbf16>
    %c2_34 = arith.constant 2 : index
    %c0_35 = arith.constant 0 : index
    %c0_36 = arith.constant 0 : index
    %33 = vector.load %arg2[%c2_34, %c0_35, %c0_36] : memref<3x12x12xbf16, #tpu.memory_space<vmem>>, vector<1x12x12xbf16>
    %34 = vector.shape_cast %33 : vector<1x12x12xbf16> to vector<12x12xbf16>
    %cst_37 = arith.constant dense<0.000000e+00> : vector<10x12xf32>
    %35 = tpu.matmul %32, %34, %cst_37 {dimension_numbers = #tpu.dot_dimension_numbers<[1], [0], [0], [1], [0, 0, 1, 1], [], []>} : vector<10x12xbf16>, vector<12x12xbf16>, vector<10x12xf32> -> vector<10x12xf32>
    %36 = arith.addf %31, %35 : vector<10x12xf32>
    %c0_38 = arith.constant 0 : index
    %c0_39 = arith.constant 0 : index
    %37 = vector.load %arg3[%c0_38, %c0_39] : memref<1x12xf32, #tpu.memory_space<vmem>>, vector<1x12xf32>
    %38 = vector.broadcast %37 : vector<1x12xf32> to vector<10x12xf32>
    %39 = arith.mulf %36, %38 : vector<10x12xf32>
    %c0_40 = arith.constant 0 : index
    %c0_41 = arith.constant 0 : index
    %40 = vector.load %arg4[%c0_40, %c0_41] : memref<1x12xf32, #tpu.memory_space<vmem>>, vector<1x12xf32>
    %41 = vector.broadcast %40 : vector<1x12xf32> to vector<10x12xf32>
    %42 = arith.addf %39, %41 : vector<10x12xf32>
    %cst_42 = arith.constant 0.000000e+00 : f32
    %43 = vector.broadcast %cst_42 : f32 to vector<10x12xf32>
    %44 = arith.maximumf %42, %43 : vector<10x12xf32>
    %cst_43 = arith.constant 0.000000e+00 : bf16
    %45 = vector.broadcast %cst_43 : bf16 to vector<2x12xbf16>
    %c0_44 = arith.constant 0 : index
    %c0_45 = arith.constant 0 : index
    %46 = vector.load %arg36[%c0_44, %c0_45] : memref<16x128xbf16, #tpu.memory_space<vmem>>, vector<2x12xbf16>
    tpu.vector_store %arg36[%c0_44, %c0_45], %45 {strides = array<i32>} : memref<16x128xbf16, #tpu.memory_space<vmem>>, vector<2x12xbf16>,
    %c12_46 = arith.constant 12 : index
    %c0_47 = arith.constant 0 : index
    %47 = vector.load %arg36[%c12_46, %c0_47] : memref<16x128xbf16, #tpu.memory_space<vmem>>, vector<2x12xbf16>
    tpu.vector_store %arg36[%c12_46, %c0_47], %45 {strides = array<i32>} : memref<16x128xbf16, #tpu.memory_space<vmem>>, vector<2x12xbf16>,
    %48 = arith.truncf %44 : vector<10x12xf32> to vector<10x12xbf16>
    %c2_48 = arith.constant 2 : index
    %c0_49 = arith.constant 0 : index
    %49 = vector.load %arg36[%c2_48, %c0_49] : memref<16x128xbf16, #tpu.memory_space<vmem>>, vector<10x12xbf16>
    tpu.vector_store %arg36[%c2_48, %c0_49], %48 {strides = array<i32>} : memref<16x128xbf16, #tpu.memory_space<vmem>>, vector<10x12xbf16>,
    %c0_50 = arith.constant 0 : index
    %c0_51 = arith.constant 0 : index
    %50 = vector.load %arg36[%c0_50, %c0_51] : memref<16x128xbf16, #tpu.memory_space<vmem>>, vector<10x12xbf16>
    %c0_52 = arith.constant 0 : index
    %c0_53 = arith.constant 0 : index
    %c0_54 = arith.constant 0 : index
    %51 = vector.load %arg5[%c0_52, %c0_53, %c0_54] : memref<3x12x16xbf16, #tpu.memory_space<vmem>>, vector<1x12x16xbf16>
    %52 = vector.shape_cast %51 : vector<1x12x16xbf16> to vector<12x16xbf16>
    %cst_55 = arith.constant dense<0.000000e+00> : vector<10x16xf32>
    %53 = tpu.matmul %50, %52, %cst_55 {dimension_numbers = #tpu.dot_dimension_numbers<[1], [0], [0], [1], [0, 0, 1, 1], [], []>} : vector<10x12xbf16>, vector<12x16xbf16>, vector<10x16xf32> -> vector<10x16xf32>
    %c2_56 = arith.constant 2 : index
    %c0_57 = arith.constant 0 : index
    %54 = vector.load %arg36[%c2_56, %c0_57] : memref<16x128xbf16, #tpu.memory_space<vmem>>, vector<10x12xbf16>
    %c1_58 = arith.constant 1 : index
    %c0_59 = arith.constant 0 : index
    %c0_60 = arith.constant 0 : index
    %55 = vector.load %arg5[%c1_58, %c0_59, %c0_60] : memref<3x12x16xbf16, #tpu.memory_space<vmem>>, vector<1x12x16xbf16>
    %56 = vector.shape_cast %55 : vector<1x12x16xbf16> to vector<12x16xbf16>
    %cst_61 = arith.constant dense<0.000000e+00> : vector<10x16xf32>
    %57 = tpu.matmul %54, %56, %cst_61 {dimension_numbers = #tpu.dot_dimension_numbers<[1], [0], [0], [1], [0, 0, 1, 1], [], []>} : vector<10x12xbf16>, vector<12x16xbf16>, vector<10x16xf32> -> vector<10x16xf32>
    %58 = arith.addf %53, %57 : vector<10x16xf32>
    %c4_62 = arith.constant 4 : index
    %c0_63 = arith.constant 0 : index
    %59 = vector.load %arg36[%c4_62, %c0_63] : memref<16x128xbf16, #tpu.memory_space<vmem>>, vector<10x12xbf16>
    %c2_64 = arith.constant 2 : index
    %c0_65 = arith.constant 0 : index
    %c0_66 = arith.constant 0 : index
    %60 = vector.load %arg5[%c2_64, %c0_65, %c0_66] : memref<3x12x16xbf16, #tpu.memory_space<vmem>>, vector<1x12x16xbf16>
    %61 = vector.shape_cast %60 : vector<1x12x16xbf16> to vector<12x16xbf16>
    %cst_67 = arith.constant dense<0.000000e+00> : vector<10x16xf32>
    %62 = tpu.matmul %59, %61, %cst_67 {dimension_numbers = #tpu.dot_dimension_numbers<[1], [0], [0], [1], [0, 0, 1, 1], [], []>} : vector<10x12xbf16>, vector<12x16xbf16>, vector<10x16xf32> -> vector<10x16xf32>
    %63 = arith.addf %58, %62 : vector<10x16xf32>
    %c0_68 = arith.constant 0 : index
    %c0_69 = arith.constant 0 : index
    %64 = vector.load %arg6[%c0_68, %c0_69] : memref<1x16xf32, #tpu.memory_space<vmem>>, vector<1x16xf32>
    %65 = vector.broadcast %64 : vector<1x16xf32> to vector<10x16xf32>
    %66 = arith.mulf %63, %65 : vector<10x16xf32>
    %c0_70 = arith.constant 0 : index
    %c0_71 = arith.constant 0 : index
    %67 = vector.load %arg7[%c0_70, %c0_71] : memref<1x16xf32, #tpu.memory_space<vmem>>, vector<1x16xf32>
    %68 = vector.broadcast %67 : vector<1x16xf32> to vector<10x16xf32>
    %69 = arith.addf %66, %68 : vector<10x16xf32>
    %cst_72 = arith.constant 0.000000e+00 : f32
    %70 = vector.broadcast %cst_72 : f32 to vector<10x16xf32>
    %71 = arith.maximumf %69, %70 : vector<10x16xf32>
    %cst_73 = arith.constant 0.000000e+00 : bf16
    %72 = vector.broadcast %cst_73 : bf16 to vector<2x16xbf16>
    %c0_74 = arith.constant 0 : index
    %c0_75 = arith.constant 0 : index
    %73 = vector.load %arg36[%c0_74, %c0_75] : memref<16x128xbf16, #tpu.memory_space<vmem>>, vector<2x16xbf16>
    tpu.vector_store %arg36[%c0_74, %c0_75], %72 {strides = array<i32>} : memref<16x128xbf16, #tpu.memory_space<vmem>>, vector<2x16xbf16>,
    %c12_76 = arith.constant 12 : index
    %c0_77 = arith.constant 0 : index
    %74 = vector.load %arg36[%c12_76, %c0_77] : memref<16x128xbf16, #tpu.memory_space<vmem>>, vector<2x16xbf16>
    tpu.vector_store %arg36[%c12_76, %c0_77], %72 {strides = array<i32>} : memref<16x128xbf16, #tpu.memory_space<vmem>>, vector<2x16xbf16>,
    %75 = arith.truncf %71 : vector<10x16xf32> to vector<10x16xbf16>
    %c2_78 = arith.constant 2 : index
    %c0_79 = arith.constant 0 : index
    %76 = vector.load %arg36[%c2_78, %c0_79] : memref<16x128xbf16, #tpu.memory_space<vmem>>, vector<10x16xbf16>
    tpu.vector_store %arg36[%c2_78, %c0_79], %75 {strides = array<i32>} : memref<16x128xbf16, #tpu.memory_space<vmem>>, vector<10x16xbf16>,
    %c0_80 = arith.constant 0 : index
    %c0_81 = arith.constant 0 : index
    %77 = vector.load %arg36[%c0_80, %c0_81] : memref<16x128xbf16, #tpu.memory_space<vmem>>, vector<10x16xbf16>
    %c0_82 = arith.constant 0 : index
    %c0_83 = arith.constant 0 : index
    %c0_84 = arith.constant 0 : index
    %78 = vector.load %arg8[%c0_82, %c0_83, %c0_84] : memref<3x16x16xbf16, #tpu.memory_space<vmem>>, vector<1x16x16xbf16>
    %79 = vector.shape_cast %78 : vector<1x16x16xbf16> to vector<16x16xbf16>
    %cst_85 = arith.constant dense<0.000000e+00> : vector<10x16xf32>
    %80 = tpu.matmul %77, %79, %cst_85 {dimension_numbers = #tpu.dot_dimension_numbers<[1], [0], [0], [1], [0, 0, 1, 1], [], []>} : vector<10x16xbf16>, vector<16x16xbf16>, vector<10x16xf32> -> vector<10x16xf32>
    %c2_86 = arith.constant 2 : index
    %c0_87 = arith.constant 0 : index
    %81 = vector.load %arg36[%c2_86, %c0_87] : memref<16x128xbf16, #tpu.memory_space<vmem>>, vector<10x16xbf16>
    %c1_88 = arith.constant 1 : index
    %c0_89 = arith.constant 0 : index
    %c0_90 = arith.constant 0 : index
    %82 = vector.load %arg8[%c1_88, %c0_89, %c0_90] : memref<3x16x16xbf16, #tpu.memory_space<vmem>>, vector<1x16x16xbf16>
    %83 = vector.shape_cast %82 : vector<1x16x16xbf16> to vector<16x16xbf16>
    %cst_91 = arith.constant dense<0.000000e+00> : vector<10x16xf32>
    %84 = tpu.matmul %81, %83, %cst_91 {dimension_numbers = #tpu.dot_dimension_numbers<[1], [0], [0], [1], [0, 0, 1, 1], [], []>} : vector<10x16xbf16>, vector<16x16xbf16>, vector<10x16xf32> -> vector<10x16xf32>
    %85 = arith.addf %80, %84 : vector<10x16xf32>
    %c4_92 = arith.constant 4 : index
    %c0_93 = arith.constant 0 : index
    %86 = vector.load %arg36[%c4_92, %c0_93] : memref<16x128xbf16, #tpu.memory_space<vmem>>, vector<10x16xbf16>
    %c2_94 = arith.constant 2 : index
    %c0_95 = arith.constant 0 : index
    %c0_96 = arith.constant 0 : index
    %87 = vector.load %arg8[%c2_94, %c0_95, %c0_96] : memref<3x16x16xbf16, #tpu.memory_space<vmem>>, vector<1x16x16xbf16>
    %88 = vector.shape_cast %87 : vector<1x16x16xbf16> to vector<16x16xbf16>
    %cst_97 = arith.constant dense<0.000000e+00> : vector<10x16xf32>
    %89 = tpu.matmul %86, %88, %cst_97 {dimension_numbers = #tpu.dot_dimension_numbers<[1], [0], [0], [1], [0, 0, 1, 1], [], []>} : vector<10x16xbf16>, vector<16x16xbf16>, vector<10x16xf32> -> vector<10x16xf32>
    %90 = arith.addf %85, %89 : vector<10x16xf32>
    %c0_98 = arith.constant 0 : index
    %c0_99 = arith.constant 0 : index
    %91 = vector.load %arg9[%c0_98, %c0_99] : memref<1x16xf32, #tpu.memory_space<vmem>>, vector<1x16xf32>
    %92 = vector.broadcast %91 : vector<1x16xf32> to vector<10x16xf32>
    %93 = arith.mulf %90, %92 : vector<10x16xf32>
    %c0_100 = arith.constant 0 : index
    %c0_101 = arith.constant 0 : index
    %94 = vector.load %arg10[%c0_100, %c0_101] : memref<1x16xf32, #tpu.memory_space<vmem>>, vector<1x16xf32>
    %95 = vector.broadcast %94 : vector<1x16xf32> to vector<10x16xf32>
    %96 = arith.addf %93, %95 : vector<10x16xf32>
    %97 = arith.addf %96, %71 : vector<10x16xf32>
    %cst_102 = arith.constant 0.000000e+00 : f32
    %98 = vector.broadcast %cst_102 : f32 to vector<10x16xf32>
    %99 = arith.maximumf %97, %98 : vector<10x16xf32>
    %cst_103 = arith.constant 0.000000e+00 : bf16
    %100 = vector.broadcast %cst_103 : bf16 to vector<2x16xbf16>
    %c0_104 = arith.constant 0 : index
    %c0_105 = arith.constant 0 : index
    %101 = vector.load %arg36[%c0_104, %c0_105] : memref<16x128xbf16, #tpu.memory_space<vmem>>, vector<2x16xbf16>
    tpu.vector_store %arg36[%c0_104, %c0_105], %100 {strides = array<i32>} : memref<16x128xbf16, #tpu.memory_space<vmem>>, vector<2x16xbf16>,
    %c12_106 = arith.constant 12 : index
    %c0_107 = arith.constant 0 : index
    %102 = vector.load %arg36[%c12_106, %c0_107] : memref<16x128xbf16, #tpu.memory_space<vmem>>, vector<2x16xbf16>
    tpu.vector_store %arg36[%c12_106, %c0_107], %100 {strides = array<i32>} : memref<16x128xbf16, #tpu.memory_space<vmem>>, vector<2x16xbf16>,
    %103 = arith.truncf %99 : vector<10x16xf32> to vector<10x16xbf16>
    %c2_108 = arith.constant 2 : index
    %c0_109 = arith.constant 0 : index
    %104 = vector.load %arg36[%c2_108, %c0_109] : memref<16x128xbf16, #tpu.memory_space<vmem>>, vector<10x16xbf16>
    tpu.vector_store %arg36[%c2_108, %c0_109], %103 {strides = array<i32>} : memref<16x128xbf16, #tpu.memory_space<vmem>>, vector<10x16xbf16>,
    %c0_110 = arith.constant 0 : index
    %c0_111 = arith.constant 0 : index
    %105 = vector.load %arg36[%c0_110, %c0_111] : memref<16x128xbf16, #tpu.memory_space<vmem>>, vector<2x16xbf16>
    %c0_112 = arith.constant 0 : index
    %c0_113 = arith.constant 0 : index
    %106 = vector.load %arg37[%c0_112, %c0_113] : memref<16x128xbf16, #tpu.memory_space<vmem>>, vector<2x16xbf16>
    tpu.vector_store %arg37[%c0_112, %c0_113], %105 {strides = array<i32>} : memref<16x128xbf16, #tpu.memory_space<vmem>>, vector<2x16xbf16>,
    %c4_114 = arith.constant 4 : index
    %c0_115 = arith.constant 0 : index
    %107 = vector.load %arg36[%c4_114, %c0_115] : memref<16x128xbf16, #tpu.memory_space<vmem>>, vector<2x16xbf16>
    %c2_116 = arith.constant 2 : index
    %c0_117 = arith.constant 0 : index
    %108 = vector.load %arg37[%c2_116, %c0_117] : memref<16x128xbf16, #tpu.memory_space<vmem>>, vector<2x16xbf16>
    tpu.vector_store %arg37[%c2_116, %c0_117], %107 {strides = array<i32>} : memref<16x128xbf16, #tpu.memory_space<vmem>>, vector<2x16xbf16>,
    %c8_118 = arith.constant 8 : index
    %c0_119 = arith.constant 0 : index
    %109 = vector.load %arg36[%c8_118, %c0_119] : memref<16x128xbf16, #tpu.memory_space<vmem>>, vector<2x16xbf16>
    %c4_120 = arith.constant 4 : index
    %c0_121 = arith.constant 0 : index
    %110 = vector.load %arg37[%c4_120, %c0_121] : memref<16x128xbf16, #tpu.memory_space<vmem>>, vector<2x16xbf16>
    tpu.vector_store %arg37[%c4_120, %c0_121], %109 {strides = array<i32>} : memref<16x128xbf16, #tpu.memory_space<vmem>>, vector<2x16xbf16>,
    %c0_122 = arith.constant 0 : index
    %c0_123 = arith.constant 0 : index
    %111 = vector.load %arg37[%c0_122, %c0_123] : memref<16x128xbf16, #tpu.memory_space<vmem>>, vector<6x16xbf16>
    %c0_124 = arith.constant 0 : index
    %c0_125 = arith.constant 0 : index
    %c0_126 = arith.constant 0 : index
    %112 = vector.load %arg11[%c0_124, %c0_125, %c0_126] : memref<3x16x32xbf16, #tpu.memory_space<vmem>>, vector<1x16x32xbf16>
    %113 = vector.shape_cast %112 : vector<1x16x32xbf16> to vector<16x32xbf16>
    %cst_127 = arith.constant dense<0.000000e+00> : vector<6x32xf32>
    %114 = tpu.matmul %111, %113, %cst_127 {dimension_numbers = #tpu.dot_dimension_numbers<[1], [0], [0], [1], [0, 0, 1, 1], [], []>} : vector<6x16xbf16>, vector<16x32xbf16>, vector<6x32xf32> -> vector<6x32xf32>
    %c2_128 = arith.constant 2 : index
    %c0_129 = arith.constant 0 : index
    %115 = vector.load %arg36[%c2_128, %c0_129] : memref<16x128xbf16, #tpu.memory_space<vmem>>, vector<2x16xbf16>
    %c0_130 = arith.constant 0 : index
    %c0_131 = arith.constant 0 : index
    %116 = vector.load %arg37[%c0_130, %c0_131] : memref<16x128xbf16, #tpu.memory_space<vmem>>, vector<2x16xbf16>
    tpu.vector_store %arg37[%c0_130, %c0_131], %115 {strides = array<i32>} : memref<16x128xbf16, #tpu.memory_space<vmem>>, vector<2x16xbf16>,
    %c6_132 = arith.constant 6 : index
    %c0_133 = arith.constant 0 : index
    %117 = vector.load %arg36[%c6_132, %c0_133] : memref<16x128xbf16, #tpu.memory_space<vmem>>, vector<2x16xbf16>
    %c2_134 = arith.constant 2 : index
    %c0_135 = arith.constant 0 : index
    %118 = vector.load %arg37[%c2_134, %c0_135] : memref<16x128xbf16, #tpu.memory_space<vmem>>, vector<2x16xbf16>
    tpu.vector_store %arg37[%c2_134, %c0_135], %117 {strides = array<i32>} : memref<16x128xbf16, #tpu.memory_space<vmem>>, vector<2x16xbf16>,
    %c10_136 = arith.constant 10 : index
    %c0_137 = arith.constant 0 : index
    %119 = vector.load %arg36[%c10_136, %c0_137] : memref<16x128xbf16, #tpu.memory_space<vmem>>, vector<2x16xbf16>
    %c4_138 = arith.constant 4 : index
    %c0_139 = arith.constant 0 : index
    %120 = vector.load %arg37[%c4_138, %c0_139] : memref<16x128xbf16, #tpu.memory_space<vmem>>, vector<2x16xbf16>
    tpu.vector_store %arg37[%c4_138, %c0_139], %119 {strides = array<i32>} : memref<16x128xbf16, #tpu.memory_space<vmem>>, vector<2x16xbf16>,
    %c0_140 = arith.constant 0 : index
    %c0_141 = arith.constant 0 : index
    %121 = vector.load %arg37[%c0_140, %c0_141] : memref<16x128xbf16, #tpu.memory_space<vmem>>, vector<6x16xbf16>
    %c1_142 = arith.constant 1 : index
    %c0_143 = arith.constant 0 : index
    %c0_144 = arith.constant 0 : index
    %122 = vector.load %arg11[%c1_142, %c0_143, %c0_144] : memref<3x16x32xbf16, #tpu.memory_space<vmem>>, vector<1x16x32xbf16>
    %123 = vector.shape_cast %122 : vector<1x16x32xbf16> to vector<16x32xbf16>
    %cst_145 = arith.constant dense<0.000000e+00> : vector<6x32xf32>
    %124 = tpu.matmul %121, %123, %cst_145 {dimension_numbers = #tpu.dot_dimension_numbers<[1], [0], [0], [1], [0, 0, 1, 1], [], []>} : vector<6x16xbf16>, vector<16x32xbf16>, vector<6x32xf32> -> vector<6x32xf32>
    %125 = arith.addf %114, %124 : vector<6x32xf32>
    %c4_146 = arith.constant 4 : index
    %c0_147 = arith.constant 0 : index
    %126 = vector.load %arg36[%c4_146, %c0_147] : memref<16x128xbf16, #tpu.memory_space<vmem>>, vector<2x16xbf16>
    %c0_148 = arith.constant 0 : index
    %c0_149 = arith.constant 0 : index
    %127 = vector.load %arg37[%c0_148, %c0_149] : memref<16x128xbf16, #tpu.memory_space<vmem>>, vector<2x16xbf16>
    tpu.vector_store %arg37[%c0_148, %c0_149], %126 {strides = array<i32>} : memref<16x128xbf16, #tpu.memory_space<vmem>>, vector<2x16xbf16>,
    %c8_150 = arith.constant 8 : index
    %c0_151 = arith.constant 0 : index
    %128 = vector.load %arg36[%c8_150, %c0_151] : memref<16x128xbf16, #tpu.memory_space<vmem>>, vector<2x16xbf16>
    %c2_152 = arith.constant 2 : index
    %c0_153 = arith.constant 0 : index
    %129 = vector.load %arg37[%c2_152, %c0_153] : memref<16x128xbf16, #tpu.memory_space<vmem>>, vector<2x16xbf16>
    tpu.vector_store %arg37[%c2_152, %c0_153], %128 {strides = array<i32>} : memref<16x128xbf16, #tpu.memory_space<vmem>>, vector<2x16xbf16>,
    %c12_154 = arith.constant 12 : index
    %c0_155 = arith.constant 0 : index
    %130 = vector.load %arg36[%c12_154, %c0_155] : memref<16x128xbf16, #tpu.memory_space<vmem>>, vector<2x16xbf16>
    %c4_156 = arith.constant 4 : index
    %c0_157 = arith.constant 0 : index
    %131 = vector.load %arg37[%c4_156, %c0_157] : memref<16x128xbf16, #tpu.memory_space<vmem>>, vector<2x16xbf16>
    tpu.vector_store %arg37[%c4_156, %c0_157], %130 {strides = array<i32>} : memref<16x128xbf16, #tpu.memory_space<vmem>>, vector<2x16xbf16>,
    %c0_158 = arith.constant 0 : index
    %c0_159 = arith.constant 0 : index
    %132 = vector.load %arg37[%c0_158, %c0_159] : memref<16x128xbf16, #tpu.memory_space<vmem>>, vector<6x16xbf16>
    %c2_160 = arith.constant 2 : index
    %c0_161 = arith.constant 0 : index
    %c0_162 = arith.constant 0 : index
    %133 = vector.load %arg11[%c2_160, %c0_161, %c0_162] : memref<3x16x32xbf16, #tpu.memory_space<vmem>>, vector<1x16x32xbf16>
    %134 = vector.shape_cast %133 : vector<1x16x32xbf16> to vector<16x32xbf16>
    %cst_163 = arith.constant dense<0.000000e+00> : vector<6x32xf32>
    %135 = tpu.matmul %132, %134, %cst_163 {dimension_numbers = #tpu.dot_dimension_numbers<[1], [0], [0], [1], [0, 0, 1, 1], [], []>} : vector<6x16xbf16>, vector<16x32xbf16>, vector<6x32xf32> -> vector<6x32xf32>
    %136 = arith.addf %125, %135 : vector<6x32xf32>
    %c0_164 = arith.constant 0 : index
    %c0_165 = arith.constant 0 : index
    %137 = vector.load %arg12[%c0_164, %c0_165] : memref<1x32xf32, #tpu.memory_space<vmem>>, vector<1x32xf32>
    %138 = vector.broadcast %137 : vector<1x32xf32> to vector<6x32xf32>
    %139 = arith.mulf %136, %138 : vector<6x32xf32>
    %c0_166 = arith.constant 0 : index
    %c0_167 = arith.constant 0 : index
    %140 = vector.load %arg13[%c0_166, %c0_167] : memref<1x32xf32, #tpu.memory_space<vmem>>, vector<1x32xf32>
    %141 = vector.broadcast %140 : vector<1x32xf32> to vector<6x32xf32>
    %142 = arith.addf %139, %141 : vector<6x32xf32>
    %cst_168 = arith.constant 0.000000e+00 : f32
    %143 = vector.broadcast %cst_168 : f32 to vector<6x32xf32>
    %144 = arith.maximumf %142, %143 : vector<6x32xf32>
    %cst_169 = arith.constant 0.000000e+00 : bf16
    %145 = vector.broadcast %cst_169 : bf16 to vector<2x32xbf16>
    %c0_170 = arith.constant 0 : index
    %c0_171 = arith.constant 0 : index
    %146 = vector.load %arg36[%c0_170, %c0_171] : memref<16x128xbf16, #tpu.memory_space<vmem>>, vector<2x32xbf16>
    tpu.vector_store %arg36[%c0_170, %c0_171], %145 {strides = array<i32>} : memref<16x128xbf16, #tpu.memory_space<vmem>>, vector<2x32xbf16>,
    %c8_172 = arith.constant 8 : index
    %c0_173 = arith.constant 0 : index
    %147 = vector.load %arg36[%c8_172, %c0_173] : memref<16x128xbf16, #tpu.memory_space<vmem>>, vector<2x32xbf16>
    tpu.vector_store %arg36[%c8_172, %c0_173], %145 {strides = array<i32>} : memref<16x128xbf16, #tpu.memory_space<vmem>>, vector<2x32xbf16>,
    %148 = arith.truncf %144 : vector<6x32xf32> to vector<6x32xbf16>
    %c2_174 = arith.constant 2 : index
    %c0_175 = arith.constant 0 : index
    %149 = vector.load %arg36[%c2_174, %c0_175] : memref<16x128xbf16, #tpu.memory_space<vmem>>, vector<6x32xbf16>
    tpu.vector_store %arg36[%c2_174, %c0_175], %148 {strides = array<i32>} : memref<16x128xbf16, #tpu.memory_space<vmem>>, vector<6x32xbf16>,
    %c0_176 = arith.constant 0 : index
    %c0_177 = arith.constant 0 : index
    %150 = vector.load %arg36[%c0_176, %c0_177] : memref<16x128xbf16, #tpu.memory_space<vmem>>, vector<6x32xbf16>
    %c0_178 = arith.constant 0 : index
    %c0_179 = arith.constant 0 : index
    %c0_180 = arith.constant 0 : index
    %151 = vector.load %arg14[%c0_178, %c0_179, %c0_180] : memref<3x32x32xbf16, #tpu.memory_space<vmem>>, vector<1x32x32xbf16>
    %152 = vector.shape_cast %151 : vector<1x32x32xbf16> to vector<32x32xbf16>
    %cst_181 = arith.constant dense<0.000000e+00> : vector<6x32xf32>
    %153 = tpu.matmul %150, %152, %cst_181 {dimension_numbers = #tpu.dot_dimension_numbers<[1], [0], [0], [1], [0, 0, 1, 1], [], []>} : vector<6x32xbf16>, vector<32x32xbf16>, vector<6x32xf32> -> vector<6x32xf32>
    %c2_182 = arith.constant 2 : index
    %c0_183 = arith.constant 0 : index
    %154 = vector.load %arg36[%c2_182, %c0_183] : memref<16x128xbf16, #tpu.memory_space<vmem>>, vector<6x32xbf16>
    %c1_184 = arith.constant 1 : index
    %c0_185 = arith.constant 0 : index
    %c0_186 = arith.constant 0 : index
    %155 = vector.load %arg14[%c1_184, %c0_185, %c0_186] : memref<3x32x32xbf16, #tpu.memory_space<vmem>>, vector<1x32x32xbf16>
    %156 = vector.shape_cast %155 : vector<1x32x32xbf16> to vector<32x32xbf16>
    %cst_187 = arith.constant dense<0.000000e+00> : vector<6x32xf32>
    %157 = tpu.matmul %154, %156, %cst_187 {dimension_numbers = #tpu.dot_dimension_numbers<[1], [0], [0], [1], [0, 0, 1, 1], [], []>} : vector<6x32xbf16>, vector<32x32xbf16>, vector<6x32xf32> -> vector<6x32xf32>
    %158 = arith.addf %153, %157 : vector<6x32xf32>
    %c4_188 = arith.constant 4 : index
    %c0_189 = arith.constant 0 : index
    %159 = vector.load %arg36[%c4_188, %c0_189] : memref<16x128xbf16, #tpu.memory_space<vmem>>, vector<6x32xbf16>
    %c2_190 = arith.constant 2 : index
    %c0_191 = arith.constant 0 : index
    %c0_192 = arith.constant 0 : index
    %160 = vector.load %arg14[%c2_190, %c0_191, %c0_192] : memref<3x32x32xbf16, #tpu.memory_space<vmem>>, vector<1x32x32xbf16>
    %161 = vector.shape_cast %160 : vector<1x32x32xbf16> to vector<32x32xbf16>
    %cst_193 = arith.constant dense<0.000000e+00> : vector<6x32xf32>
    %162 = tpu.matmul %159, %161, %cst_193 {dimension_numbers = #tpu.dot_dimension_numbers<[1], [0], [0], [1], [0, 0, 1, 1], [], []>} : vector<6x32xbf16>, vector<32x32xbf16>, vector<6x32xf32> -> vector<6x32xf32>
    %163 = arith.addf %158, %162 : vector<6x32xf32>
    %c0_194 = arith.constant 0 : index
    %c0_195 = arith.constant 0 : index
    %164 = vector.load %arg15[%c0_194, %c0_195] : memref<1x32xf32, #tpu.memory_space<vmem>>, vector<1x32xf32>
    %165 = vector.broadcast %164 : vector<1x32xf32> to vector<6x32xf32>
    %166 = arith.mulf %163, %165 : vector<6x32xf32>
    %c0_196 = arith.constant 0 : index
    %c0_197 = arith.constant 0 : index
    %167 = vector.load %arg16[%c0_196, %c0_197] : memref<1x32xf32, #tpu.memory_space<vmem>>, vector<1x32xf32>
    %168 = vector.broadcast %167 : vector<1x32xf32> to vector<6x32xf32>
    %169 = arith.addf %166, %168 : vector<6x32xf32>
    %170 = arith.addf %169, %144 : vector<6x32xf32>
    %cst_198 = arith.constant 0.000000e+00 : f32
    %171 = vector.broadcast %cst_198 : f32 to vector<6x32xf32>
    %172 = arith.maximumf %170, %171 : vector<6x32xf32>
    %cst_199 = arith.constant 0.000000e+00 : bf16
    %173 = vector.broadcast %cst_199 : bf16 to vector<2x32xbf16>
    %c0_200 = arith.constant 0 : index
    %c0_201 = arith.constant 0 : index
    %174 = vector.load %arg36[%c0_200, %c0_201] : memref<16x128xbf16, #tpu.memory_space<vmem>>, vector<2x32xbf16>
    tpu.vector_store %arg36[%c0_200, %c0_201], %173 {strides = array<i32>} : memref<16x128xbf16, #tpu.memory_space<vmem>>, vector<2x32xbf16>,
    %c8_202 = arith.constant 8 : index
    %c0_203 = arith.constant 0 : index
    %175 = vector.load %arg36[%c8_202, %c0_203] : memref<16x128xbf16, #tpu.memory_space<vmem>>, vector<2x32xbf16>
    tpu.vector_store %arg36[%c8_202, %c0_203], %173 {strides = array<i32>} : memref<16x128xbf16, #tpu.memory_space<vmem>>, vector<2x32xbf16>,
    %176 = arith.truncf %172 : vector<6x32xf32> to vector<6x32xbf16>
    %c2_204 = arith.constant 2 : index
    %c0_205 = arith.constant 0 : index
    %177 = vector.load %arg36[%c2_204, %c0_205] : memref<16x128xbf16, #tpu.memory_space<vmem>>, vector<6x32xbf16>
    tpu.vector_store %arg36[%c2_204, %c0_205], %176 {strides = array<i32>} : memref<16x128xbf16, #tpu.memory_space<vmem>>, vector<6x32xbf16>,
    %c0_206 = arith.constant 0 : index
    %c0_207 = arith.constant 0 : index
    %178 = vector.load %arg36[%c0_206, %c0_207] : memref<16x128xbf16, #tpu.memory_space<vmem>>, vector<6x32xbf16>
    %c0_208 = arith.constant 0 : index
    %c0_209 = arith.constant 0 : index
    %c0_210 = arith.constant 0 : index
    %179 = vector.load %arg17[%c0_208, %c0_209, %c0_210] : memref<3x32x64xbf16, #tpu.memory_space<vmem>>, vector<1x32x64xbf16>
    %180 = vector.shape_cast %179 : vector<1x32x64xbf16> to vector<32x64xbf16>
    %cst_211 = arith.constant dense<0.000000e+00> : vector<6x64xf32>
    %181 = tpu.matmul %178, %180, %cst_211 {dimension_numbers = #tpu.dot_dimension_numbers<[1], [0], [0], [1], [0, 0, 1, 1], [], []>} : vector<6x32xbf16>, vector<32x64xbf16>, vector<6x64xf32> -> vector<6x64xf32>
    %c2_212 = arith.constant 2 : index
    %c0_213 = arith.constant 0 : index
    %182 = vector.load %arg36[%c2_212, %c0_213] : memref<16x128xbf16, #tpu.memory_space<vmem>>, vector<6x32xbf16>
    %c1_214 = arith.constant 1 : index
    %c0_215 = arith.constant 0 : index
    %c0_216 = arith.constant 0 : index
    %183 = vector.load %arg17[%c1_214, %c0_215, %c0_216] : memref<3x32x64xbf16, #tpu.memory_space<vmem>>, vector<1x32x64xbf16>
    %184 = vector.shape_cast %183 : vector<1x32x64xbf16> to vector<32x64xbf16>
    %cst_217 = arith.constant dense<0.000000e+00> : vector<6x64xf32>
    %185 = tpu.matmul %182, %184, %cst_217 {dimension_numbers = #tpu.dot_dimension_numbers<[1], [0], [0], [1], [0, 0, 1, 1], [], []>} : vector<6x32xbf16>, vector<32x64xbf16>, vector<6x64xf32> -> vector<6x64xf32>
    %186 = arith.addf %181, %185 : vector<6x64xf32>
    %c4_218 = arith.constant 4 : index
    %c0_219 = arith.constant 0 : index
    %187 = vector.load %arg36[%c4_218, %c0_219] : memref<16x128xbf16, #tpu.memory_space<vmem>>, vector<6x32xbf16>
    %c2_220 = arith.constant 2 : index
    %c0_221 = arith.constant 0 : index
    %c0_222 = arith.constant 0 : index
    %188 = vector.load %arg17[%c2_220, %c0_221, %c0_222] : memref<3x32x64xbf16, #tpu.memory_space<vmem>>, vector<1x32x64xbf16>
    %189 = vector.shape_cast %188 : vector<1x32x64xbf16> to vector<32x64xbf16>
    %cst_223 = arith.constant dense<0.000000e+00> : vector<6x64xf32>
    %190 = tpu.matmul %187, %189, %cst_223 {dimension_numbers = #tpu.dot_dimension_numbers<[1], [0], [0], [1], [0, 0, 1, 1], [], []>} : vector<6x32xbf16>, vector<32x64xbf16>, vector<6x64xf32> -> vector<6x64xf32>
    %191 = arith.addf %186, %190 : vector<6x64xf32>
    %c0_224 = arith.constant 0 : index
    %c0_225 = arith.constant 0 : index
    %192 = vector.load %arg18[%c0_224, %c0_225] : memref<1x64xf32, #tpu.memory_space<vmem>>, vector<1x64xf32>
    %193 = vector.broadcast %192 : vector<1x64xf32> to vector<6x64xf32>
    %194 = arith.mulf %191, %193 : vector<6x64xf32>
    %c0_226 = arith.constant 0 : index
    %c0_227 = arith.constant 0 : index
    %195 = vector.load %arg19[%c0_226, %c0_227] : memref<1x64xf32, #tpu.memory_space<vmem>>, vector<1x64xf32>
    %196 = vector.broadcast %195 : vector<1x64xf32> to vector<6x64xf32>
    %197 = arith.addf %194, %196 : vector<6x64xf32>
    %cst_228 = arith.constant 0.000000e+00 : f32
    %198 = vector.broadcast %cst_228 : f32 to vector<6x64xf32>
    %199 = arith.maximumf %197, %198 : vector<6x64xf32>
    %cst_229 = arith.constant 0.000000e+00 : bf16
    %200 = vector.broadcast %cst_229 : bf16 to vector<2x64xbf16>
    %c0_230 = arith.constant 0 : index
    %c0_231 = arith.constant 0 : index
    %201 = vector.load %arg36[%c0_230, %c0_231] : memref<16x128xbf16, #tpu.memory_space<vmem>>, vector<2x64xbf16>
    tpu.vector_store %arg36[%c0_230, %c0_231], %200 {strides = array<i32>} : memref<16x128xbf16, #tpu.memory_space<vmem>>, vector<2x64xbf16>,
    %c8_232 = arith.constant 8 : index
    %c0_233 = arith.constant 0 : index
    %202 = vector.load %arg36[%c8_232, %c0_233] : memref<16x128xbf16, #tpu.memory_space<vmem>>, vector<2x64xbf16>
    tpu.vector_store %arg36[%c8_232, %c0_233], %200 {strides = array<i32>} : memref<16x128xbf16, #tpu.memory_space<vmem>>, vector<2x64xbf16>,
    %203 = arith.truncf %199 : vector<6x64xf32> to vector<6x64xbf16>
    %c2_234 = arith.constant 2 : index
    %c0_235 = arith.constant 0 : index
    %204 = vector.load %arg36[%c2_234, %c0_235] : memref<16x128xbf16, #tpu.memory_space<vmem>>, vector<6x64xbf16>
    tpu.vector_store %arg36[%c2_234, %c0_235], %203 {strides = array<i32>} : memref<16x128xbf16, #tpu.memory_space<vmem>>, vector<6x64xbf16>,
    %c0_236 = arith.constant 0 : index
    %c0_237 = arith.constant 0 : index
    %205 = vector.load %arg36[%c0_236, %c0_237] : memref<16x128xbf16, #tpu.memory_space<vmem>>, vector<6x64xbf16>
    %c0_238 = arith.constant 0 : index
    %c0_239 = arith.constant 0 : index
    %c0_240 = arith.constant 0 : index
    %206 = vector.load %arg20[%c0_238, %c0_239, %c0_240] : memref<3x64x64xbf16, #tpu.memory_space<vmem>>, vector<1x64x64xbf16>
    %207 = vector.shape_cast %206 : vector<1x64x64xbf16> to vector<64x64xbf16>
    %cst_241 = arith.constant dense<0.000000e+00> : vector<6x64xf32>
    %208 = tpu.matmul %205, %207, %cst_241 {dimension_numbers = #tpu.dot_dimension_numbers<[1], [0], [0], [1], [0, 0, 1, 1], [], []>} : vector<6x64xbf16>, vector<64x64xbf16>, vector<6x64xf32> -> vector<6x64xf32>
    %c2_242 = arith.constant 2 : index
    %c0_243 = arith.constant 0 : index
    %209 = vector.load %arg36[%c2_242, %c0_243] : memref<16x128xbf16, #tpu.memory_space<vmem>>, vector<6x64xbf16>
    %c1_244 = arith.constant 1 : index
    %c0_245 = arith.constant 0 : index
    %c0_246 = arith.constant 0 : index
    %210 = vector.load %arg20[%c1_244, %c0_245, %c0_246] : memref<3x64x64xbf16, #tpu.memory_space<vmem>>, vector<1x64x64xbf16>
    %211 = vector.shape_cast %210 : vector<1x64x64xbf16> to vector<64x64xbf16>
    %cst_247 = arith.constant dense<0.000000e+00> : vector<6x64xf32>
    %212 = tpu.matmul %209, %211, %cst_247 {dimension_numbers = #tpu.dot_dimension_numbers<[1], [0], [0], [1], [0, 0, 1, 1], [], []>} : vector<6x64xbf16>, vector<64x64xbf16>, vector<6x64xf32> -> vector<6x64xf32>
    %213 = arith.addf %208, %212 : vector<6x64xf32>
    %c4_248 = arith.constant 4 : index
    %c0_249 = arith.constant 0 : index
    %214 = vector.load %arg36[%c4_248, %c0_249] : memref<16x128xbf16, #tpu.memory_space<vmem>>, vector<6x64xbf16>
    %c2_250 = arith.constant 2 : index
    %c0_251 = arith.constant 0 : index
    %c0_252 = arith.constant 0 : index
    %215 = vector.load %arg20[%c2_250, %c0_251, %c0_252] : memref<3x64x64xbf16, #tpu.memory_space<vmem>>, vector<1x64x64xbf16>
    %216 = vector.shape_cast %215 : vector<1x64x64xbf16> to vector<64x64xbf16>
    %cst_253 = arith.constant dense<0.000000e+00> : vector<6x64xf32>
    %217 = tpu.matmul %214, %216, %cst_253 {dimension_numbers = #tpu.dot_dimension_numbers<[1], [0], [0], [1], [0, 0, 1, 1], [], []>} : vector<6x64xbf16>, vector<64x64xbf16>, vector<6x64xf32> -> vector<6x64xf32>
    %218 = arith.addf %213, %217 : vector<6x64xf32>
    %c0_254 = arith.constant 0 : index
    %c0_255 = arith.constant 0 : index
    %219 = vector.load %arg21[%c0_254, %c0_255] : memref<1x64xf32, #tpu.memory_space<vmem>>, vector<1x64xf32>
    %220 = vector.broadcast %219 : vector<1x64xf32> to vector<6x64xf32>
    %221 = arith.mulf %218, %220 : vector<6x64xf32>
    %c0_256 = arith.constant 0 : index
    %c0_257 = arith.constant 0 : index
    %222 = vector.load %arg22[%c0_256, %c0_257] : memref<1x64xf32, #tpu.memory_space<vmem>>, vector<1x64xf32>
    %223 = vector.broadcast %222 : vector<1x64xf32> to vector<6x64xf32>
    %224 = arith.addf %221, %223 : vector<6x64xf32>
    %225 = arith.addf %224, %199 : vector<6x64xf32>
    %cst_258 = arith.constant 0.000000e+00 : f32
    %226 = vector.broadcast %cst_258 : f32 to vector<6x64xf32>
    %227 = arith.maximumf %225, %226 : vector<6x64xf32>
    %cst_259 = arith.constant 0.000000e+00 : bf16
    %228 = vector.broadcast %cst_259 : bf16 to vector<2x64xbf16>
    %c0_260 = arith.constant 0 : index
    %c0_261 = arith.constant 0 : index
    %229 = vector.load %arg36[%c0_260, %c0_261] : memref<16x128xbf16, #tpu.memory_space<vmem>>, vector<2x64xbf16>
    tpu.vector_store %arg36[%c0_260, %c0_261], %228 {strides = array<i32>} : memref<16x128xbf16, #tpu.memory_space<vmem>>, vector<2x64xbf16>,
    %c8_262 = arith.constant 8 : index
    %c0_263 = arith.constant 0 : index
    %230 = vector.load %arg36[%c8_262, %c0_263] : memref<16x128xbf16, #tpu.memory_space<vmem>>, vector<2x64xbf16>
    tpu.vector_store %arg36[%c8_262, %c0_263], %228 {strides = array<i32>} : memref<16x128xbf16, #tpu.memory_space<vmem>>, vector<2x64xbf16>,
    %231 = arith.truncf %227 : vector<6x64xf32> to vector<6x64xbf16>
    %c2_264 = arith.constant 2 : index
    %c0_265 = arith.constant 0 : index
    %232 = vector.load %arg36[%c2_264, %c0_265] : memref<16x128xbf16, #tpu.memory_space<vmem>>, vector<6x64xbf16>
    tpu.vector_store %arg36[%c2_264, %c0_265], %231 {strides = array<i32>} : memref<16x128xbf16, #tpu.memory_space<vmem>>, vector<6x64xbf16>,
    %c0_266 = arith.constant 0 : index
    %c0_267 = arith.constant 0 : index
    %233 = vector.load %arg36[%c0_266, %c0_267] : memref<16x128xbf16, #tpu.memory_space<vmem>>, vector<6x64xbf16>
    %c0_268 = arith.constant 0 : index
    %c0_269 = arith.constant 0 : index
    %c0_270 = arith.constant 0 : index
    %234 = vector.load %arg23[%c0_268, %c0_269, %c0_270] : memref<3x64x64xbf16, #tpu.memory_space<vmem>>, vector<1x64x64xbf16>
    %235 = vector.shape_cast %234 : vector<1x64x64xbf16> to vector<64x64xbf16>
    %cst_271 = arith.constant dense<0.000000e+00> : vector<6x64xf32>
    %236 = tpu.matmul %233, %235, %cst_271 {dimension_numbers = #tpu.dot_dimension_numbers<[1], [0], [0], [1], [0, 0, 1, 1], [], []>} : vector<6x64xbf16>, vector<64x64xbf16>, vector<6x64xf32> -> vector<6x64xf32>
    %c2_272 = arith.constant 2 : index
    %c0_273 = arith.constant 0 : index
    %237 = vector.load %arg36[%c2_272, %c0_273] : memref<16x128xbf16, #tpu.memory_space<vmem>>, vector<6x64xbf16>
    %c1_274 = arith.constant 1 : index
    %c0_275 = arith.constant 0 : index
    %c0_276 = arith.constant 0 : index
    %238 = vector.load %arg23[%c1_274, %c0_275, %c0_276] : memref<3x64x64xbf16, #tpu.memory_space<vmem>>, vector<1x64x64xbf16>
    %239 = vector.shape_cast %238 : vector<1x64x64xbf16> to vector<64x64xbf16>
    %cst_277 = arith.constant dense<0.000000e+00> : vector<6x64xf32>
    %240 = tpu.matmul %237, %239, %cst_277 {dimension_numbers = #tpu.dot_dimension_numbers<[1], [0], [0], [1], [0, 0, 1, 1], [], []>} : vector<6x64xbf16>, vector<64x64xbf16>, vector<6x64xf32> -> vector<6x64xf32>
    %241 = arith.addf %236, %240 : vector<6x64xf32>
    %c4_278 = arith.constant 4 : index
    %c0_279 = arith.constant 0 : index
    %242 = vector.load %arg36[%c4_278, %c0_279] : memref<16x128xbf16, #tpu.memory_space<vmem>>, vector<6x64xbf16>
    %c2_280 = arith.constant 2 : index
    %c0_281 = arith.constant 0 : index
    %c0_282 = arith.constant 0 : index
    %243 = vector.load %arg23[%c2_280, %c0_281, %c0_282] : memref<3x64x64xbf16, #tpu.memory_space<vmem>>, vector<1x64x64xbf16>
    %244 = vector.shape_cast %243 : vector<1x64x64xbf16> to vector<64x64xbf16>
    %cst_283 = arith.constant dense<0.000000e+00> : vector<6x64xf32>
    %245 = tpu.matmul %242, %244, %cst_283 {dimension_numbers = #tpu.dot_dimension_numbers<[1], [0], [0], [1], [0, 0, 1, 1], [], []>} : vector<6x64xbf16>, vector<64x64xbf16>, vector<6x64xf32> -> vector<6x64xf32>
    %246 = arith.addf %241, %245 : vector<6x64xf32>
    %c0_284 = arith.constant 0 : index
    %c0_285 = arith.constant 0 : index
    %247 = vector.load %arg24[%c0_284, %c0_285] : memref<1x64xf32, #tpu.memory_space<vmem>>, vector<1x64xf32>
    %248 = vector.broadcast %247 : vector<1x64xf32> to vector<6x64xf32>
    %249 = arith.mulf %246, %248 : vector<6x64xf32>
    %c0_286 = arith.constant 0 : index
    %c0_287 = arith.constant 0 : index
    %250 = vector.load %arg25[%c0_286, %c0_287] : memref<1x64xf32, #tpu.memory_space<vmem>>, vector<1x64xf32>
    %251 = vector.broadcast %250 : vector<1x64xf32> to vector<6x64xf32>
    %252 = arith.addf %249, %251 : vector<6x64xf32>
    %cst_288 = arith.constant 0.000000e+00 : f32
    %253 = vector.broadcast %cst_288 : f32 to vector<6x64xf32>
    %254 = arith.maximumf %252, %253 : vector<6x64xf32>
    %255 = arith.truncf %254 : vector<6x64xf32> to vector<6x64xbf16>
    %c0_289 = arith.constant 0 : index
    %c0_290 = arith.constant 0 : index
    %256 = vector.load %arg36[%c0_289, %c0_290] : memref<16x128xbf16, #tpu.memory_space<vmem>>, vector<6x64xbf16>
    tpu.vector_store %arg36[%c0_289, %c0_290], %255 {strides = array<i32>} : memref<16x128xbf16, #tpu.memory_space<vmem>>, vector<6x64xbf16>,
    %c0_291 = arith.constant 0 : index
    %c0_292 = arith.constant 0 : index
    %257 = vector.load %arg36[%c0_291, %c0_292] : memref<16x128xbf16, #tpu.memory_space<vmem>>, vector<2x64xbf16>
    %c0_293 = arith.constant 0 : index
    %c0_294 = arith.constant 0 : index
    %c0_295 = arith.constant 0 : index
    %258 = vector.load %arg26[%c0_293, %c0_294, %c0_295] : memref<3x64x64xbf16, #tpu.memory_space<vmem>>, vector<1x64x64xbf16>
    %259 = vector.shape_cast %258 : vector<1x64x64xbf16> to vector<64x64xbf16>
    %cst_296 = arith.constant dense<0.000000e+00> : vector<2x64xf32>
    %260 = tpu.matmul %257, %259, %cst_296 {dimension_numbers = #tpu.dot_dimension_numbers<[1], [0], [0], [1], [0, 0, 1, 1], [], []>} : vector<2x64xbf16>, vector<64x64xbf16>, vector<2x64xf32> -> vector<2x64xf32>
    %c2_297 = arith.constant 2 : index
    %c0_298 = arith.constant 0 : index
    %261 = vector.load %arg36[%c2_297, %c0_298] : memref<16x128xbf16, #tpu.memory_space<vmem>>, vector<2x64xbf16>
    %c1_299 = arith.constant 1 : index
    %c0_300 = arith.constant 0 : index
    %c0_301 = arith.constant 0 : index
    %262 = vector.load %arg26[%c1_299, %c0_300, %c0_301] : memref<3x64x64xbf16, #tpu.memory_space<vmem>>, vector<1x64x64xbf16>
    %263 = vector.shape_cast %262 : vector<1x64x64xbf16> to vector<64x64xbf16>
    %cst_302 = arith.constant dense<0.000000e+00> : vector<2x64xf32>
    %264 = tpu.matmul %261, %263, %cst_302 {dimension_numbers = #tpu.dot_dimension_numbers<[1], [0], [0], [1], [0, 0, 1, 1], [], []>} : vector<2x64xbf16>, vector<64x64xbf16>, vector<2x64xf32> -> vector<2x64xf32>
    %265 = arith.addf %260, %264 : vector<2x64xf32>
    %c4_303 = arith.constant 4 : index
    %c0_304 = arith.constant 0 : index
    %266 = vector.load %arg36[%c4_303, %c0_304] : memref<16x128xbf16, #tpu.memory_space<vmem>>, vector<2x64xbf16>
    %c2_305 = arith.constant 2 : index
    %c0_306 = arith.constant 0 : index
    %c0_307 = arith.constant 0 : index
    %267 = vector.load %arg26[%c2_305, %c0_306, %c0_307] : memref<3x64x64xbf16, #tpu.memory_space<vmem>>, vector<1x64x64xbf16>
    %268 = vector.shape_cast %267 : vector<1x64x64xbf16> to vector<64x64xbf16>
    %cst_308 = arith.constant dense<0.000000e+00> : vector<2x64xf32>
    %269 = tpu.matmul %266, %268, %cst_308 {dimension_numbers = #tpu.dot_dimension_numbers<[1], [0], [0], [1], [0, 0, 1, 1], [], []>} : vector<2x64xbf16>, vector<64x64xbf16>, vector<2x64xf32> -> vector<2x64xf32>
    %270 = arith.addf %265, %269 : vector<2x64xf32>
    %c0_309 = arith.constant 0 : index
    %c0_310 = arith.constant 0 : index
    %271 = vector.load %arg27[%c0_309, %c0_310] : memref<1x64xf32, #tpu.memory_space<vmem>>, vector<1x64xf32>
    %272 = vector.broadcast %271 : vector<1x64xf32> to vector<2x64xf32>
    %273 = arith.mulf %270, %272 : vector<2x64xf32>
    %c0_311 = arith.constant 0 : index
    %c0_312 = arith.constant 0 : index
    %274 = vector.load %arg28[%c0_311, %c0_312] : memref<1x64xf32, #tpu.memory_space<vmem>>, vector<1x64xf32>
    %275 = vector.broadcast %274 : vector<1x64xf32> to vector<2x64xf32>
    %276 = arith.addf %273, %275 : vector<2x64xf32>
    %cst_313 = arith.constant 0.000000e+00 : f32
    %277 = vector.broadcast %cst_313 : f32 to vector<2x64xf32>
    %278 = arith.maximumf %276, %277 : vector<2x64xf32>
    %279 = arith.truncf %278 : vector<2x64xf32> to vector<2x64xbf16>
    %c0_314 = arith.constant 0 : index
    %c0_315 = arith.constant 0 : index
    %c0_316 = arith.constant 0 : index
    %280 = vector.load %arg29[%c0_314, %c0_315, %c0_316] : memref<1x64x64xbf16, #tpu.memory_space<vmem>>, vector<1x64x64xbf16>
    %281 = vector.shape_cast %280 : vector<1x64x64xbf16> to vector<64x64xbf16>
    %cst_317 = arith.constant dense<0.000000e+00> : vector<2x64xf32>
    %282 = tpu.matmul %279, %281, %cst_317 {dimension_numbers = #tpu.dot_dimension_numbers<[1], [0], [0], [1], [0, 0, 1, 1], [], []>} : vector<2x64xbf16>, vector<64x64xbf16>, vector<2x64xf32> -> vector<2x64xf32>
    %c0_318 = arith.constant 0 : index
    %c0_319 = arith.constant 0 : index
    %283 = vector.load %arg30[%c0_318, %c0_319] : memref<1x64xf32, #tpu.memory_space<vmem>>, vector<1x64xf32>
    %284 = vector.broadcast %283 : vector<1x64xf32> to vector<2x64xf32>
    %285 = arith.mulf %282, %284 : vector<2x64xf32>
    %c0_320 = arith.constant 0 : index
    %c0_321 = arith.constant 0 : index
    %286 = vector.load %arg31[%c0_320, %c0_321] : memref<1x64xf32, #tpu.memory_space<vmem>>, vector<1x64xf32>
    %287 = vector.broadcast %286 : vector<1x64xf32> to vector<2x64xf32>
    %288 = arith.addf %285, %287 : vector<2x64xf32>
    %cst_322 = arith.constant 0.000000e+00 : f32
    %289 = vector.broadcast %cst_322 : f32 to vector<2x64xf32>
    %290 = arith.maximumf %288, %289 : vector<2x64xf32>
    %291 = arith.truncf %290 : vector<2x64xf32> to vector<2x64xbf16>
    %c0_323 = arith.constant 0 : index
    %c0_324 = arith.constant 0 : index
    %c0_325 = arith.constant 0 : index
    %292 = vector.load %arg32[%c0_323, %c0_324, %c0_325] : memref<1x64x32xbf16, #tpu.memory_space<vmem>>, vector<1x64x32xbf16>
    %293 = vector.shape_cast %292 : vector<1x64x32xbf16> to vector<64x32xbf16>
    %cst_326 = arith.constant dense<0.000000e+00> : vector<2x32xf32>
    %294 = tpu.matmul %291, %293, %cst_326 {dimension_numbers = #tpu.dot_dimension_numbers<[1], [0], [0], [1], [0, 0, 1, 1], [], []>} : vector<2x64xbf16>, vector<64x32xbf16>, vector<2x32xf32> -> vector<2x32xf32>
    %c0_327 = arith.constant 0 : index
    %c0_328 = arith.constant 0 : index
    %295 = vector.load %arg33[%c0_327, %c0_328] : memref<1x32xf32, #tpu.memory_space<vmem>>, vector<1x32xf32>
    %296 = vector.broadcast %295 : vector<1x32xf32> to vector<2x32xf32>
    %297 = arith.mulf %294, %296 : vector<2x32xf32>
    %c0_329 = arith.constant 0 : index
    %c0_330 = arith.constant 0 : index
    %298 = vector.load %arg34[%c0_329, %c0_330] : memref<1x32xf32, #tpu.memory_space<vmem>>, vector<1x32xf32>
    %299 = vector.broadcast %298 : vector<1x32xf32> to vector<2x32xf32>
    %300 = arith.addf %297, %299 : vector<2x32xf32>
    %cst_331 = arith.constant 0.000000e+00 : f32
    %301 = vector.broadcast %cst_331 : f32 to vector<2x32xf32>
    %302 = arith.maximumf %300, %301 : vector<2x32xf32>
    %303 = arith.mulf %302, %302 : vector<2x32xf32>
    %cst_332 = arith.constant dense<0.000000e+00> : vector<2xf32>
    %304 = vector.multi_reduction <add>, %303, %cst_332 [1] : vector<2x32xf32> to vector<2xf32>
    %305 = vector.shape_cast %304 : vector<2xf32> to vector<2x1xf32>
    %cst_333 = arith.constant 1.000000e-24 : f32
    %306 = vector.broadcast %cst_333 : f32 to vector<2x1xf32>
    %307 = arith.maximumf %305, %306 : vector<2x1xf32>
    %308 = math.rsqrt %307 : vector<2x1xf32>
    %309 = vector.broadcast %308 : vector<2x1xf32> to vector<2x32xf32>
    %310 = arith.mulf %302, %309 : vector<2x32xf32>
    %c0_334 = arith.constant 0 : index
    %c0_335 = arith.constant 0 : index
    %311 = vector.load %arg35[%c0_334, %c0_335] : memref<2x32xf32, #tpu.memory_space<vmem>>, vector<2x32xf32>
    tpu.vector_store %arg35[%c0_334, %c0_335], %310 {strides = array<i32>} : memref<2x32xf32, #tpu.memory_space<vmem>>, vector<2x32xf32>,
    return
  }
  func.func @transform_0(%arg0: i32) -> (i32, i32, i32) {
    %c0_i32 = arith.constant 0 : i32
    %c0_i32_0 = arith.constant 0 : i32
    %c0_i32_1 = arith.constant 0 : i32
    return %c0_i32, %arg0, %c0_i32_0 : i32, i32, i32
  }
  func.func @transform_1(%arg0: i32) -> (i32, i32, i32) {
    %c0_i32 = arith.constant 0 : i32
    %c0_i32_0 = arith.constant 0 : i32
    %c0_i32_1 = arith.constant 0 : i32
    %c0_i32_2 = arith.constant 0 : i32
    return %c0_i32, %c0_i32_0, %c0_i32_1 : i32, i32, i32
  }
  func.func @transform_2(%arg0: i32) -> (i32, i32) {
    %c0_i32 = arith.constant 0 : i32
    %c0_i32_0 = arith.constant 0 : i32
    %c0_i32_1 = arith.constant 0 : i32
    return %c0_i32, %c0_i32_0 : i32, i32
  }
  func.func @transform_3(%arg0: i32) -> (i32, i32) {
    %c0_i32 = arith.constant 0 : i32
    %c0_i32_0 = arith.constant 0 : i32
    %c0_i32_1 = arith.constant 0 : i32
    return %c0_i32, %c0_i32_0 : i32, i32
  }
  func.func @transform_4(%arg0: i32) -> (i32, i32, i32) {
    %c0_i32 = arith.constant 0 : i32
    %c0_i32_0 = arith.constant 0 : i32
    %c0_i32_1 = arith.constant 0 : i32
    %c0_i32_2 = arith.constant 0 : i32
    return %c0_i32, %c0_i32_0, %c0_i32_1 : i32, i32, i32
  }
  func.func @transform_5(%arg0: i32) -> (i32, i32) {
    %c0_i32 = arith.constant 0 : i32
    %c0_i32_0 = arith.constant 0 : i32
    %c0_i32_1 = arith.constant 0 : i32
    return %c0_i32, %c0_i32_0 : i32, i32
  }
  func.func @transform_6(%arg0: i32) -> (i32, i32) {
    %c0_i32 = arith.constant 0 : i32
    %c0_i32_0 = arith.constant 0 : i32
    %c0_i32_1 = arith.constant 0 : i32
    return %c0_i32, %c0_i32_0 : i32, i32
  }
  func.func @transform_7(%arg0: i32) -> (i32, i32, i32) {
    %c0_i32 = arith.constant 0 : i32
    %c0_i32_0 = arith.constant 0 : i32
    %c0_i32_1 = arith.constant 0 : i32
    %c0_i32_2 = arith.constant 0 : i32
    return %c0_i32, %c0_i32_0, %c0_i32_1 : i32, i32, i32
  }
  func.func @transform_8(%arg0: i32) -> (i32, i32) {
    %c0_i32 = arith.constant 0 : i32
    %c0_i32_0 = arith.constant 0 : i32
    %c0_i32_1 = arith.constant 0 : i32
    return %c0_i32, %c0_i32_0 : i32, i32
  }
  func.func @transform_9(%arg0: i32) -> (i32, i32) {
    %c0_i32 = arith.constant 0 : i32
    %c0_i32_0 = arith.constant 0 : i32
    %c0_i32_1 = arith.constant 0 : i32
    return %c0_i32, %c0_i32_0 : i32, i32
  }
  func.func @transform_10(%arg0: i32) -> (i32, i32, i32) {
    %c0_i32 = arith.constant 0 : i32
    %c0_i32_0 = arith.constant 0 : i32
    %c0_i32_1 = arith.constant 0 : i32
    %c0_i32_2 = arith.constant 0 : i32
    return %c0_i32, %c0_i32_0, %c0_i32_1 : i32, i32, i32
  }
  func.func @transform_11(%arg0: i32) -> (i32, i32) {
    %c0_i32 = arith.constant 0 : i32
    %c0_i32_0 = arith.constant 0 : i32
    %c0_i32_1 = arith.constant 0 : i32
    return %c0_i32, %c0_i32_0 : i32, i32
  }
  func.func @transform_12(%arg0: i32) -> (i32, i32) {
    %c0_i32 = arith.constant 0 : i32
    %c0_i32_0 = arith.constant 0 : i32
    %c0_i32_1 = arith.constant 0 : i32
    return %c0_i32, %c0_i32_0 : i32, i32
  }
  func.func @transform_13(%arg0: i32) -> (i32, i32, i32) {
    %c0_i32 = arith.constant 0 : i32
    %c0_i32_0 = arith.constant 0 : i32
    %c0_i32_1 = arith.constant 0 : i32
    %c0_i32_2 = arith.constant 0 : i32
    return %c0_i32, %c0_i32_0, %c0_i32_1 : i32, i32, i32
  }
  func.func @transform_14(%arg0: i32) -> (i32, i32) {
    %c0_i32 = arith.constant 0 : i32
    %c0_i32_0 = arith.constant 0 : i32
    %c0_i32_1 = arith.constant 0 : i32
    return %c0_i32, %c0_i32_0 : i32, i32
  }
  func.func @transform_15(%arg0: i32) -> (i32, i32) {
    %c0_i32 = arith.constant 0 : i32
    %c0_i32_0 = arith.constant 0 : i32
    %c0_i32_1 = arith.constant 0 : i32
    return %c0_i32, %c0_i32_0 : i32, i32
  }
  func.func @transform_16(%arg0: i32) -> (i32, i32, i32) {
    %c0_i32 = arith.constant 0 : i32
    %c0_i32_0 = arith.constant 0 : i32
    %c0_i32_1 = arith.constant 0 : i32
    %c0_i32_2 = arith.constant 0 : i32
    return %c0_i32, %c0_i32_0, %c0_i32_1 : i32, i32, i32
  }
  func.func @transform_17(%arg0: i32) -> (i32, i32) {
    %c0_i32 = arith.constant 0 : i32
    %c0_i32_0 = arith.constant 0 : i32
    %c0_i32_1 = arith.constant 0 : i32
    return %c0_i32, %c0_i32_0 : i32, i32
  }
  func.func @transform_18(%arg0: i32) -> (i32, i32) {
    %c0_i32 = arith.constant 0 : i32
    %c0_i32_0 = arith.constant 0 : i32
    %c0_i32_1 = arith.constant 0 : i32
    return %c0_i32, %c0_i32_0 : i32, i32
  }
  func.func @transform_19(%arg0: i32) -> (i32, i32, i32) {
    %c0_i32 = arith.constant 0 : i32
    %c0_i32_0 = arith.constant 0 : i32
    %c0_i32_1 = arith.constant 0 : i32
    %c0_i32_2 = arith.constant 0 : i32
    return %c0_i32, %c0_i32_0, %c0_i32_1 : i32, i32, i32
  }
  func.func @transform_20(%arg0: i32) -> (i32, i32) {
    %c0_i32 = arith.constant 0 : i32
    %c0_i32_0 = arith.constant 0 : i32
    %c0_i32_1 = arith.constant 0 : i32
    return %c0_i32, %c0_i32_0 : i32, i32
  }
  func.func @transform_21(%arg0: i32) -> (i32, i32) {
    %c0_i32 = arith.constant 0 : i32
    %c0_i32_0 = arith.constant 0 : i32
    %c0_i32_1 = arith.constant 0 : i32
    return %c0_i32, %c0_i32_0 : i32, i32
  }
  func.func @transform_22(%arg0: i32) -> (i32, i32, i32) {
    %c0_i32 = arith.constant 0 : i32
    %c0_i32_0 = arith.constant 0 : i32
    %c0_i32_1 = arith.constant 0 : i32
    %c0_i32_2 = arith.constant 0 : i32
    return %c0_i32, %c0_i32_0, %c0_i32_1 : i32, i32, i32
  }
  func.func @transform_23(%arg0: i32) -> (i32, i32) {
    %c0_i32 = arith.constant 0 : i32
    %c0_i32_0 = arith.constant 0 : i32
    %c0_i32_1 = arith.constant 0 : i32
    return %c0_i32, %c0_i32_0 : i32, i32
  }
  func.func @transform_24(%arg0: i32) -> (i32, i32) {
    %c0_i32 = arith.constant 0 : i32
    %c0_i32_0 = arith.constant 0 : i32
    %c0_i32_1 = arith.constant 0 : i32
    return %c0_i32, %c0_i32_0 : i32, i32
  }
  func.func @transform_25(%arg0: i32) -> (i32, i32, i32) {
    %c0_i32 = arith.constant 0 : i32
    %c0_i32_0 = arith.constant 0 : i32
    %c0_i32_1 = arith.constant 0 : i32
    %c0_i32_2 = arith.constant 0 : i32
    return %c0_i32, %c0_i32_0, %c0_i32_1 : i32, i32, i32
  }
  func.func @transform_26(%arg0: i32) -> (i32, i32) {
    %c0_i32 = arith.constant 0 : i32
    %c0_i32_0 = arith.constant 0 : i32
    %c0_i32_1 = arith.constant 0 : i32
    return %c0_i32, %c0_i32_0 : i32, i32
  }
  func.func @transform_27(%arg0: i32) -> (i32, i32) {
    %c0_i32 = arith.constant 0 : i32
    %c0_i32_0 = arith.constant 0 : i32
    %c0_i32_1 = arith.constant 0 : i32
    return %c0_i32, %c0_i32_0 : i32, i32
  }
  func.func @transform_28(%arg0: i32) -> (i32, i32, i32) {
    %c0_i32 = arith.constant 0 : i32
    %c0_i32_0 = arith.constant 0 : i32
    %c0_i32_1 = arith.constant 0 : i32
    %c0_i32_2 = arith.constant 0 : i32
    return %c0_i32, %c0_i32_0, %c0_i32_1 : i32, i32, i32
  }
  func.func @transform_29(%arg0: i32) -> (i32, i32) {
    %c0_i32 = arith.constant 0 : i32
    %c0_i32_0 = arith.constant 0 : i32
    %c0_i32_1 = arith.constant 0 : i32
    return %c0_i32, %c0_i32_0 : i32, i32
  }
  func.func @transform_30(%arg0: i32) -> (i32, i32) {
    %c0_i32 = arith.constant 0 : i32
    %c0_i32_0 = arith.constant 0 : i32
    %c0_i32_1 = arith.constant 0 : i32
    return %c0_i32, %c0_i32_0 : i32, i32
  }
  func.func @transform_31(%arg0: i32) -> (i32, i32, i32) {
    %c0_i32 = arith.constant 0 : i32
    %c0_i32_0 = arith.constant 0 : i32
    %c0_i32_1 = arith.constant 0 : i32
    %c0_i32_2 = arith.constant 0 : i32
    return %c0_i32, %c0_i32_0, %c0_i32_1 : i32, i32, i32
  }
  func.func @transform_32(%arg0: i32) -> (i32, i32) {
    %c0_i32 = arith.constant 0 : i32
    %c0_i32_0 = arith.constant 0 : i32
    %c0_i32_1 = arith.constant 0 : i32
    return %c0_i32, %c0_i32_0 : i32, i32
  }
  func.func @transform_33(%arg0: i32) -> (i32, i32) {
    %c0_i32 = arith.constant 0 : i32
    %c0_i32_0 = arith.constant 0 : i32
    %c0_i32_1 = arith.constant 0 : i32
    return %c0_i32, %c0_i32_0 : i32, i32
  }
  func.func @transform_34(%arg0: i32) -> (i32, i32) {
    %c0_i32 = arith.constant 0 : i32
    %c0_i32_0 = arith.constant 0 : i32
    return %arg0, %c0_i32 : i32, i32
  }
}

</mosaic_0001>

<bundles_post_ra>
// kernel: tpu_custom_call.1
= control target key start
LH: loop header
LB: loop body
LE: loop exit
PB: predicated region body
PF: predicated region fallthrough
CT: control target
= control target key end

     0   :  { %s4034_s6 = smov 1   ;;  %s4035_s10 = smov 2   ;;  %s4654_s0 = inlined_call_operand.smem [shape: u32[35], index: -1, kind: input, shape index: {}] }
   0x1   :  { %s4108_s5 = sld [smem:[%s4654_s0]]   ;;  %s4036_s14 = smov 3  }
   0x2   :  { %s4113_s9 = sld [smem:[%s4654_s0 + %s4034_s6]]   ;;  %s4037_s18 = smov 4  }
   0x3   :  { %s4118_s13 = sld [smem:[%s4654_s0 + %s4035_s10]]   ;;  %s4038_s22 = smov 5  }
   0x4   :  { %s4123_s17 = sld [smem:[%s4654_s0 + %s4036_s14]]   ;;  %s4039_s26 = smov 6  }
   0x5   :  { %s4128_s21 = sld [smem:[%s4654_s0 + %s4037_s18]]   ;;  %s4040_s30 = smov 7  }
   0x6   :  { %s4133_s25 = sld [smem:[%s4654_s0 + %s4038_s22]]   ;;  %s4041_s4 = smov 8  }
   0x7   :  { %s4138_s29 = sld [smem:[%s4654_s0 + %s4039_s26]]   ;;  %s4042_s10 = smov 9  }
   0x8   :  { %s4143_s3 = sld [smem:[%s4654_s0 + %s4040_s30]]   ;;  %s4043_s15 = smov 10  }
   0x9   :  { %4667 = sst [smem:[#allocation57_spill]] %s4118_s13  ;;  %s4044_s20 = smov 11  }
   0xa   :  { %4668 = sst [smem:[#allocation58_spill]] %s4123_s17  ;;  %s4045_s26 = smov 12  }
   0xb   :  { %s4148_s8 = sld [smem:[%s4654_s0 + %s4041_s4]]   ;;  %s4046_s1 = smov 13  }
   0xc   :  { %s4153_s14 = sld [smem:[%s4654_s0 + %s4042_s10]]   ;;  %s4047_s7 = smov 14  }
   0xd   :  { %s4158_s19 = sld [smem:[%s4654_s0 + %s4043_s15]]   ;;  %s4048_s15 = smov 15  }
   0xe   :  { %s4163_s24 = sld [smem:[%s4654_s0 + %s4044_s20]]   ;;  %s4049_s22 = smov 16  }
   0xf   :  { %s4168_s30 = sld [smem:[%s4654_s0 + %s4045_s26]]   ;;  %s4050_s28 = smov 17  }
  0x10   :  { %s4173_s6 = sld [smem:[%s4654_s0 + %s4046_s1]]  }
  0x11   :  { %4669 = sst [smem:[#allocation59_spill]] %s4148_s8 }
  0x12   :  { %s4178_s12 = sld [smem:[%s4654_s0 + %s4047_s7]]   ;;  %s4051_s7 = smov 18  }
  0x13   :  { %4670 = sst [smem:[#allocation60_spill]] %s4158_s19 }
  0x14   :  { %s4183_s20 = sld [smem:[%s4654_s0 + %s4048_s15]]   ;;  %s4052_s15 = smov 19  }
  0x15   :  { %4671 = sst [smem:[#allocation61_spill]] %s4168_s30 }
  0x16   :  { %s4188_s27 = sld [smem:[%s4654_s0 + %s4049_s22]]   ;;  %s4053_s22 = smov 20  }
  0x17   :  { %s4193_s4 = sld [smem:[%s4654_s0 + %s4050_s28]]   ;;  %s4054_s28 = smov 21  }
  0x18   :  { %4672 = sst [smem:[#allocation62_spill]] %s4178_s12 }
  0x19   :  { %s4198_s17 = sld [smem:[%s4654_s0 + %s4051_s7]]   ;;  %s4055_s7 = smov 22  }
  0x1a   :  { %s4203_s13 = sld [smem:[%s4654_s0 + %s4052_s15]]   ;;  %s4056_s15 = smov 23  }
  0x1b   :  { %s4213_s12 = sld [smem:[%s4654_s0 + %s4054_s28]]   ;;  %s4058_s28 = smov 25  }
  0x1c   :  { %4673 = sst [smem:[#allocation63_spill]] %s4188_s27 }
  0x1d   :  { %s4208_s27 = sld [smem:[%s4654_s0 + %s4053_s22]]   ;;  %s4057_s22 = smov 24  }
  0x1e   :  { %s4228_s30 = sld [smem:[%s4654_s0 + %s4057_s22]]   ;;  %s4061_s22 = smov 28  }
  0x1f   :  { %4674 = sst [smem:[#allocation64_spill]] %s4198_s17 }
  0x20   :  { %4675 = sst [smem:[#allocation65_spill]] %s4203_s13 }
  0x21   :  { %4676 = sst [smem:[#allocation66_spill]] %s4213_s12 }
  0x22   :  { %s4218_s17 = sld [smem:[%s4654_s0 + %s4055_s7]]   ;;  %s4059_s7 = smov 26  }
  0x23   :  { %s4223_s13 = sld [smem:[%s4654_s0 + %s4056_s15]]   ;;  %s4060_s15 = smov 27  }
  0x24   :  { %s4233_s12 = sld [smem:[%s4654_s0 + %s4058_s28]]   ;;  %s4062_s28 = smov 29  }
  0x25   :  { %s4238_s19 = sld [smem:[%s4654_s0 + %s4059_s7]]   ;;  %s4063_s7 = smov 30  }
  0x26   :  { %s4248_s8 = sld [smem:[%s4654_s0 + %s4061_s22]]   ;;  %s4065_s22 = smov 32  }
  0x29   :  { %4677 = sst [smem:[#allocation67_spill]] %s4223_s13 }
  0x2a   :  { %4678 = sst [smem:[#allocation68_spill]] %s4233_s12 }
  0x2b   :  { %4679 = sst [smem:[#allocation69_spill]] %s4238_s19 }
  0x2c   :  { %s4243_s13 = sld [smem:[%s4654_s0 + %s4060_s15]]   ;;  %s4064_s15 = smov 31  }
  0x2d   :  { %4681 = sst [smem:[#allocation71_spill]] %s4248_s8 }
  0x2e   :  { %s4253_s12 = sld [smem:[%s4654_s0 + %s4062_s28]]   ;;  %s4066_s28 = smov 33  }
  0x2f   :  { %s4258_s19 = sld [smem:[%s4654_s0 + %s4063_s7]]   ;;  %s4067_s7 = smov 34  }
  0x30   :  { %s4268_s8 = sld [smem:[%s4654_s0 + %s4065_s22]]  }
  0x32   :  { %4680 = sst [smem:[#allocation70_spill]] %s4243_s13 }
  0x33   :  { %s4263_s13 = sld [smem:[%s4654_s0 + %s4064_s15]]  }
  0x34   :  { %4682 = sst [smem:[#allocation72_spill]] %s4253_s12 }
  0x35   :  { %4683 = sst [smem:[#allocation73_spill]] %s4258_s19 }
  0x36   :  { %s4273_s12 = sld [smem:[%s4654_s0 + %s4066_s28]]  }
  0x37   :  { %s4278_s19 = sld [smem:[%s4654_s0 + %s4067_s7]]  }
  0x38   :  { %74 = vsyncpa [#allocation5], 0 }
  0x39   :  { %75 = vsyncpa [#allocation8], 0 }
  0x3a   :  { %76 = vsyncpa [#allocation11], 0 }
  0x3b   :  { %77 = vsyncpa [#allocation14], 0 }
  0x3c   :  { %78 = vsyncpa [#allocation17], 0 }
  0x3d   :  { %79 = vsyncpa [#allocation20], 0 }
  0x3e   :  { %80 = vsyncpa [#allocation23], 0 }
  0x3f   :  { %81 = vsyncpa [#allocation26], 0 }
  0x40   :  { %82 = vsyncpa [#allocation29], 0 }
  0x41   :  { %83 = vsyncpa [#allocation32], 0 }
  0x42   :  { %84 = vsyncpa [#allocation35], 0 }
  0x43   :  { %85 = vsyncpa [#allocation38], 0 }
  0x44   :  { %86 = vsyncpa [#allocation41], 0 }
  0x45   :  { %87 = vsyncpa [#allocation6], 0  ;;  %s4068_s15 = smov [#allocation7]   ;;  %s3456_s16 = scalar_lea.hbm %s4113_s9, 384 }
  0x46   :  { %s105_s0 = sshll.u32 %s4068_s15, 4  ;;  %p3457_p0 = scmp.ne.s32.totalorder %s4113_s9, %s3456_s16  ;;  %s106_s0 = int_to_ptr.vmem [resolvable:$true] %s105_s0 }
  0x47   :  { %p3460_p1 = scmp.lt.u32.totalorder %s3456_s16, %s4113_s9 }
  0x49   :  { %p3462_p2 = pnand %p3460_p1, %p3457_p0 }
  0x4b   :  { %3465 = shalt.err (!%p3462_p2)
}
  0x4c   :  { %s3466_s18 = scalar_lea.vmem %s106_s0, 384  ;;  %p3471_p4 = scmp.lt.s32.totalorder %s106_s0, %s106_s0 }
  0x4d   :  { %p3467_p3 = scmp.ne.s32.totalorder %s106_s0, %s3466_s18  ;;  %p3472_p5 = scmp.lt.s32.totalorder %s3466_s18, %s3466_s18 }
  0x4f   :  { %p3473_p6 = por %p3472_p5, %p3471_p4 }
  0x51   :  { %p3474_p7 = pnand %p3473_p6, %p3467_p3 }
  0x53   :  { %3477 = shalt.err (!%p3474_p7)
}
  0x54   :  { %s4069_s22 = smov 64   ;;  %s4070_s23 = smov 4  }
  0x55   :  { %111 = dma.hbm_to_vmem [thread:$0]  %s4113_s9, 384, %s106_s0, [#allocation8], %s4069_s22, %s4069_s22, %s4070_s23  }
  0x56   :  { %s4071_s26 = smov [#allocation10]   ;;  %s4072_s1 = smov [#allocation13]  }
  0x57   :  { %s134_s28 = sshll.u32 %s4071_s26, 4  ;;  %s153_s2 = sshll.u32 %s4072_s1, 4  ;;  %s135_s28 = int_to_ptr.vmem [resolvable:$true] %s134_s28  ;;  %s154_s2 = int_to_ptr.vmem [resolvable:$true] %s153_s2 }
  0x58   :  { %s3478_s7 = scalar_lea.hbm %s4133_s25, 16 }
  0x59   :  { %p3479_p8 = scmp.ne.s32.totalorder %s4133_s25, %s3478_s7  ;;  %p3482_p9 = scmp.lt.u32.totalorder %s3478_s7, %s4133_s25 }
  0x5b   :  { %p3484_p10 = pnand %p3482_p9, %p3479_p8 }
  0x5d   :  { %3487 = shalt.err (!%p3484_p10)
}
  0x5e   :  { %s3488_s10 = scalar_lea.vmem %s135_s28, 16  ;;  %s3492_s11 = scalar_lea.vmem %s135_s28, 32 }
  0x5f   :  { %p3489_p11 = scmp.ne.s32.totalorder %s135_s28, %s3488_s10  ;;  %p3493_p12 = scmp.lt.s32.totalorder %s135_s28, %s135_s28 }
  0x60   :  { %p3494_p13 = scmp.lt.s32.totalorder %s3492_s11, %s3488_s10 }
  0x62   :  { %p3495_p0 = por %p3494_p13, %p3493_p12 }
  0x64   :  { %p3496_p1 = pnand %p3495_p0, %p3489_p11 }
  0x66   :  { %3499 = shalt.err (!%p3496_p1)
}
  0x67   :  { %137 = dma.hbm_to_vmem [thread:$0]  %s4133_s25, 16, %s135_s28, [#allocation11]  }
  0x68   :  { %s3500_s9 = scalar_lea.hbm %s4143_s3, 384 }
  0x69   :  { %p3501_p2 = scmp.ne.s32.totalorder %s4143_s3, %s3500_s9  ;;  %p3504_p3 = scmp.lt.u32.totalorder %s3500_s9, %s4143_s3 }
  0x6b   :  { %p3506_p4 = pnand %p3504_p3, %p3501_p2 }
  0x6d   :  { %3509 = shalt.err (!%p3506_p4)
}
  0x6e   :  { %s3510_s15 = scalar_lea.vmem %s154_s2, 384  ;;  %p3515_p6 = scmp.lt.s32.totalorder %s154_s2, %s154_s2 }
  0x6f   :  { %p3511_p5 = scmp.ne.s32.totalorder %s154_s2, %s3510_s15  ;;  %p3516_p7 = scmp.lt.s32.totalorder %s3510_s15, %s3510_s15 }
  0x71   :  { %p3517_p8 = por %p3516_p7, %p3515_p6 }
  0x73   :  { %p3518_p9 = pnand %p3517_p8, %p3511_p5 }
  0x75   :  { %3521 = shalt.err (!%p3518_p9)
}
  0x76   :  { %159 = dma.hbm_to_vmem [thread:$0]  %s4143_s3, 384, %s154_s2, [#allocation14], %s4069_s22, %s4069_s22, %s4070_s23  }
  0x77   :  { %s4073_s25 = smov [#allocation16]   ;;  %s4074_s16 = smov [#allocation19]  }
  0x78   :  { %s176_s0 = sshll.u32 %s4073_s25, 4  ;;  %s198_s18 = sshll.u32 %s4074_s16, 4  ;;  %s177_s0 = int_to_ptr.vmem [resolvable:$true] %s176_s0  ;;  %s199_s18 = int_to_ptr.vmem [resolvable:$true] %s198_s18 }
  0x79   :  { %s3522_s26 = scalar_lea.hbm %s4153_s14, 16 }
  0x7a   :  { %p3523_p10 = scmp.ne.s32.totalorder %s4153_s14, %s3522_s26  ;;  %p3526_p11 = scmp.lt.u32.totalorder %s3522_s26, %s4153_s14 }
  0x7c   :  { %p3528_p12 = pnand %p3526_p11, %p3523_p10 }
  0x7e   :  { %3531 = shalt.err (!%p3528_p12)
}
  0x7f   :  { %s3532_s28 = scalar_lea.vmem %s177_s0, 16  ;;  %s3536_s1 = scalar_lea.vmem %s177_s0, 32 }
  0x80   :  { %p3533_p13 = scmp.ne.s32.totalorder %s177_s0, %s3532_s28  ;;  %p3537_p0 = scmp.lt.s32.totalorder %s177_s0, %s177_s0 }
  0x81   :  { %p3538_p1 = scmp.lt.s32.totalorder %s3536_s1, %s3532_s28 }
  0x83   :  { %p3539_p2 = por %p3538_p1, %p3537_p0 }
  0x85   :  { %p3540_p3 = pnand %p3539_p2, %p3533_p13 }
  0x87   :  { %3543 = shalt.err (!%p3540_p3)
}
  0x88   :  { %179 = dma.hbm_to_vmem [thread:$0]  %s4153_s14, 16, %s177_s0, [#allocation17]  }
  0x89   :  { %s3544_s3 = scalar_lea.hbm %s4163_s24, 16 }
  0x8a   :  { %p3545_p4 = scmp.ne.s32.totalorder %s4163_s24, %s3544_s3  ;;  %p3548_p5 = scmp.lt.u32.totalorder %s3544_s3, %s4163_s24 }
  0x8c   :  { %p3550_p6 = pnand %p3548_p5, %p3545_p4 }
  0x8e   :  { %3553 = shalt.err (!%p3550_p6)
}
  0x8f   :  { %s3554_s2 = scalar_lea.vmem %s199_s18, 16  ;;  %s3558_s7 = scalar_lea.vmem %s199_s18, 32 }
  0x90   :  { %p3555_p7 = scmp.ne.s32.totalorder %s199_s18, %s3554_s2  ;;  %p3559_p8 = scmp.lt.s32.totalorder %s199_s18, %s199_s18 }
  0x91   :  { %p3560_p9 = scmp.lt.s32.totalorder %s3558_s7, %s3554_s2 }
  0x93   :  { %p3561_p10 = por %p3560_p9, %p3559_p8 }
  0x95   :  { %p3562_p11 = pnand %p3561_p10, %p3555_p7 }
  0x97   :  { %3565 = shalt.err (!%p3562_p11)
}
  0x98   :  { %201 = dma.hbm_to_vmem [thread:$0]  %s4163_s24, 16, %s199_s18, [#allocation20]  }
  0x99   :  { %s4075_s14 = smov [#allocation22]   ;;  %s4076_s11 = smov [#allocation25]  }
  0x9a   :  { %s217_s10 = sshll.u32 %s4075_s14, 4  ;;  %s240_s9 = sshll.u32 %s4076_s11, 4  ;;  %s218_s10 = int_to_ptr.vmem [resolvable:$true] %s217_s10  ;;  %s241_s9 = int_to_ptr.vmem [resolvable:$true] %s240_s9 }
  0x9b   :  { %s3566_s15 = scalar_lea.hbm %s4173_s6, 768 }
  0x9c   :  { %p3567_p12 = scmp.ne.s32.totalorder %s4173_s6, %s3566_s15  ;;  %p3570_p13 = scmp.lt.u32.totalorder %s3566_s15, %s4173_s6 }
  0x9e   :  { %p3572_p0 = pnand %p3570_p13, %p3567_p12 }
  0xa0   :  { %3575 = shalt.err (!%p3572_p0)
}
  0xa1   :  { %s3576_s25 = scalar_lea.vmem %s218_s10, 768  ;;  %p3581_p2 = scmp.lt.s32.totalorder %s218_s10, %s218_s10 }
  0xa2   :  { %p3577_p1 = scmp.ne.s32.totalorder %s218_s10, %s3576_s25  ;;  %p3582_p3 = scmp.lt.s32.totalorder %s3576_s25, %s3576_s25 }
  0xa4   :  { %p3583_p4 = por %p3582_p3, %p3581_p2 }
  0xa6   :  { %p3584_p5 = pnand %p3583_p4, %p3577_p1 }
  0xa8   :  { %3587 = shalt.err (!%p3584_p5)
}
  0xa9   :  { %223 = dma.hbm_to_vmem [thread:$0]  %s4173_s6, 768, %s218_s10, [#allocation23], %s4069_s22, %s4069_s22, %s4070_s23  }
  0xaa   :  { %s3588_s24 = scalar_lea.hbm %s4183_s20, 16 }
  0xab   :  { %p3589_p6 = scmp.ne.s32.totalorder %s4183_s20, %s3588_s24  ;;  %p3592_p7 = scmp.lt.u32.totalorder %s3588_s24, %s4183_s20 }
  0xad   :  { %p3594_p8 = pnand %p3592_p7, %p3589_p6 }
  0xaf   :  { %3597 = shalt.err (!%p3594_p8)
}
  0xb0   :  { %s3598_s0 = scalar_lea.vmem %s241_s9, 16  ;;  %s3602_s16 = scalar_lea.vmem %s241_s9, 32 }
  0xb1   :  { %p3599_p9 = scmp.ne.s32.totalorder %s241_s9, %s3598_s0  ;;  %p3603_p10 = scmp.lt.s32.totalorder %s241_s9, %s241_s9 }
  0xb2   :  { %p3604_p11 = scmp.lt.s32.totalorder %s3602_s16, %s3598_s0 }
  0xb4   :  { %p3605_p12 = por %p3604_p11, %p3603_p10 }
  0xb6   :  { %p3606_p13 = pnand %p3605_p12, %p3599_p9 }
  0xb8   :  { %3609 = shalt.err (!%p3606_p13)
}
  0xb9   :  { %243 = dma.hbm_to_vmem [thread:$0]  %s4183_s20, 16, %s241_s9, [#allocation26]  }
  0xba   :  { %s4077_s6 = smov [#allocation28]   ;;  %s4078_s26 = smov [#allocation31]  }
  0xbb   :  { %s262_s18 = sshll.u32 %s4077_s6, 4  ;;  %s284_s28 = sshll.u32 %s4078_s26, 4  ;;  %s263_s18 = int_to_ptr.vmem [resolvable:$true] %s262_s18  ;;  %s285_s28 = int_to_ptr.vmem [resolvable:$true] %s284_s28 }
  0xbc   :  { %s3610_s1 = scalar_lea.hbm %s4193_s4, 16 }
  0xbd   :  { %p3611_p0 = scmp.ne.s32.totalorder %s4193_s4, %s3610_s1  ;;  %p3614_p1 = scmp.lt.u32.totalorder %s3610_s1, %s4193_s4 }
  0xbf   :  { %p3616_p2 = pnand %p3614_p1, %p3611_p0 }
  0xc1   :  { %3619 = shalt.err (!%p3616_p2)
}
  0xc2   :  { %s3620_s3 = scalar_lea.vmem %s263_s18, 16  ;;  %s3624_s2 = scalar_lea.vmem %s263_s18, 32 }
  0xc3   :  { %p3621_p3 = scmp.ne.s32.totalorder %s263_s18, %s3620_s3  ;;  %p3625_p4 = scmp.lt.s32.totalorder %s263_s18, %s263_s18 }
  0xc4   :  { %p3626_p5 = scmp.lt.s32.totalorder %s3624_s2, %s3620_s3 }
  0xc6   :  { %p3627_p6 = por %p3626_p5, %p3625_p4 }
  0xc8   :  { %p3628_p7 = pnand %p3627_p6, %p3621_p3 }
  0xca   :  { %3631 = shalt.err (!%p3628_p7)
}
  0xcb   :  { %265 = dma.hbm_to_vmem [thread:$0]  %s4193_s4, 16, %s263_s18, [#allocation29]  }
  0xcc   :  { %s3632_s20 = scalar_lea.hbm %s4208_s27, 16 }
  0xcd   :  { %p3633_p8 = scmp.ne.s32.totalorder %s4208_s27, %s3632_s20  ;;  %p3636_p9 = scmp.lt.u32.totalorder %s3632_s20, %s4208_s27 }
  0xcf   :  { %p3638_p10 = pnand %p3636_p9, %p3633_p8 }
  0xd1   :  { %3641 = shalt.err (!%p3638_p10)
}
  0xd2   :  { %s3642_s7 = scalar_lea.vmem %s285_s28, 16  ;;  %s3646_s14 = scalar_lea.vmem %s285_s28, 32 }
  0xd3   :  { %p3643_p11 = scmp.ne.s32.totalorder %s285_s28, %s3642_s7  ;;  %p3647_p12 = scmp.lt.s32.totalorder %s285_s28, %s285_s28 }
  0xd4   :  { %p3648_p13 = scmp.lt.s32.totalorder %s3646_s14, %s3642_s7 }
  0xd6   :  { %p3649_p0 = por %p3648_p13, %p3647_p12 }
  0xd8   :  { %p3650_p1 = pnand %p3649_p0, %p3643_p11 }
  0xda   :  { %3653 = shalt.err (!%p3650_p1)
}
  0xdb   :  { %287 = dma.hbm_to_vmem [thread:$0]  %s4208_s27, 16, %s285_s28, [#allocation32]  }
  0xdc   :  { %s4079_s4 = smov [#allocation34]   ;;  %s4080_s11 = smov [#allocation37]  }
  0xdd   :  { %s303_s10 = sshll.u32 %s4079_s4, 4  ;;  %s326_s9 = sshll.u32 %s4080_s11, 4  ;;  %s304_s10 = int_to_ptr.vmem [resolvable:$true] %s303_s10  ;;  %s327_s9 = int_to_ptr.vmem [resolvable:$true] %s326_s9 }
  0xde   :  { %s3654_s15 = scalar_lea.hbm %s4218_s17, 1536 }
  0xdf   :  { %p3655_p2 = scmp.ne.s32.totalorder %s4218_s17, %s3654_s15  ;;  %p3658_p3 = scmp.lt.u32.totalorder %s3654_s15, %s4218_s17 }
  0xe1   :  { %p3660_p4 = pnand %p3658_p3, %p3655_p2 }
  0xe3   :  { %3663 = shalt.err (!%p3660_p4)
}
  0xe4   :  { %s3664_s25 = scalar_lea.vmem %s304_s10, 1536  ;;  %p3669_p6 = scmp.lt.s32.totalorder %s304_s10, %s304_s10 }
  0xe5   :  { %p3665_p5 = scmp.ne.s32.totalorder %s304_s10, %s3664_s25  ;;  %p3670_p7 = scmp.lt.s32.totalorder %s3664_s25, %s3664_s25 }
  0xe7   :  { %p3671_p8 = por %p3670_p7, %p3669_p6 }
  0xe9   :  { %p3672_p9 = pnand %p3671_p8, %p3665_p5 }
  0xeb   :  { %3675 = shalt.err (!%p3672_p9)
}
  0xec   :  { %309 = dma.hbm_to_vmem [thread:$0]  %s4218_s17, 1536, %s304_s10, [#allocation35], %s4069_s22, %s4069_s22, %s4070_s23  }
  0xed   :  { %s3676_s27 = scalar_lea.hbm %s4228_s30, 16 }
  0xee   :  { %p3677_p10 = scmp.ne.s32.totalorder %s4228_s30, %s3676_s27  ;;  %p3680_p11 = scmp.lt.u32.totalorder %s3676_s27, %s4228_s30 }
  0xf0   :  { %p3682_p12 = pnand %p3680_p11, %p3677_p10 }
  0xf2   :  { %3685 = shalt.err (!%p3682_p12)
}
  0xf3   :  { %s3686_s24 = scalar_lea.vmem %s327_s9, 16  ;;  %s3690_s0 = scalar_lea.vmem %s327_s9, 32 }
  0xf4   :  { %p3687_p13 = scmp.ne.s32.totalorder %s327_s9, %s3686_s24  ;;  %p3691_p0 = scmp.lt.s32.totalorder %s327_s9, %s327_s9 }
  0xf5   :  { %p3692_p1 = scmp.lt.s32.totalorder %s3690_s0, %s3686_s24 }
  0xf7   :  { %p3693_p2 = por %p3692_p1, %p3691_p0 }
  0xf9   :  { %p3694_p3 = pnand %p3693_p2, %p3687_p13 }
  0xfb   :  { %3697 = shalt.err (!%p3694_p3)
}
  0xfc   :  { %329 = dma.hbm_to_vmem [thread:$0]  %s4228_s30, 16, %s327_s9, [#allocation38]  }
  0xfd   :  { %s4081_s17 = smov [#allocation4]   ;;  %s3698_s6 = scalar_lea.hbm %s4108_s5, 160 }
  0xfe   :  { %s93_s16 = sshll.u32 %s4081_s17, 4  ;;  %p3699_p4 = scmp.ne.s32.totalorder %s4108_s5, %s3698_s6  ;;  %s94_s16 = int_to_ptr.vmem [resolvable:$true] %s93_s16 }
  0xff   :  { %p3702_p5 = scmp.lt.u32.totalorder %s3698_s6, %s4108_s5 }
 0x101   :  { %p3704_p6 = pnand %p3702_p5, %p3699_p4 }
 0x103   :  { %3707 = shalt.err (!%p3704_p6)
}
 0x104   :  { %s3708_s18 = scalar_lea.vmem %s94_s16, 160  ;;  %p3713_p8 = scmp.lt.s32.totalorder %s94_s16, %s94_s16 }
 0x105   :  { %p3709_p7 = scmp.ne.s32.totalorder %s94_s16, %s3708_s18  ;;  %p3714_p9 = scmp.lt.s32.totalorder %s3708_s18, %s3708_s18 }
 0x107   :  { %p3715_p10 = por %p3714_p9, %p3713_p8 }
 0x109   :  { %p3716_p11 = pnand %p3715_p10, %p3709_p7 }
 0x10b   :  { %3719 = shalt.err (!%p3716_p11)
}
 0x10c   :  { %s4082_s26 = smov 32   ;;  %s4083_s30 = smov 2  }
 0x10d   :  { %99 = dma.hbm_to_vmem [thread:$0]  %s4108_s5, 160, %s94_s16, [#allocation5], %s4082_s26, %s4082_s26, %s4083_s30  }
 0x10e   :  { %s4084_s28 = smov [#allocation9]   ;;  %s4085_s3 = smov [#allocation12]  }
 0x10f   :  { %s121_s1 = sshll.u32 %s4084_s28, 4  ;;  %s144_s2 = sshll.u32 %s4085_s3, 4  ;;  %s122_s1 = int_to_ptr.vmem [resolvable:$true] %s121_s1  ;;  %s145_s2 = int_to_ptr.vmem [resolvable:$true] %s144_s2 }
 0x110   :  { %s3720_s20 = scalar_lea.hbm %s4128_s21, 384 }
 0x111   :  { %p3721_p12 = scmp.ne.s32.totalorder %s4128_s21, %s3720_s20  ;;  %p3724_p13 = scmp.lt.u32.totalorder %s3720_s20, %s4128_s21 }
 0x113   :  { %p3726_p0 = pnand %p3724_p13, %p3721_p12 }
 0x115   :  { %3729 = shalt.err (!%p3726_p0)
}
 0x116   :  { %s3730_s7 = scalar_lea.vmem %s122_s1, 384  ;;  %p3735_p2 = scmp.lt.s32.totalorder %s122_s1, %s122_s1 }
 0x117   :  { %p3731_p1 = scmp.ne.s32.totalorder %s122_s1, %s3730_s7  ;;  %p3736_p3 = scmp.lt.s32.totalorder %s3730_s7, %s3730_s7 }
 0x119   :  { %p3737_p4 = por %p3736_p3, %p3735_p2 }
 0x11b   :  { %p3738_p5 = pnand %p3737_p4, %p3731_p1 }
 0x11d   :  { %3741 = shalt.err (!%p3738_p5)
}
 0x11e   :  { %127 = dma.hbm_to_vmem [thread:$0]  %s4128_s21, 384, %s122_s1, [#allocation8], %s4069_s22, %s4069_s22, %s4070_s23  }
 0x11f   :  { %s3742_s5 = scalar_lea.hbm %s4138_s29, 16 }
 0x120   :  { %p3743_p6 = scmp.ne.s32.totalorder %s4138_s29, %s3742_s5  ;;  %p3746_p7 = scmp.lt.u32.totalorder %s3742_s5, %s4138_s29 }
 0x122   :  { %p3748_p8 = pnand %p3746_p7, %p3743_p6 }
 0x124   :  { %3751 = shalt.err (!%p3748_p8)
}
 0x125   :  { %s3752_s14 = scalar_lea.vmem %s145_s2, 16  ;;  %s3756_s4 = scalar_lea.vmem %s145_s2, 32 }
 0x126   :  { %p3753_p9 = scmp.ne.s32.totalorder %s145_s2, %s3752_s14  ;;  %p3757_p10 = scmp.lt.s32.totalorder %s145_s2, %s145_s2 }
 0x127   :  { %p3758_p11 = scmp.lt.s32.totalorder %s3756_s4, %s3752_s14 }
 0x129   :  { %p3759_p12 = por %p3758_p11, %p3757_p10 }
 0x12b   :  { %p3760_p13 = pnand %p3759_p12, %p3753_p9 }
 0x12d   :  { %3763 = shalt.err (!%p3760_p13)
}
 0x12e   :  { %s4684_s10 = sld [smem:[#allocation59_spill]]  ;;  %s4086_s11 = smov [#allocation15]  }
 0x12f   :  { %147 = dma.hbm_to_vmem [thread:$0]  %s4138_s29, 16, %s145_s2, [#allocation11]  }
 0x130   :  { %s166_s21 = sshll.u32 %s4086_s11, 4  ;;  %s4087_s9 = smov [#allocation18]   ;;  %s167_s21 = int_to_ptr.vmem [resolvable:$true] %s166_s21 }
 0x131   :  { %s185_s15 = sshll.u32 %s4087_s9, 4  ;;  %s4351_s15 = int_to_ptr.vmem [resolvable:$true] %s185_s15 }
 0x134   :  { %s3764_s25 = scalar_lea.hbm %s4684_s10, 16 }
 0x135   :  { %p3765_p0 = scmp.ne.s32.totalorder %s4684_s10, %s3764_s25  ;;  %p3768_p1 = scmp.lt.u32.totalorder %s3764_s25, %s4684_s10 }
 0x137   :  { %p3770_p2 = pnand %p3768_p1, %p3765_p0 }
 0x139   :  { %3773 = shalt.err (!%p3770_p2)
}
 0x13a   :  { %s3774_s27 = scalar_lea.vmem %s167_s21, 16  ;;  %s3778_s24 = scalar_lea.vmem %s167_s21, 32 }
 0x13b   :  { %p3775_p3 = scmp.ne.s32.totalorder %s167_s21, %s3774_s27  ;;  %p3779_p4 = scmp.lt.s32.totalorder %s167_s21, %s167_s21 }
 0x13c   :  { %p3780_p5 = scmp.lt.s32.totalorder %s3778_s24, %s3774_s27 }
 0x13e   :  { %p3781_p6 = por %p3780_p5, %p3779_p4 }
 0x140   :  { %p3782_p7 = pnand %p3781_p6, %p3775_p3 }
 0x142   :  { %3785 = shalt.err (!%p3782_p7)
}
 0x143   :  { %s4685_s29 = sld [smem:[#allocation60_spill]] }
 0x144   :  { %169 = dma.hbm_to_vmem [thread:$0]  %s4684_s10, 16, %s167_s21, [#allocation14]  }
 0x149   :  { %s3786_s0 = scalar_lea.hbm %s4685_s29, 384 }
 0x14a   :  { %p3787_p8 = scmp.ne.s32.totalorder %s4685_s29, %s3786_s0  ;;  %p3790_p9 = scmp.lt.u32.totalorder %s3786_s0, %s4685_s29 }
 0x14c   :  { %p3792_p10 = pnand %p3790_p9, %p3787_p8 }
 0x14e   :  { %3795 = shalt.err (!%p3792_p10)
}
 0x14f   :  { %s3796_s17 = scalar_lea.vmem %s4351_s15, 384  ;;  %p3801_p12 = scmp.lt.s32.totalorder %s4351_s15, %s4351_s15 }
 0x150   :  { %p3797_p11 = scmp.ne.s32.totalorder %s4351_s15, %s3796_s17  ;;  %p3802_p13 = scmp.lt.s32.totalorder %s3796_s17, %s3796_s17 }
 0x152   :  { %p3803_p0 = por %p3802_p13, %p3801_p12 }
 0x154   :  { %p3804_p1 = pnand %p3803_p0, %p3797_p11 }
 0x156   :  { %3807 = shalt.err (!%p3804_p1)
}
 0x157   :  { %s4686_s16 = sld [smem:[#allocation61_spill]]  ;;  %s4088_s6 = smov [#allocation21]  }
 0x158   :  { %191 = dma.hbm_to_vmem [thread:$0]  %s4685_s29, 384, %s4351_s15, [#allocation17], %s4069_s22, %s4069_s22, %s4070_s23  }
 0x159   :  { %s208_s18 = sshll.u32 %s4088_s6, 4  ;;  %s4089_s26 = smov [#allocation24]   ;;  %s209_s18 = int_to_ptr.vmem [resolvable:$true] %s208_s18 }
 0x15a   :  { %s230_s30 = sshll.u32 %s4089_s26, 4  ;;  %s231_s30 = int_to_ptr.vmem [resolvable:$true] %s230_s30 }
 0x15d   :  { %s3808_s28 = scalar_lea.hbm %s4686_s16, 16 }
 0x15e   :  { %p3809_p2 = scmp.ne.s32.totalorder %s4686_s16, %s3808_s28  ;;  %p3812_p3 = scmp.lt.u32.totalorder %s3808_s28, %s4686_s16 }
 0x160   :  { %p3814_p4 = pnand %p3812_p3, %p3809_p2 }
 0x162   :  { %3817 = shalt.err (!%p3814_p4)
}
 0x163   :  { %s3818_s1 = scalar_lea.vmem %s209_s18, 16  ;;  %s3822_s3 = scalar_lea.vmem %s209_s18, 32 }
 0x164   :  { %p3819_p5 = scmp.ne.s32.totalorder %s209_s18, %s3818_s1  ;;  %p3823_p6 = scmp.lt.s32.totalorder %s209_s18, %s209_s18 }
 0x165   :  { %p3824_p7 = scmp.lt.s32.totalorder %s3822_s3, %s3818_s1 }
 0x167   :  { %p3825_p8 = por %p3824_p7, %p3823_p6 }
 0x169   :  { %p3826_p9 = pnand %p3825_p8, %p3819_p5 }
 0x16b   :  { %3829 = shalt.err (!%p3826_p9)
}
 0x16c   :  { %s4687_s2 = sld [smem:[#allocation62_spill]] }
 0x16d   :  { %211 = dma.hbm_to_vmem [thread:$0]  %s4686_s16, 16, %s209_s18, [#allocation20]  }
 0x172   :  { %s3830_s20 = scalar_lea.hbm %s4687_s2, 16 }
 0x173   :  { %p3831_p10 = scmp.ne.s32.totalorder %s4687_s2, %s3830_s20  ;;  %p3834_p11 = scmp.lt.u32.totalorder %s3830_s20, %s4687_s2 }
 0x175   :  { %p3836_p12 = pnand %p3834_p11, %p3831_p10 }
 0x177   :  { %3839 = shalt.err (!%p3836_p12)
}
 0x178   :  { %s3840_s7 = scalar_lea.vmem %s231_s30, 16  ;;  %s3844_s5 = scalar_lea.vmem %s231_s30, 32 }
 0x179   :  { %p3841_p13 = scmp.ne.s32.totalorder %s231_s30, %s3840_s7  ;;  %p3845_p0 = scmp.lt.s32.totalorder %s231_s30, %s231_s30 }
 0x17a   :  { %p3846_p1 = scmp.lt.s32.totalorder %s3844_s5, %s3840_s7 }
 0x17c   :  { %p3847_p2 = por %p3846_p1, %p3845_p0 }
 0x17e   :  { %p3848_p3 = pnand %p3847_p2, %p3841_p13 }
 0x180   :  { %3851 = shalt.err (!%p3848_p3)
}
 0x181   :  { %s4688_s14 = sld [smem:[#allocation63_spill]]  ;;  %s4090_s4 = smov [#allocation27]  }
 0x182   :  { %233 = dma.hbm_to_vmem [thread:$0]  %s4687_s2, 16, %s231_s30, [#allocation23]  }
 0x183   :  { %s249_s10 = sshll.u32 %s4090_s4, 4  ;;  %s4091_s11 = smov [#allocation30]   ;;  %s250_s10 = int_to_ptr.vmem [resolvable:$true] %s249_s10 }
 0x184   :  { %s272_s21 = sshll.u32 %s4091_s11, 4  ;;  %s273_s21 = int_to_ptr.vmem [resolvable:$true] %s272_s21 }
 0x187   :  { %s3852_s9 = scalar_lea.hbm %s4688_s14, 768 }
 0x188   :  { %p3853_p4 = scmp.ne.s32.totalorder %s4688_s14, %s3852_s9  ;;  %p3856_p5 = scmp.lt.u32.totalorder %s3852_s9, %s4688_s14 }
 0x18a   :  { %p3858_p6 = pnand %p3856_p5, %p3853_p4 }
 0x18c   :  { %3861 = shalt.err (!%p3858_p6)
}
 0x18d   :  { %s3862_s15 = scalar_lea.vmem %s250_s10, 768  ;;  %p3867_p8 = scmp.lt.s32.totalorder %s250_s10, %s250_s10 }
 0x18e   :  { %p3863_p7 = scmp.ne.s32.totalorder %s250_s10, %s3862_s15  ;;  %p3868_p9 = scmp.lt.s32.totalorder %s3862_s15, %s3862_s15 }
 0x190   :  { %p3869_p10 = por %p3868_p9, %p3867_p8 }
 0x192   :  { %p3870_p11 = pnand %p3869_p10, %p3863_p7 }
 0x194   :  { %3873 = shalt.err (!%p3870_p11)
}
 0x195   :  { %s4689_s25 = sld [smem:[#allocation64_spill]] }
 0x196   :  { %255 = dma.hbm_to_vmem [thread:$0]  %s4688_s14, 768, %s250_s10, [#allocation26], %s4069_s22, %s4069_s22, %s4070_s23  }
 0x19b   :  { %s3874_s27 = scalar_lea.hbm %s4689_s25, 16 }
 0x19c   :  { %p3875_p12 = scmp.ne.s32.totalorder %s4689_s25, %s3874_s27  ;;  %p3878_p13 = scmp.lt.u32.totalorder %s3874_s27, %s4689_s25 }
 0x19e   :  { %p3880_p0 = pnand %p3878_p13, %p3875_p12 }
 0x1a0   :  { %3883 = shalt.err (!%p3880_p0)
}
 0x1a1   :  { %s3884_s24 = scalar_lea.vmem %s273_s21, 16  ;;  %s3888_s29 = scalar_lea.vmem %s273_s21, 32 }
 0x1a2   :  { %p3885_p1 = scmp.ne.s32.totalorder %s273_s21, %s3884_s24  ;;  %p3889_p2 = scmp.lt.s32.totalorder %s273_s21, %s273_s21 }
 0x1a3   :  { %p3890_p3 = scmp.lt.s32.totalorder %s3888_s29, %s3884_s24 }
 0x1a5   :  { %p3891_p4 = por %p3890_p3, %p3889_p2 }
 0x1a7   :  { %p3892_p5 = pnand %p3891_p4, %p3885_p1 }
 0x1a9   :  { %3895 = shalt.err (!%p3892_p5)
}
 0x1aa   :  { %s4690_s0 = sld [smem:[#allocation66_spill]]  ;;  %s4092_s17 = smov [#allocation33]  }
 0x1ab   :  { %275 = dma.hbm_to_vmem [thread:$0]  %s4689_s25, 16, %s273_s21, [#allocation29]  }
 0x1ac   :  { %s294_s16 = sshll.u32 %s4092_s17, 4  ;;  %s4093_s6 = smov [#allocation36]   ;;  %s295_s16 = int_to_ptr.vmem [resolvable:$true] %s294_s16 }
 0x1ad   :  { %s316_s18 = sshll.u32 %s4093_s6, 4  ;;  %s317_s18 = int_to_ptr.vmem [resolvable:$true] %s316_s18 }
 0x1b0   :  { %s3896_s26 = scalar_lea.hbm %s4690_s0, 16 }
 0x1b1   :  { %p3897_p6 = scmp.ne.s32.totalorder %s4690_s0, %s3896_s26  ;;  %p3900_p7 = scmp.lt.u32.totalorder %s3896_s26, %s4690_s0 }
 0x1b3   :  { %p3902_p8 = pnand %p3900_p7, %p3897_p6 }
 0x1b5   :  { %3905 = shalt.err (!%p3902_p8)
}
 0x1b6   :  { %s3906_s30 = scalar_lea.vmem %s295_s16, 16  ;;  %s3910_s28 = scalar_lea.vmem %s295_s16, 32 }
 0x1b7   :  { %p3907_p9 = scmp.ne.s32.totalorder %s295_s16, %s3906_s30  ;;  %p3911_p10 = scmp.lt.s32.totalorder %s295_s16, %s295_s16 }
 0x1b8   :  { %p3912_p11 = scmp.lt.s32.totalorder %s3910_s28, %s3906_s30 }
 0x1ba   :  { %p3913_p12 = por %p3912_p11, %p3911_p10 }
 0x1bc   :  { %p3914_p13 = pnand %p3913_p12, %p3907_p9 }
 0x1be   :  { %3917 = shalt.err (!%p3914_p13)
}
 0x1bf   :  { %s4691_s1 = sld [smem:[#allocation67_spill]] }
 0x1c0   :  { %297 = dma.hbm_to_vmem [thread:$0]  %s4690_s0, 16, %s295_s16, [#allocation32]  }
 0x1c5   :  { %s3918_s3 = scalar_lea.hbm %s4691_s1, 16 }
 0x1c6   :  { %p3919_p0 = scmp.ne.s32.totalorder %s4691_s1, %s3918_s3  ;;  %p3922_p1 = scmp.lt.u32.totalorder %s3918_s3, %s4691_s1 }
 0x1c8   :  { %p3924_p2 = pnand %p3922_p1, %p3919_p0 }
 0x1ca   :  { %3927 = shalt.err (!%p3924_p2)
}
 0x1cb   :  { %s3928_s2 = scalar_lea.vmem %s317_s18, 16  ;;  %s3932_s20 = scalar_lea.vmem %s317_s18, 32 }
 0x1cc   :  { %p3929_p3 = scmp.ne.s32.totalorder %s317_s18, %s3928_s2  ;;  %p3933_p4 = scmp.lt.s32.totalorder %s317_s18, %s317_s18 }
 0x1cd   :  { %p3934_p5 = scmp.lt.s32.totalorder %s3932_s20, %s3928_s2 }
 0x1cf   :  { %p3935_p6 = por %p3934_p5, %p3933_p4 }
 0x1d1   :  { %p3936_p7 = pnand %p3935_p6, %p3929_p3 }
 0x1d3   :  { %3939 = shalt.err (!%p3936_p7)
}
 0x1d4   :  { %s4692_s7 = sld [smem:[#allocation68_spill]]  ;;  %s4094_s5 = smov [#allocation39]  }
 0x1d5   :  { %319 = dma.hbm_to_vmem [thread:$0]  %s4691_s1, 16, %s317_s18, [#allocation35]  }
 0x1d6   :  { %s335_s14 = sshll.u32 %s4094_s5, 4  ;;  %s4095_s4 = smov [#allocation40]   ;;  %s336_s14 = int_to_ptr.vmem [resolvable:$true] %s335_s14 }
 0x1d7   :  { %s348_s10 = sshll.u32 %s4095_s4, 4  ;;  %s349_s10 = int_to_ptr.vmem [resolvable:$true] %s348_s10 }
 0x1da   :  { %s3940_s11 = scalar_lea.hbm %s4692_s7, 1536 }
 0x1db   :  { %p3941_p8 = scmp.ne.s32.totalorder %s4692_s7, %s3940_s11  ;;  %p3944_p9 = scmp.lt.u32.totalorder %s3940_s11, %s4692_s7 }
 0x1dd   :  { %p3946_p10 = pnand %p3944_p9, %p3941_p8 }
 0x1df   :  { %3949 = shalt.err (!%p3946_p10)
}
 0x1e0   :  { %s3950_s21 = scalar_lea.vmem %s336_s14, 1536  ;;  %p3955_p12 = scmp.lt.s32.totalorder %s336_s14, %s336_s14 }
 0x1e1   :  { %p3951_p11 = scmp.ne.s32.totalorder %s336_s14, %s3950_s21  ;;  %p3956_p13 = scmp.lt.s32.totalorder %s3950_s21, %s3950_s21 }
 0x1e3   :  { %p3957_p0 = por %p3956_p13, %p3955_p12 }
 0x1e5   :  { %p3958_p1 = pnand %p3957_p0, %p3951_p11 }
 0x1e7   :  { %3961 = shalt.err (!%p3958_p1)
}
 0x1e8   :  { %s4693_s9 = sld [smem:[#allocation69_spill]] }
 0x1e9   :  { %341 = dma.hbm_to_vmem [thread:$0]  %s4692_s7, 1536, %s336_s14, [#allocation38], %s4069_s22, %s4069_s22, %s4070_s23  }
 0x1ee   :  { %s3962_s15 = scalar_lea.hbm %s4693_s9, 16 }
 0x1ef   :  { %p3963_p2 = scmp.ne.s32.totalorder %s4693_s9, %s3962_s15  ;;  %p3966_p3 = scmp.lt.u32.totalorder %s3962_s15, %s4693_s9 }
 0x1f1   :  { %p3968_p4 = pnand %p3966_p3, %p3963_p2 }
 0x1f3   :  { %3971 = shalt.err (!%p3968_p4)
}
 0x1f4   :  { %s3972_s25 = scalar_lea.vmem %s349_s10, 16  ;;  %s3976_s27 = scalar_lea.vmem %s349_s10, 32 }
 0x1f5   :  { %p3973_p5 = scmp.ne.s32.totalorder %s349_s10, %s3972_s25  ;;  %p3977_p6 = scmp.lt.s32.totalorder %s349_s10, %s349_s10 }
 0x1f6   :  { %p3978_p7 = scmp.lt.s32.totalorder %s3976_s27, %s3972_s25 }
 0x1f8   :  { %p3979_p8 = por %p3978_p7, %p3977_p6 }
 0x1fa   :  { %p3980_p9 = pnand %p3979_p8, %p3973_p5 }
 0x1fc   :  { %3983 = shalt.err (!%p3980_p9)
}
 0x1fd   :  { %351 = dma.hbm_to_vmem [thread:$0]  %s4693_s9, 16, %s349_s10, [#allocation41]  }
 0x1fe   :  { %4006 = dma.done.wait [#allocation5], 160  }
 0x1ff   :  { %4007 = vsyncadd [#allocation5], 4294967136 }
 0x200   :  { %4008 = dma.done.wait [#allocation8], 768  }
 0x201   :  { %4009 = vsyncadd [#allocation8], 4294966528 }
 0x202   :  { %4010 = dma.done.wait [#allocation11], 32  }
 0x203   :  { %4011 = vsyncadd [#allocation11], 4294967264 }
 0x204   :  { %4012 = dma.done.wait [#allocation14], 400  }
 0x205   :  { %4013 = vsyncadd [#allocation14], 4294966896 }
 0x206   :  { %4014 = dma.done.wait [#allocation17], 400  }
 0x207   :  { %4015 = vsyncadd [#allocation17], 4294966896 }
 0x208   :  { %4016 = dma.done.wait [#allocation20], 32  }
 0x209   :  { %4017 = vsyncadd [#allocation20], 4294967264 }
 0x20a   :  { %4018 = dma.done.wait [#allocation23], 784  }
 0x20b   :  { %4019 = vsyncadd [#allocation23], 4294966512 }
 0x20c   :  { %4020 = dma.done.wait [#allocation26], 784  }
 0x20d   :  { %4021 = vsyncadd [#allocation26], 4294966512 }
 0x20e   :  { %4022 = dma.done.wait [#allocation29], 32  }
 0x20f   :  { %4023 = vsyncadd [#allocation29], 4294967264 }
 0x210   :  { %4024 = dma.done.wait [#allocation32], 32  }
 0x211   :  { %4025 = vsyncadd [#allocation32], 4294967264 }
 0x212   :  { %4026 = dma.done.wait [#allocation35], 1552  }
 0x213   :  { %4027 = vsyncadd [#allocation35], 4294965744 }
 0x214   :  { %4028 = dma.done.wait [#allocation38], 1552  }
 0x215   :  { %4029 = vsyncadd [#allocation38], 4294965744 }
 0x216   :  { %4030 = dma.done.wait [#allocation41], 16  }
 0x217   :  { %4031 = vsyncadd [#allocation41], 4294967280  ;;  %vm439_vm0 = vcmask 90112   ;;  %v4096_v0 = vmov 0.0   ;;  %vm4097_vm1 = vmmov 0   ;;  %v4098_v1 = vmov 0  }
 0x218   :  { %3004 = vmatprep.subr.bf16.mxu0 %v4096_v0  ;;  %3006 = vmatprep.mubr.msk.bf16.mxu0 %vm4097_vm1, %v4096_v0  ;;  %440 = vst.msk [vmem:[#allocation2] sm:$0x1] %vm439_vm0, %v4098_v1  ;;  %vm441_vm2 = vcmask 96262   ;;  %vm500_vm3 = vcmask 1045504   ;;  %vm448_vm4 = vcmask 91137   ;;  %vm456_vm5 = vcmask 92162  }
 0x219   :  { %2998 = vmatprep.subr.bf16.mxu1 %v4096_v0  ;;  %3000 = vmatprep.mubr.msk.bf16.mxu1 %vm4097_vm1, %v4096_v0  ;;  %442 = vst.msk [vmem:[#allocation2] sm:$0x40] %vm441_vm2, %v4098_v1  ;;  %vm464_vm6 = vcmask 93187   ;;  %v3386_v2 = vld [vmem:[#allocation7] sm:$0x3f]   ;;  %vm472_vm7 = vcmask 94212  }
 0x21a   :  { %v443_v3 = vld [vmem:[#allocation4] sm:$0x3]  ;;  %v451_v4 = vld [vmem:[#allocation4 + $0x2] sm:$0x3]  ;;  %v459_v5 = vld [vmem:[#allocation4 + $0x4] sm:$0x3] }
 0x21b   :  { %v554_v6 = vsel %vm500_vm3, %v3386_v2, 0  ;;  %v444_v7 = vpack.c.bf16 %v443_v3, %v443_v3  ;;  %v452_v8 = vpack.c.bf16 %v451_v4, %v451_v4  ;;  %v460_v9 = vpack.c.bf16 %v459_v5, %v459_v5  ;;  %v467_v10 = vld [vmem:[#allocation4 + $0x6] sm:$0x3]  ;;  %v3387_v12 = vld [vmem:[#allocation7 + $0x10] sm:$0x3f]   ;;  %s4694_s22 = sld [smem:[#allocation57_spill]] }
 0x21c   :  { %3005 = vmatpush3.bf16.msra.mxu0 %v554_v6  ;;  %v468_v11 = vpack.c.bf16 %v467_v10, %v467_v10  ;;  %vm496_vm8 = vcmask 97280   ;;  %v3388_v17 = vld [vmem:[#allocation7 + $0x8] sm:$0x3f]   ;;  %v475_v18 = vld [vmem:[#allocation4 + $0x8] sm:$0x3]  ;;  %vm480_vm9 = vcmask 95237  }
 0x21d   :  { %3010 = vmatprep.subr.bf16.mxu0 %v4096_v0  ;;  %v446_v13 = vrot.slane %v444_v7, 7  ;;  %v454_v14 = vrot.slane %v452_v8, 6  ;;  %v462_v15 = vrot.slane %v460_v9, 5  ;;  %v476_v19 = vpack.c.bf16 %v475_v18, %v475_v18  ;;  %s4695_s23 = sld [smem:[#allocation58_spill]]  ;;  %v3389_v28 = vld [vmem:[#allocation9 + $0x8] sm:$0x3f]  }
 0x21e   :  { %v470_v16 = vrot.slane %v468_v11, 4  ;;  %v502_v20 = vsel %vm500_vm3, %v3388_v17, 0  ;;  %v612_v21 = vsel %vm500_vm3, %v3387_v12, 0  ;;  %v703_v29 = vsel %vm500_vm3, %v3389_v28, 0  ;;  %v3390_v50 = vld [vmem:[#allocation9] sm:$0x3f]  }
 0x21f   :  { %449 = vst.msk [vmem:[#allocation2] sm:$0x2] %vm448_vm4, %v446_v13  ;;  %2999 = vmatpush3.bf16.msra.mxu1 %v502_v20  ;;  %v478_v22 = vrot.slane %v476_v19, 3  ;;  %vm683_vm10 = vcmask 95233   ;;  %v755_v53 = vsel %vm500_vm3, %v3390_v50, 0  ;;  %vm878_vm11 = vcmask 122880  }
 0x220   :  { %457 = vst.msk [vmem:[#allocation2] sm:$0x4] %vm456_vm5, %v454_v14  ;;  %3016 = vmatprep.subr.bf16.mxu1 %v4096_v0  ;;  %v3391_v54 = vld [vmem:[#allocation9 + $0x10] sm:$0x3f]   ;;  %vm880_vm12 = vcmask 129030   ;;  %v3392_v59 = vld [vmem:[#allocation13 + $0x8] sm:$0xff]  }
 0x221   :  { %465 = vst.msk [vmem:[#allocation2] sm:$0x8] %vm464_vm6, %v462_v15  ;;  %v2772_v35 = vld [vmem:[%s4694_s22] ss:$0 sm:$0xff]  ;;  %v813_v55 = vsel %vm500_vm3, %v3391_v54, 0  ;;  %vm886_vm13 = vcmask 128001  }
 0x222   :  { %473 = vst.msk [vmem:[#allocation2] sm:$0x10] %vm472_vm7, %v470_v16  ;;  %v2780_v60 = vld [vmem:[#allocation10] ss:$0 sm:$0xff]  ;;  %v2781_v62 = vld [vmem:[#allocation12] ss:$0 sm:$0xff] }
 0x223   :  { %481 = vst.msk [vmem:[#allocation2] sm:$0x20] %vm480_vm9, %v478_v22  ;;  %v2773_v38 = vld [vmem:[%s4695_s23] ss:$0 sm:$0xff]  ;;  %vm903_vm14 = vcmask 130048   ;;  %v3393_v12 = vld [vmem:[#allocation13] sm:$0xff]  }
 0x224   :  { %v3394_v17 = vld [vmem:[#allocation13 + $0x10] sm:$0xff]   ;;  %v3395_v19 = vld [vmem:[#allocation18 + $0x8] sm:$0xff]   ;;  %vm1091_vm15 = vcmask 123905   ;;  %vm1307_vm3 = vcmask 258052   ;;  %vm1313_vm4 = vcmask 257025   ;;  %vm1340_vm5 = vcmask 261120  }
 0x225   :  { %vm1732_vm6 = vcmask 516096   ;;  %s4696_s24 = sld [smem:[#allocation65_spill]]  ;;  %vm1734_vm7 = vcmask 520196   ;;  %vm1787_vm9 = vcmask 523264   ;;  %s4697_s29 = sld [smem:[#allocation71_spill]] }
 0x226   :  { %s4698_s0 = sld [smem:[#allocation70_spill]]  ;;  %s4699_s17 = sld [smem:[#allocation72_spill]] }
 0x227   :  { %s4700_s16 = sld [smem:[#allocation73_spill]] }
 0x229   :  { %v482_v23 = vld [vmem:[#allocation2] sm:$0x1f] }
 0x22a   :  { %3007 = vmatmul.mubr.msk.bf16.vlgmr.msra.gmra.mrb[0].mxu0 %vm496_vm8, %v482_v23  ;;  %677 = vst.msk [vmem:[#allocation2] sm:$0x1] %vm439_vm0, %v4098_v1  ;;  %v485_v24 = vld [vmem:[#allocation2] sm:$0x3e]  ;;  %v2789_v23 = vld [vmem:[#allocation16] ss:$0 sm:$0xff] }
 0x22b   :  { %3011 = vmatpush3.bf16.msra.mxu0 %v612_v21  ;;  %3012 = vmatprep.mubr.msk.bf16.mxu0 %vm4097_vm1, %v4096_v0  ;;  %v597_v25 = vld [vmem:[#allocation2] sm:$0x7c]  ;;  %v490_v26 = vrot.slane %v485_v24, 1  ;;  %vm1097_vm0 = vcmask 124930  }
 0x22c   :  { %3034 = vmatprep.subr.bf16.mxu0 %v4096_v0  ;;  %v602_v27 = vrot.slane %v597_v25, 2  ;;  %678 = vst.msk [vmem:[#allocation2] sm:$0x40] %vm441_vm2, %v4098_v1  ;;  %v2788_v21 = vld [vmem:[#allocation15] ss:$0 sm:$0xff]  ;;  %vm1305_vm2 = vcmask 253952  }
 0x22d   :  { %3001 = vmatmul.mubr.msk.bf16.vlgmr.msra.gmra.mrb[0].mxu1 %vm496_vm8, %v490_v26 }
 0x22e   :  { %3018 = vmatprep.mubr.msk.bf16.mxu1 %vm4097_vm1, %v4096_v0  ;;  %3017 = vmatpush3.bf16.msra.mxu1 %v703_v29 }
 0x22f   :  { %3022 = vmatprep.subr.bf16.mxu1 %v4096_v0 }
 0x236   :  { %3013 = vmatmul.mubr.msk.bf16.vlgmr.msra.gmra.mrb[0].mxu0 %vm496_vm8, %v602_v27 }
 0x237   :  { %3036 = vmatprep.mubr.msk.bf16.mxu0 %vm4097_vm1, %v4096_v0  ;;  %3035 = vmatpush3.bf16.msra.mxu0 %v3392_v59  ;;  %v3399_v59 = vld [vmem:[#allocation22 + $0x18] sm:$0xff]  }
 0x238   :  { %3040 = vmatprep.subr.bf16.mxu0 %v4096_v0 }
 0x300   :  { %v538_v30 = vpop.f32.mrb[0].mxu1 }
 0x301   :  { %v3002_v31 = vpop.f32.mrb[1].mxu1 }
 0x302   :  { %v541_v32 = vpop.f32.mrb[2].mxu1 }
 0x303   :  { %v3003_v33 = vpop.f32.mrb[3].mxu1 }
 0x309   :  { %v648_v34 = vpop.f32.mrb[0].mxu0 }
 0x30a   :  { %v3250_v36 = vadd.f32 %v648_v34, %v538_v30  ;;  %v3014_v37 = vpop.f32.mrb[1].mxu0 }
 0x30b   :  { %v651_v39 = vpop.f32.mrb[2].mxu0 }
 0x30c   :  { %v664_v40 = vmul.f32 %v3250_v36, %v2772_v35  ;;  %v3251_v41 = vadd.f32 %v651_v39, %v541_v32  ;;  %v3015_v42 = vpop.f32.mrb[3].mxu0 }
 0x30e   :  { %v673_v43 = vadd.f32 %v2773_v38, %v664_v40  ;;  %v665_v44 = vmul.f32 %v3251_v41, %v2772_v35 }
 0x310   :  { %v674_v45 = vadd.f32 %v2773_v38, %v665_v44  ;;  %v675_v46 = vmax.f32 %v673_v43, 0.0 }
 0x312   :  { %v676_v47 = vmax.f32 %v674_v45, 0.0 }
 0x314   :  { %v679_v48 = vpack.c.bf16 %v676_v47, %v675_v46 }
 0x316   :  { %v681_v49 = vrot.slane %v679_v48, 7 }
 0x318   :  { %684 = vst.msk [vmem:[#allocation2] sm:$0x3e] %vm683_vm10, %v681_v49  ;;  %vm2256_vm10 = vcmask 518144  }
 0x31f   :  { %v688_v51 = vld [vmem:[#allocation2] sm:$0x3e] }
 0x320   :  { %v693_v52 = vrot.slane %v688_v51, 1  ;;  %v685_v56 = vld [vmem:[#allocation2] sm:$0x1f] }
 0x321   :  { %v798_v57 = vld [vmem:[#allocation2] sm:$0x7c]  ;;  %879 = vst.msk [vmem:[#allocation2] sm:$0x1] %vm878_vm11, %v4098_v1 }
 0x322   :  { %3019 = vmatmul.mubr.msk.bf16.vlgmr.msra.gmra.mrb[4].mxu1 %vm496_vm8, %v693_v52  ;;  %v803_v58 = vrot.slane %v798_v57, 2  ;;  %881 = vst.msk [vmem:[#allocation2] sm:$0x40] %vm880_vm12, %v4098_v1  ;;  %v3396_v52 = vld [vmem:[#allocation18] sm:$0xff]  }
 0x323   :  { %3023 = vmatpush3.bf16.msra.mxu1 %v755_v53  ;;  %3024 = vmatprep.mubr.msk.bf16.mxu1 %vm4097_vm1, %v4096_v0 }
 0x324   :  { %3028 = vmatprep.subr.bf16.mxu1 %v4096_v0 }
 0x32e   :  { %3025 = vmatmul.mubr.msk.bf16.vlgmr.msra.gmra.mrb[4].mxu1 %vm496_vm8, %v685_v56  ;;  %v3397_v56 = vld [vmem:[#allocation18 + $0x10] sm:$0xff]  }
 0x32f   :  { %3029 = vmatpush3.bf16.msra.mxu1 %v813_v55  ;;  %3030 = vmatprep.mubr.msk.bf16.mxu1 %vm4097_vm1, %v4096_v0 }
 0x330   :  { %3052 = vmatprep.subr.bf16.mxu1 %v4096_v0 }
 0x33a   :  { %3031 = vmatmul.mubr.msk.bf16.vlgmr.msra.gmra.mrb[4].mxu1 %vm496_vm8, %v803_v58  ;;  %v3398_v58 = vld [vmem:[#allocation22 + $0x10] sm:$0xff]   ;;  %vm1740_vm8 = vcmask 519169  }
 0x33b   :  { %3054 = vmatprep.mubr.msk.bf16.mxu1 %vm4097_vm1, %v4096_v0  ;;  %3053 = vmatpush3.bf16.msra.mxu1 %v3395_v19  ;;  %v3405_v19 = vld [vmem:[#allocation27 + $0x18] sm:$0xff]  }
 0x33c   :  { %3058 = vmatprep.subr.bf16.mxu1 %v4096_v0 }
 0x40d   :  { %v849_v61 = vpop.f32.mrb[4].mxu1 }
 0x40e   :  { %v865_v63 = vmul.f32 %v2780_v60, %v849_v61  ;;  %v3032_v2 = vpop.f32.mrb[5].mxu1 }
 0x40f   :  { %v852_v3 = vpop.f32.mrb[6].mxu1 }
 0x410   :  { %v874_v4 = vadd.f32 %v2781_v62, %v865_v63  ;;  %v866_v5 = vmul.f32 %v2780_v60, %v852_v3  ;;  %v3033_v6 = vpop.f32.mrb[7].mxu1  ;;  %v2796_v60 = vld [vmem:[#allocation19] ss:$0 sm:$0xff] }
 0x412   :  { %v875_v7 = vadd.f32 %v2781_v62, %v866_v5  ;;  %v876_v8 = vmax.f32 %v874_v4, 0.0  ;;  %v2797_v62 = vld [vmem:[#allocation21] ss:$0 sm:$0xff] }
 0x414   :  { %v877_v9 = vmax.f32 %v875_v7, 0.0 }
 0x416   :  { %v882_v10 = vpack.c.bf16 %v877_v9, %v876_v8 }
 0x418   :  { %v884_v11 = vrot.slane %v882_v10, 7 }
 0x41a   :  { %887 = vst.msk [vmem:[#allocation2] sm:$0x3e] %vm886_vm13, %v884_v11 }
 0x421   :  { %v891_v13 = vld [vmem:[#allocation2] sm:$0x3e] }
 0x422   :  { %v888_v14 = vld [vmem:[#allocation2] sm:$0x1f]  ;;  %v896_v16 = vrot.slane %v891_v13, 1 }
 0x423   :  { %v998_v15 = vld [vmem:[#allocation2] sm:$0x7c]  ;;  %1078 = vst.msk [vmem:[#allocation2] sm:$0x1] %vm878_vm11, %v4098_v1 }
 0x424   :  { %1079 = vst.msk [vmem:[#allocation2] sm:$0x40] %vm880_vm12, %v4098_v1  ;;  %3037 = vmatmul.mubr.msk.bf16.vlgmr.msra.gmra.mrb[4].mxu0 %vm903_vm14, %v896_v16  ;;  %v1003_v18 = vrot.slane %v998_v15, 2  ;;  %v3402_v15 = vld [vmem:[#allocation22 + $0x20] sm:$0xff]   ;;  %v3403_v16 = vld [vmem:[#allocation22 + $0x28] sm:$0xff]  }
 0x425   :  { %3041 = vmatpush3.bf16.msra.mxu0 %v3393_v12  ;;  %3042 = vmatprep.mubr.msk.bf16.mxu0 %vm4097_vm1, %v4096_v0 }
 0x426   :  { %3046 = vmatprep.subr.bf16.mxu0 %v4096_v0 }
 0x42a   :  { %v1085_v20 = vld [vmem:[#allocation2] sm:$0x1] }
 0x42b   :  { %1086 = vst.msk [vmem:[#allocation3] sm:$0x1] %vm878_vm11, %v1085_v20  ;;  %v1229_v48 = vld [vmem:[#allocation2] sm:$0x40]  ;;  %v2807_v20 = vld [vmem:[#allocation24] ss:$0 sm:$0xff] }
 0x42c   :  { %v1231_v51 = vrot.slane %v1229_v48, 4  ;;  %1306 = vst.msk [vmem:[#allocation2] sm:$0x1] %vm1305_vm2, %v4098_v1 }
 0x430   :  { %3043 = vmatmul.mubr.msk.bf16.vlgmr.msra.gmra.mrb[4].mxu0 %vm903_vm14, %v888_v14  ;;  %v3401_v14 = vld [vmem:[#allocation22 + $0x8] sm:$0xff]  }
 0x431   :  { %3047 = vmatpush3.bf16.msra.mxu0 %v3394_v17  ;;  %3048 = vmatprep.mubr.msk.bf16.mxu0 %vm4097_vm1, %v4096_v0 }
 0x432   :  { %3070 = vmatprep.subr.bf16.mxu0 %v4096_v0 }
 0x43c   :  { %3049 = vmatmul.mubr.msk.bf16.vlgmr.msra.gmra.mrb[4].mxu0 %vm903_vm14, %v1003_v18  ;;  %v3404_v18 = vld [vmem:[#allocation27 + $0x10] sm:$0xff]  }
 0x43d   :  { %3074 = vmatprep.mubr.msk.bf16.mxu0 %vm4097_vm1, %v4096_v0  ;;  %3071 = vmatpush3.bf16.msra.mxu0 %v3398_v58 }
 0x43e   :  { %3072 = vmatprep.subr.bf16.mxu0 %v4096_v0 }
 0x441   :  { %3073 = vmatpush3.bf16.msra.mxu0 %v3399_v59 }
 0x442   :  { %3078 = vmatprep.subr.bf16.mxu0 %v4096_v0 }
 0x50f   :  { %v1047_v22 = vpop.f32.mrb[4].mxu0 }
 0x510   :  { %v1063_v24 = vmul.f32 %v2788_v21, %v1047_v22  ;;  %v3050_v25 = vpop.f32.mrb[5].mxu0  ;;  %v2808_v22 = vld [vmem:[#allocation25] ss:$0 sm:$0xff] }
 0x511   :  { %v1050_v26 = vpop.f32.mrb[6].mxu0 }
 0x512   :  { %v1072_v27 = vadd.f32 %v2789_v23, %v1063_v24  ;;  %v1064_v28 = vmul.f32 %v2788_v21, %v1050_v26  ;;  %v3051_v29 = vpop.f32.mrb[7].mxu0 }
 0x514   :  { %v1074_v30 = vadd.f32 %v1072_v27, %v876_v8  ;;  %v1073_v31 = vadd.f32 %v2789_v23, %v1064_v28 }
 0x516   :  { %v1075_v32 = vadd.f32 %v1073_v31, %v877_v9  ;;  %v1076_v33 = vmax.f32 %v1074_v30, 0.0  ;;  %v3400_v9 = vld [vmem:[#allocation22] sm:$0xff]  }
 0x518   :  { %v1077_v34 = vmax.f32 %v1075_v32, 0.0 }
 0x51a   :  { %v1080_v35 = vpack.c.bf16 %v1077_v34, %v1076_v33  ;;  %v3406_v33 = vld [vmem:[#allocation27] sm:$0xff]  }
 0x51c   :  { %v1082_v36 = vrot.slane %v1080_v35, 7 }
 0x51e   :  { %1084 = vst.msk [vmem:[#allocation2] sm:$0x3e] %vm886_vm13, %v1082_v36  ;;  %v3407_v36 = vld [vmem:[#allocation27 + $0x8] sm:$0xff]  }
 0x525   :  { %v1087_v37 = vld [vmem:[#allocation2] sm:$0x4]  ;;  %v1093_v38 = vld [vmem:[#allocation2] sm:$0x10]  ;;  %v1102_v41 = vld [vmem:[#allocation2] sm:$0x2] }
 0x526   :  { %v1089_v39 = vrot.slane %v1087_v37, 1  ;;  %v1095_v40 = vrot.slane %v1093_v38, 2  ;;  %v1107_v42 = vld [vmem:[#allocation2] sm:$0x8]  ;;  %v1112_v43 = vld [vmem:[#allocation2] sm:$0x20] }
 0x527   :  { %v1104_v44 = vrot.slane %v1102_v41, 1  ;;  %v1109_v45 = vrot.slane %v1107_v42, 2  ;;  %v1114_v46 = vrot.slane %v1112_v43, 3  ;;  %v1219_v49 = vld [vmem:[#allocation2] sm:$0x4]  ;;  %v3408_v37 = vld [vmem:[#allocation27 + $0x20] sm:$0xff]  }
 0x528   :  { %1092 = vst.msk [vmem:[#allocation3] sm:$0x2] %vm1091_vm15, %v1089_v39  ;;  %v1224_v50 = vld [vmem:[#allocation2] sm:$0x10]  ;;  %v1221_v53 = vrot.slane %v1219_v49, 2  ;;  %v3411_v42 = vld [vmem:[%s4696_s24 + $0x28] sm:$0xff]  }
 0x529   :  { %1098 = vst.msk [vmem:[#allocation3] sm:$0x4] %vm1097_vm0, %v1095_v40  ;;  %v1226_v54 = vrot.slane %v1224_v50, 3  ;;  %v3409_v38 = vld [vmem:[#allocation27 + $0x28] sm:$0xff]   ;;  %v3412_v43 = vld [vmem:[%s4696_s24 + $0x30] sm:$0xff]  }
 0x52a   :  { %1308 = vst.msk [vmem:[#allocation2] sm:$0x10] %vm1307_vm3, %v4098_v1  ;;  %v3410_v41 = vld [vmem:[%s4696_s24 + $0x20] sm:$0xff]  }
 0x530   :  { %v1099_v47 = vld [vmem:[#allocation3] sm:$0x7] }
 0x531   :  { %1106 = vst.msk [vmem:[#allocation3] sm:$0x1] %vm878_vm11, %v1104_v44  ;;  %v3413_v44 = vld [vmem:[%s4696_s24 + $0x38] sm:$0xff]  }
 0x532   :  { %1111 = vst.msk [vmem:[#allocation3] sm:$0x2] %vm1091_vm15, %v1109_v45  ;;  %v2818_v45 = vld [vmem:[#allocation28] ss:$0 sm:$0xff] }
 0x533   :  { %1116 = vst.msk [vmem:[#allocation3] sm:$0x4] %vm1097_vm0, %v1114_v46 }
 0x53a   :  { %v1117_v55 = vld [vmem:[#allocation3] sm:$0x7] }
 0x53b   :  { %3055 = vmatmul.mubr.msk.bf16.vlgmr.msra.gmra.mrb[8].mxu1 %vm903_vm14, %v1117_v55  ;;  %1223 = vst.msk [vmem:[#allocation3] sm:$0x1] %vm878_vm11, %v1221_v53 }
 0x53c   :  { %1228 = vst.msk [vmem:[#allocation3] sm:$0x2] %vm1091_vm15, %v1226_v54  ;;  %3059 = vmatpush3.bf16.msra.mxu1 %v3396_v52  ;;  %3060 = vmatprep.mubr.msk.bf16.mxu1 %vm4097_vm1, %v4096_v0 }
 0x53d   :  { %1233 = vst.msk [vmem:[#allocation3] sm:$0x4] %vm1097_vm0, %v1231_v51  ;;  %3064 = vmatprep.subr.bf16.mxu1 %v4096_v0 }
 0x544   :  { %v1234_v57 = vld [vmem:[#allocation3] sm:$0x7] }
 0x547   :  { %3061 = vmatmul.mubr.msk.bf16.vlgmr.msra.gmra.mrb[8].mxu1 %vm903_vm14, %v1099_v47  ;;  %v2819_v47 = vld [vmem:[#allocation30] ss:$0 sm:$0xff] }
 0x548   :  { %3065 = vmatpush3.bf16.msra.mxu1 %v3397_v56  ;;  %3066 = vmatprep.mubr.msk.bf16.mxu1 %vm4097_vm1, %v4096_v0  ;;  %v3414_v56 = vld [vmem:[%s4696_s24] sm:$0xff]  }
 0x549   :  { %3094 = vmatprep.subr.bf16.mxu1 %v4096_v0 }
 0x553   :  { %3067 = vmatmul.mubr.msk.bf16.vlgmr.msra.gmra.mrb[8].mxu1 %vm903_vm14, %v1234_v57 }
 0x554   :  { %3098 = vmatprep.mubr.msk.bf16.mxu1 %vm4097_vm1, %v4096_v0  ;;  %3095 = vmatpush3.bf16.msra.mxu1 %v3404_v18 }
 0x555   :  { %3096 = vmatprep.subr.bf16.mxu1 %v4096_v0 }
 0x558   :  { %3097 = vmatpush3.bf16.msra.mxu1 %v3405_v19 }
 0x559   :  { %3102 = vmatprep.subr.bf16.mxu1 %v4096_v0 }
 0x626   :  { %v1281_v61 = vpop.f32.mrb[8].mxu1 }
 0x627   :  { %v1295_v63 = vmul.f32 %v2796_v60, %v1281_v61  ;;  %v3068_v2 = vpop.f32.mrb[9].mxu1  ;;  %v3415_v61 = vld [vmem:[%s4696_s24 + $0x8] sm:$0xff]  }
 0x628   :  { %v1284_v3 = vpop.f32.mrb[10].mxu1  ;;  %v3419_v2 = vld [vmem:[%s4696_s24 + $0x48] sm:$0xff]  }
 0x629   :  { %v1303_v4 = vadd.f32 %v2797_v62, %v1295_v63  ;;  %v3069_v5 = vpop.f32.mrb[11].mxu1  ;;  %v3416_v62 = vld [vmem:[%s4696_s24 + $0x10] sm:$0xff]   ;;  %v3417_v63 = vld [vmem:[%s4696_s24 + $0x18] sm:$0xff]  }
 0x62a   :  { %v3420_v3 = vld [vmem:[%s4696_s24 + $0x50] sm:$0xff]  }
 0x62b   :  { %v1304_v6 = vmax.f32 %v1303_v4, 0.0  ;;  %v3421_v4 = vld [vmem:[%s4696_s24 + $0x58] sm:$0xff]  }
 0x62d   :  { %v1309_v7 = vpack.c.bf16 %v1304_v6, %v1304_v6 }
 0x62f   :  { %v1311_v8 = vrot.slane %v1309_v7, 7  ;;  %v3423_v7 = vld [vmem:[#allocation34 + $0x28] sm:$0xff]  }
 0x631   :  { %1314 = vst.msk [vmem:[#allocation2] sm:$0xe] %vm1313_vm4, %v1311_v8  ;;  %v3424_v8 = vld [vmem:[#allocation34 + $0x30] sm:$0xff]  }
 0x638   :  { %v1320_v10 = vld [vmem:[#allocation2] sm:$0xe] }
 0x639   :  { %v1315_v11 = vld [vmem:[#allocation2] sm:$0x7]  ;;  %v1327_v13 = vrot.slane %v1320_v10, 1  ;;  %v2851_v10 = vld [vmem:[#allocation31] ss:$0 sm:$0xff] }
 0x63a   :  { %v1439_v12 = vld [vmem:[#allocation2] sm:$0x1c]  ;;  %1521 = vst.msk [vmem:[#allocation2] sm:$0x1] %vm1305_vm2, %v4098_v1 }
 0x63b   :  { %1522 = vst.msk [vmem:[#allocation2] sm:$0x10] %vm1307_vm3, %v4098_v1  ;;  %3075 = vmatmul.mubr.msk.bf16.vlgmr.msra.gmra.mrb[8].mxu0 %vm1340_vm5, %v1327_v13  ;;  %v1446_v17 = vrot.slane %v1439_v12, 2  ;;  %v2852_v12 = vld [vmem:[#allocation33] ss:$0 sm:$0xff] }
 0x63c   :  { %3079 = vmatpush3.bf16.msra.mxu0 %v3400_v9  ;;  %3082 = vmatprep.mubr.msk.bf16.mxu0 %vm4097_vm1, %v4096_v0  ;;  %v3425_v9 = vld [vmem:[#allocation34 + $0x38] sm:$0xff]  }
 0x63d   :  { %3080 = vmatprep.subr.bf16.mxu0 %v4096_v0 }
 0x640   :  { %3081 = vmatpush3.bf16.msra.mxu0 %v3401_v14 }
 0x641   :  { %3086 = vmatprep.subr.bf16.mxu0 %v4096_v0 }
 0x647   :  { %3083 = vmatmul.mubr.msk.bf16.vlgmr.msra.gmra.mrb[8].mxu0 %vm1340_vm5, %v1315_v11 }
 0x648   :  { %3087 = vmatpush3.bf16.msra.mxu0 %v3402_v15  ;;  %3090 = vmatprep.mubr.msk.bf16.mxu0 %vm4097_vm1, %v4096_v0 }
 0x649   :  { %3088 = vmatprep.subr.bf16.mxu0 %v4096_v0 }
 0x64c   :  { %3089 = vmatpush3.bf16.msra.mxu0 %v3403_v16 }
 0x64d   :  { %3118 = vmatprep.subr.bf16.mxu0 %v4096_v0 }
 0x653   :  { %3091 = vmatmul.mubr.msk.bf16.vlgmr.msra.gmra.mrb[8].mxu0 %vm1340_vm5, %v1446_v17 }
 0x654   :  { %3126 = vmatprep.mubr.msk.bf16.mxu0 %vm4097_vm1, %v4096_v0  ;;  %3119 = vmatpush3.bf16.msra.mxu0 %v3410_v41  ;;  %v2868_v41 = vld [vmem:[#allocation36] ss:$0 sm:$0xff] }
 0x655   :  { %3120 = vmatprep.subr.bf16.mxu0 %v4096_v0 }
 0x658   :  { %3121 = vmatpush3.bf16.msra.mxu0 %v3411_v42 }
 0x659   :  { %3122 = vmatprep.subr.bf16.mxu0 %v4096_v0 }
 0x65c   :  { %3123 = vmatpush3.bf16.msra.mxu0 %v3412_v43  ;;  %v2869_v43 = vld [vmem:[#allocation37] ss:$0 sm:$0xff] }
 0x65d   :  { %3124 = vmatprep.subr.bf16.mxu0 %v4096_v0 }
 0x660   :  { %3125 = vmatpush3.bf16.msra.mxu0 %v3413_v44 }
 0x661   :  { %3130 = vmatprep.subr.bf16.mxu0 %v4096_v0 }
 0x726   :  { %v1496_v21 = vpop.f32.mrb[8].mxu0 }
 0x727   :  { %v1510_v23 = vmul.f32 %v2807_v20, %v1496_v21  ;;  %v3092_v24 = vpop.f32.mrb[9].mxu0 }
 0x728   :  { %v1499_v25 = vpop.f32.mrb[10].mxu0 }
 0x729   :  { %v1518_v26 = vadd.f32 %v2808_v22, %v1510_v23  ;;  %v3093_v27 = vpop.f32.mrb[11].mxu0  ;;  %v3426_v23 = vld [vmem:[#allocation34] sm:$0xff]   ;;  %v3427_v25 = vld [vmem:[#allocation34 + $0x8] sm:$0xff]  }
 0x72a   :  { %v3429_v27 = vld [vmem:[#allocation34 + $0x18] sm:$0xff]  }
 0x72b   :  { %v1519_v28 = vadd.f32 %v1518_v26, %v1304_v6  ;;  %v3422_v6 = vld [vmem:[#allocation34 + $0x20] sm:$0xff]   ;;  %v3428_v26 = vld [vmem:[#allocation34 + $0x10] sm:$0xff]  }
 0x72d   :  { %v1520_v29 = vmax.f32 %v1519_v28, 0.0  ;;  %v3430_v28 = vld [vmem:[#allocation34 + $0x40] sm:$0xff]  }
 0x72f   :  { %v1523_v30 = vpack.c.bf16 %v1520_v29, %v1520_v29 }
 0x731   :  { %v1525_v31 = vrot.slane %v1523_v30, 7  ;;  %v3431_v30 = vld [vmem:[#allocation34 + $0x48] sm:$0xff]  }
 0x733   :  { %1527 = vst.msk [vmem:[#allocation2] sm:$0xe] %vm1313_vm4, %v1525_v31  ;;  %v3432_v31 = vld [vmem:[#allocation34 + $0x50] sm:$0xff]  }
 0x73a   :  { %v1533_v32 = vld [vmem:[#allocation2] sm:$0xe] }
 0x73b   :  { %v1528_v34 = vld [vmem:[#allocation2] sm:$0x7]  ;;  %v1540_v35 = vrot.slane %v1533_v32, 1  ;;  %v3433_v32 = vld [vmem:[#allocation34 + $0x58] sm:$0xff]  }
 0x73c   :  { %1733 = vst.msk [vmem:[#allocation2] sm:$0x1] %vm1732_vm6, %v4098_v1  ;;  %v1651_v39 = vld [vmem:[#allocation2] sm:$0x1c] }
 0x73d   :  { %3099 = vmatmul.mubr.msk.bf16.vlgmr.msra.gmra.mrb[12].mxu1 %vm1340_vm5, %v1540_v35  ;;  %v1658_v40 = vrot.slane %v1651_v39, 2  ;;  %1735 = vst.msk [vmem:[#allocation2] sm:$0x10] %vm1734_vm7, %v4098_v1  ;;  %v3434_v35 = vld [vmem:[#allocation39 + $0x20] sm:$0xff]   ;;  %v3446_v39 = vld [vmem:[%s4697_s29] sm:$0xff]  }
 0x73e   :  { %3103 = vmatpush3.bf16.msra.mxu1 %v3406_v33  ;;  %3106 = vmatprep.mubr.msk.bf16.mxu1 %vm4097_vm1, %v4096_v0 }
 0x73f   :  { %3104 = vmatprep.subr.bf16.mxu1 %v4096_v0 }
 0x742   :  { %3105 = vmatpush3.bf16.msra.mxu1 %v3407_v36  ;;  %v3435_v36 = vld [vmem:[#allocation39 + $0x28] sm:$0xff]  }
 0x743   :  { %3110 = vmatprep.subr.bf16.mxu1 %v4096_v0 }
 0x749   :  { %3107 = vmatmul.mubr.msk.bf16.vlgmr.msra.gmra.mrb[12].mxu1 %vm1340_vm5, %v1528_v34 }
 0x74a   :  { %3111 = vmatpush3.bf16.msra.mxu1 %v3408_v37  ;;  %3114 = vmatprep.mubr.msk.bf16.mxu1 %vm4097_vm1, %v4096_v0  ;;  %v3436_v37 = vld [vmem:[#allocation39 + $0x30] sm:$0xff]  }
 0x74b   :  { %3112 = vmatprep.subr.bf16.mxu1 %v4096_v0 }
 0x74e   :  { %3113 = vmatpush3.bf16.msra.mxu1 %v3409_v38  ;;  %v3437_v38 = vld [vmem:[#allocation39 + $0x38] sm:$0xff]  }
 0x74f   :  { %3154 = vmatprep.subr.bf16.mxu1 %v4096_v0 }
 0x755   :  { %3115 = vmatmul.mubr.msk.bf16.vlgmr.msra.gmra.mrb[12].mxu1 %vm1340_vm5, %v1658_v40  ;;  %v3447_v40 = vld [vmem:[%s4697_s29 + $0x8] sm:$0xff]  }
 0x756   :  { %3162 = vmatprep.mubr.msk.bf16.mxu1 %vm4097_vm1, %v4096_v0  ;;  %3155 = vmatpush3.bf16.msra.mxu1 %v3422_v6 }
 0x757   :  { %3156 = vmatprep.subr.bf16.mxu1 %v4096_v0 }
 0x75a   :  { %3157 = vmatpush3.bf16.msra.mxu1 %v3423_v7 }
 0x75b   :  { %3158 = vmatprep.subr.bf16.mxu1 %v4096_v0 }
 0x75e   :  { %3159 = vmatpush3.bf16.msra.mxu1 %v3424_v8 }
 0x75f   :  { %3160 = vmatprep.subr.bf16.mxu1 %v4096_v0 }
 0x762   :  { %3161 = vmatpush3.bf16.msra.mxu1 %v3425_v9 }
 0x763   :  { %3166 = vmatprep.subr.bf16.mxu1 %v4096_v0 }
 0x828   :  { %v1708_v46 = vpop.f32.mrb[12].mxu1 }
 0x829   :  { %v1722_v48 = vmul.f32 %v2818_v45, %v1708_v46  ;;  %v3116_v49 = vpop.f32.mrb[13].mxu1 }
 0x82a   :  { %v1711_v50 = vpop.f32.mrb[14].mxu1 }
 0x82b   :  { %v1730_v51 = vadd.f32 %v2819_v47, %v1722_v48  ;;  %v3117_v52 = vpop.f32.mrb[15].mxu1 }
 0x82c   :  { %v3438_v52 = vld [vmem:[#allocation39] sm:$0xff]  }
 0x82d   :  { %v4551_v53 = vmax.f32 %v1730_v51, 0.0 }
 0x82f   :  { %v1736_v54 = vpack.c.bf16 %v4551_v53, %v4551_v53 }
 0x831   :  { %v1738_v55 = vrot.slane %v1736_v54, 7  ;;  %v3439_v54 = vld [vmem:[#allocation39 + $0x8] sm:$0xff]  }
 0x833   :  { %1741 = vst.msk [vmem:[#allocation2] sm:$0xe] %vm1740_vm8, %v1738_v55  ;;  %v3440_v55 = vld [vmem:[#allocation39 + $0x10] sm:$0xff]  }
 0x83a   :  { %v1751_v57 = vld [vmem:[#allocation2] sm:$0xe] }
 0x83b   :  { %v1742_v58 = vld [vmem:[#allocation2] sm:$0x7]  ;;  %v1762_v60 = vrot.slane %v1751_v57, 1  ;;  %v3442_v57 = vld [vmem:[#allocation39 + $0x40] sm:$0xff]  }
 0x83c   :  { %v1898_v59 = vld [vmem:[#allocation2] sm:$0x1c]  ;;  %1996 = vst.msk [vmem:[#allocation2] sm:$0x1] %vm1732_vm6, %v4098_v1 }
 0x83d   :  { %1997 = vst.msk [vmem:[#allocation2] sm:$0x10] %vm1734_vm7, %v4098_v1  ;;  %3127 = vmatmul.mubr.msk.bf16.vlgmr.msra.gmra.mrb[12].mxu0 %vm1787_vm9, %v1762_v60  ;;  %v3418_v1 = vld [vmem:[%s4696_s24 + $0x40] sm:$0xff]   ;;  %v1909_v5 = vrot.slane %v1898_v59, 2 }
 0x83e   :  { %3131 = vmatpush3.bf16.msra.mxu0 %v3414_v56  ;;  %3138 = vmatprep.mubr.msk.bf16.mxu0 %vm4097_vm1, %v4096_v0  ;;  %v3441_v56 = vld [vmem:[#allocation39 + $0x18] sm:$0xff]   ;;  %v3443_v59 = vld [vmem:[#allocation39 + $0x48] sm:$0xff]   ;;  %v3444_v60 = vld [vmem:[#allocation39 + $0x50] sm:$0xff]  }
 0x83f   :  { %3132 = vmatprep.subr.bf16.mxu0 %v4096_v0 }
 0x842   :  { %3133 = vmatpush3.bf16.msra.mxu0 %v3415_v61  ;;  %v3445_v61 = vld [vmem:[#allocation39 + $0x58] sm:$0xff]  }
 0x843   :  { %3134 = vmatprep.subr.bf16.mxu0 %v4096_v0 }
 0x846   :  { %3135 = vmatpush3.bf16.msra.mxu0 %v3416_v62 }
 0x847   :  { %3136 = vmatprep.subr.bf16.mxu0 %v4096_v0 }
 0x84a   :  { %3137 = vmatpush3.bf16.msra.mxu0 %v3417_v63 }
 0x84b   :  { %3142 = vmatprep.subr.bf16.mxu0 %v4096_v0 }
 0x84d   :  { %3139 = vmatmul.mubr.msk.bf16.vlgmr.msra.gmra.mrb[12].mxu0 %vm1787_vm9, %v1742_v58 }
 0x84e   :  { %3143 = vmatpush3.bf16.msra.mxu0 %v3418_v1  ;;  %3150 = vmatprep.mubr.msk.bf16.mxu0 %vm4097_vm1, %v4096_v0  ;;  %v3448_v1 = vld [vmem:[%s4697_s29 + $0x10] sm:$0xff]  }
 0x84f   :  { %3144 = vmatprep.subr.bf16.mxu0 %v4096_v0 }
 0x852   :  { %3145 = vmatpush3.bf16.msra.mxu0 %v3419_v2  ;;  %v3449_v2 = vld [vmem:[%s4697_s29 + $0x18] sm:$0xff]  }
 0x853   :  { %3146 = vmatprep.subr.bf16.mxu0 %v4096_v0 }
 0x856   :  { %3147 = vmatpush3.bf16.msra.mxu0 %v3420_v3  ;;  %v2885_v3 = vld [vmem:[#allocation40] ss:$0 sm:$0xff] }
 0x857   :  { %3148 = vmatprep.subr.bf16.mxu0 %v4096_v0 }
 0x85a   :  { %3149 = vmatpush3.bf16.msra.mxu0 %v3421_v4 }
 0x85b   :  { %3190 = vmatprep.subr.bf16.mxu0 %v4096_v0 }
 0x85d   :  { %3151 = vmatmul.mubr.msk.bf16.vlgmr.msra.gmra.mrb[12].mxu0 %vm1787_vm9, %v1909_v5  ;;  %v2886_v5 = vld [vmem:[%s4698_s0] ss:$0 sm:$0xff] }
 0x85e   :  { %3198 = vmatprep.mubr.msk.bf16.mxu0 %vm4097_vm1, %v4096_v0  ;;  %3191 = vmatpush3.bf16.msra.mxu0 %v3434_v35 }
 0x85f   :  { %3192 = vmatprep.subr.bf16.mxu0 %v4096_v0 }
 0x862   :  { %3193 = vmatpush3.bf16.msra.mxu0 %v3435_v36 }
 0x863   :  { %3194 = vmatprep.subr.bf16.mxu0 %v4096_v0 }
 0x866   :  { %3195 = vmatpush3.bf16.msra.mxu0 %v3436_v37 }
 0x867   :  { %3196 = vmatprep.subr.bf16.mxu0 %v4096_v0 }
 0x86a   :  { %3197 = vmatpush3.bf16.msra.mxu0 %v3437_v38 }
 0x86b   :  { %3202 = vmatprep.subr.bf16.mxu0 %v4096_v0 }
 0x930   :  { %v1971_v11 = vpop.f32.mrb[12].mxu0 }
 0x931   :  { %v1985_v13 = vmul.f32 %v2851_v10, %v1971_v11  ;;  %v3152_v14 = vpop.f32.mrb[13].mxu0 }
 0x932   :  { %v1974_v15 = vpop.f32.mrb[14].mxu0  ;;  %v3451_v14 = vld [vmem:[%s4263_s13 + $0x8] sm:$0xff]  }
 0x933   :  { %v1993_v16 = vadd.f32 %v2852_v12, %v1985_v13  ;;  %v3153_v17 = vpop.f32.mrb[15].mxu0  ;;  %v3450_v12 = vld [vmem:[%s4263_s13] sm:$0xff]   ;;  %v3452_v15 = vld [vmem:[%s4263_s13 + $0x10] sm:$0xff]  }
 0x934   :  { %v2892_v17 = vld [vmem:[%s4699_s17] ss:$0 sm:$0xff] }
 0x935   :  { %v1994_v18 = vadd.f32 %v1993_v16, %v4551_v53  ;;  %v3453_v16 = vld [vmem:[%s4263_s13 + $0x18] sm:$0xff]   ;;  %s4099_s13 = smov [#allocation42]  }
 0x936   :  { %s2711_s6 = sshll.u32 %s4099_s13, 4  ;;  %s2712_s6 = int_to_ptr.vmem [resolvable:$true] %s2711_s6 }
 0x937   :  { %v1995_v19 = vmax.f32 %v1994_v18, 0.0  ;;  %p3989_p11 = scmp.lt.s32.totalorder %s2712_s6, %s2712_s6 }
 0x939   :  { %v1998_v20 = vpack.c.bf16 %v1995_v19, %v1995_v19  ;;  %v2893_v19 = vld [vmem:[%s4700_s16] ss:$0 sm:$0xff] }
 0x93b   :  { %v2000_v21 = vrot.slane %v1998_v20, 7 }
 0x93d   :  { %2002 = vst.msk [vmem:[#allocation2] sm:$0xe] %vm1740_vm8, %v2000_v21 }
 0x944   :  { %v2012_v22 = vld [vmem:[#allocation2] sm:$0xe] }
 0x945   :  { %v2023_v24 = vrot.slane %v2012_v22, 1  ;;  %v2003_v29 = vld [vmem:[#allocation2] sm:$0x7] }
 0x946   :  { %v2158_v33 = vld [vmem:[#allocation2] sm:$0x1c] }
 0x947   :  { %3163 = vmatmul.mubr.msk.bf16.vlgmr.msra.gmra.mrb[16].mxu1 %vm1787_vm9, %v2023_v24  ;;  %v2169_v34 = vrot.slane %v2158_v33, 2 }
 0x948   :  { %3167 = vmatpush3.bf16.msra.mxu1 %v3426_v23  ;;  %3174 = vmatprep.mubr.msk.bf16.mxu1 %vm4097_vm1, %v4096_v0 }
 0x949   :  { %3168 = vmatprep.subr.bf16.mxu1 %v4096_v0 }
 0x94c   :  { %3169 = vmatpush3.bf16.msra.mxu1 %v3427_v25 }
 0x94d   :  { %3170 = vmatprep.subr.bf16.mxu1 %v4096_v0 }
 0x950   :  { %3171 = vmatpush3.bf16.msra.mxu1 %v3428_v26 }
 0x951   :  { %3172 = vmatprep.subr.bf16.mxu1 %v4096_v0 }
 0x954   :  { %3173 = vmatpush3.bf16.msra.mxu1 %v3429_v27  ;;  %v2899_v27 = vld [vmem:[%s4268_s8] ss:$0 sm:$0xff]  ;;  %s3984_s8 = scalar_lea.vmem %s2712_s6, 32 }
 0x955   :  { %3178 = vmatprep.subr.bf16.mxu1 %v4096_v0  ;;  %p3985_p10 = scmp.ne.s32.totalorder %s2712_s6, %s3984_s8  ;;  %p3990_p12 = scmp.lt.s32.totalorder %s3984_s8, %s3984_s8 }
 0x957   :  { %3175 = vmatmul.mubr.msk.bf16.vlgmr.msra.gmra.mrb[16].mxu1 %vm1787_vm9, %v2003_v29  ;;  %v2900_v29 = vld [vmem:[%s4273_s12] ss:$0 sm:$0xff]  ;;  %p3991_p13 = por %p3990_p12, %p3989_p11 }
 0x958   :  { %3179 = vmatpush3.bf16.msra.mxu1 %v3430_v28  ;;  %3186 = vmatprep.mubr.msk.bf16.mxu1 %vm4097_vm1, %v4096_v0 }
 0x959   :  { %3180 = vmatprep.subr.bf16.mxu1 %v4096_v0  ;;  %p3992_p0 = pnand %p3991_p13, %p3985_p10 }
 0x95c   :  { %3181 = vmatpush3.bf16.msra.mxu1 %v3431_v30 }
 0x95d   :  { %3182 = vmatprep.subr.bf16.mxu1 %v4096_v0 }
 0x960   :  { %3183 = vmatpush3.bf16.msra.mxu1 %v3432_v31 }
 0x961   :  { %3184 = vmatprep.subr.bf16.mxu1 %v4096_v0 }
 0x964   :  { %3185 = vmatpush3.bf16.msra.mxu1 %v3433_v32 }
 0x965   :  { %3226 = vmatprep.subr.bf16.mxu1 %v4096_v0 }
 0x967   :  { %3187 = vmatmul.mubr.msk.bf16.vlgmr.msra.gmra.mrb[16].mxu1 %vm1787_vm9, %v2169_v34 }
 0x968   :  { %3234 = vmatprep.mubr.msk.bf16.mxu1 %vm4097_vm1, %v4096_v0  ;;  %3227 = vmatpush3.bf16.msra.mxu1 %v3446_v39 }
 0x969   :  { %3228 = vmatprep.subr.bf16.mxu1 %v4096_v0 }
 0x96c   :  { %3229 = vmatpush3.bf16.msra.mxu1 %v3447_v40 }
 0x96d   :  { %3230 = vmatprep.subr.bf16.mxu1 %v4096_v0 }
 0x970   :  { %3231 = vmatpush3.bf16.msra.mxu1 %v3448_v1 }
 0x971   :  { %3232 = vmatprep.subr.bf16.mxu1 %v4096_v0 }
 0x974   :  { %3233 = vmatpush3.bf16.msra.mxu1 %v3449_v2 }
 0x975   :  { %3238 = vmatprep.subr.bf16.mxu1 %v4096_v0 }
 0xa3a   :  { %v2231_v42 = vpop.f32.mrb[16].mxu1 }
 0xa3b   :  { %v2245_v44 = vmul.f32 %v2868_v41, %v2231_v42  ;;  %v3188_v45 = vpop.f32.mrb[17].mxu1 }
 0xa3c   :  { %v2234_v46 = vpop.f32.mrb[18].mxu1 }
 0xa3d   :  { %v2253_v47 = vadd.f32 %v2869_v43, %v2245_v44  ;;  %v3189_v48 = vpop.f32.mrb[19].mxu1 }
 0xa3f   :  { %v2254_v49 = vmax.f32 %v2253_v47, 0.0 }
 0xa41   :  { %v2255_v50 = vpack.c.bf16 %v2254_v49, %v2254_v49 }
 0xa43   :  { %2257 = vst.msk [vmem:[#allocation2] sm:$0x7] %vm2256_vm10, %v2255_v50 }
 0xa4a   :  { %v2267_v51 = vld [vmem:[#allocation2] sm:$0x2]  ;;  %v2258_v58 = vld [vmem:[#allocation2] sm:$0x1]  ;;  %v2413_v62 = vld [vmem:[#allocation2] sm:$0x4] }
 0xa4b   :  { %v2278_v53 = vrot.slane %v2267_v51, 1  ;;  %v2424_v63 = vrot.slane %v2413_v62, 2 }
 0xa4d   :  { %3199 = vmatmul.mubr.msk.bf16.vlgmr.msra.gmra.mrb[16].mxu0 %vm1787_vm9, %v2278_v53 }
 0xa4e   :  { %3203 = vmatpush3.bf16.msra.mxu0 %v3438_v52  ;;  %3210 = vmatprep.mubr.msk.bf16.mxu0 %vm4097_vm1, %v4096_v0 }
 0xa4f   :  { %3204 = vmatprep.subr.bf16.mxu0 %v4096_v0 }
 0xa52   :  { %3205 = vmatpush3.bf16.msra.mxu0 %v3439_v54 }
 0xa53   :  { %3206 = vmatprep.subr.bf16.mxu0 %v4096_v0 }
 0xa56   :  { %3207 = vmatpush3.bf16.msra.mxu0 %v3440_v55 }
 0xa57   :  { %3208 = vmatprep.subr.bf16.mxu0 %v4096_v0 }
 0xa5a   :  { %3209 = vmatpush3.bf16.msra.mxu0 %v3441_v56 }
 0xa5b   :  { %3214 = vmatprep.subr.bf16.mxu0 %v4096_v0 }
 0xa5d   :  { %3211 = vmatmul.mubr.msk.bf16.vlgmr.msra.gmra.mrb[16].mxu0 %vm1787_vm9, %v2258_v58 }
 0xa5e   :  { %3215 = vmatpush3.bf16.msra.mxu0 %v3442_v57  ;;  %3222 = vmatprep.mubr.msk.bf16.mxu0 %vm4097_vm1, %v4096_v0 }
 0xa5f   :  { %3216 = vmatprep.subr.bf16.mxu0 %v4096_v0 }
 0xa62   :  { %3217 = vmatpush3.bf16.msra.mxu0 %v3443_v59 }
 0xa63   :  { %3218 = vmatprep.subr.bf16.mxu0 %v4096_v0 }
 0xa66   :  { %3219 = vmatpush3.bf16.msra.mxu0 %v3444_v60 }
 0xa67   :  { %3220 = vmatprep.subr.bf16.mxu0 %v4096_v0 }
 0xa6a   :  { %3221 = vmatpush3.bf16.msra.mxu0 %v3445_v61 }
 0xa6d   :  { %3223 = vmatmul.mubr.msk.bf16.vlgmr.msra.gmra.mrb[16].mxu0 %vm1787_vm9, %v2424_v63 }
 0xb40   :  { %v2486_v4 = vpop.f32.mrb[16].mxu0 }
 0xb41   :  { %v2500_v6 = vmul.f32 %v2885_v3, %v2486_v4  ;;  %v3224_v7 = vpop.f32.mrb[17].mxu0 }
 0xb42   :  { %v2489_v8 = vpop.f32.mrb[18].mxu0 }
 0xb43   :  { %v2508_v9 = vadd.f32 %v2886_v5, %v2500_v6  ;;  %v3225_v10 = vpop.f32.mrb[19].mxu0 }
 0xb45   :  { %v2509_v11 = vmax.f32 %v2508_v9, 0.0 }
 0xb47   :  { %v2510_v13 = vpack.c.bf16 %v2509_v11, %v2509_v11 }
 0xb49   :  { %3235 = vmatmul.mubr.msk.bf16.vlgmr.msra.gmra.mrb[20].mxu1 %vm1787_vm9, %v2510_v13 }
 0xb4a   :  { %3239 = vmatpush3.bf16.msra.mxu1 %v3450_v12  ;;  %3246 = vmatprep.mubr.msk.bf16.mxu1 %vm4097_vm1, %v4096_v0  ;;  %vm2697_vm1 = vcmask 254976  }
 0xb4b   :  { %3240 = vmatprep.subr.bf16.mxu1 %v4096_v0 }
 0xb4e   :  { %3241 = vmatpush3.bf16.msra.mxu1 %v3451_v14 }
 0xb4f   :  { %3242 = vmatprep.subr.bf16.mxu1 %v4096_v0 }
 0xb52   :  { %3243 = vmatpush3.bf16.msra.mxu1 %v3452_v15 }
 0xb53   :  { %3244 = vmatprep.subr.bf16.mxu1 %v4096_v0 }
 0xb56   :  { %3245 = vmatpush3.bf16.msra.mxu1 %v3453_v16 }
 0xc1c   :  { %v2580_v18 = vpop.f32.mrb[20].mxu1 }
 0xc1d   :  { %v2593_v20 = vmul.f32 %v2892_v17, %v2580_v18  ;;  %v3236_v21 = vpop.f32.mrb[21].mxu1 }
 0xc1e   :  { %v2583_v22 = vpop.f32.mrb[22].mxu1 }
 0xc1f   :  { %v2601_v23 = vadd.f32 %v2893_v19, %v2593_v20  ;;  %v3237_v24 = vpop.f32.mrb[23].mxu1 }
 0xc21   :  { %v2602_v25 = vmax.f32 %v2601_v23, 0.0 }
 0xc23   :  { %v2603_v26 = vpack.c.bf16 %v2602_v25, %v2602_v25 }
 0xc25   :  { %3247 = vmatmul.mubr.msk.bf16.vlgmr.msra.gmra.mrb[24].mxu1 %vm1787_vm9, %v2603_v26 }
 0xcf8   :  { %v2673_v28 = vpop.f32.mrb[24].mxu1 }
 0xcf9   :  { %v2686_v30 = vmul.f32 %v2899_v27, %v2673_v28  ;;  %v3248_v0 = vpop.f32.mrb[25].mxu1 }
 0xcfa   :  { %v2676_v31 = vpop.f32.mrb[26].mxu1 }
 0xcfb   :  { %v2694_v32 = vadd.f32 %v2900_v29, %v2686_v30  ;;  %v3249_v33 = vpop.f32.mrb[27].mxu1 }
 0xcfd   :  { %v2695_v34 = vmax.f32 %v2694_v32, 0.0 }
 0xcff   :  { %v2696_v35 = vmul.f32 %v2695_v34, %v2695_v34 }
 0xd01   :  { %v2698_v36 = vsel %vm2697_vm1, %v2696_v35, 0.0 }
 0xd02   :  { %2699 = vadd.xlane.f32.xlu0 %v2698_v36 }
 0xd8f   :  { %v2700_v37 = vpop.xlane.xlu0 %2699 }
 0xd90   :  { %v2701_v38 = vmax.f32 %v2700_v37, 1e-24 }
 0xd92   :  { %3454 = vrsqrt.f32 %v2701_v38 }
 0xd9c   :  { %v3455_v39 = vpop.eup %3454 }
 0xd9d   :  { %v2703_v40 = vmul.f32 %v3455_v39, %v2695_v34 }
 0xd9f   :  { %2704 = vst.msk [vmem:[#allocation42] sm:$0x3] %vm2697_vm1, %v2703_v40 }
 0xda0   :  { %3995 = shalt.err (!%p3992_p0)
}
 0xda1   :  { %s3996_s12 = scalar_lea.hbm %s4278_s19, 32 }
 0xda2   :  { %p3997_p1 = scmp.ne.s32.totalorder %s4278_s19, %s3996_s12  ;;  %p4000_p2 = scmp.lt.u32.totalorder %s3996_s12, %s4278_s19 }
 0xda4   :  { %p4002_p3 = pnand %p4000_p2, %p3997_p1 }
 0xda6   :  { %4005 = shalt.err (!%p4002_p3)
}
 0xda7   :  { %2714 = dma.vmem_to_hbm [thread:$0]  %s2712_s6, 32, %s4278_s19, [#allocation6]  }
 0xda8   :  { %4032 = dma.done.wait [#allocation6], 32  }
 0xda9   :  { %4033 = vsyncadd [#allocation6], 4294967264 }
 0xdaa   :  { %2718 = vsyncpa [#allocation5], 1 }
 0xdab   :  { %2719 = vsyncpa [#allocation8], 1 }
 0xdac   :  { %2720 = vsyncpa [#allocation11], 1 }
 0xdad   :  { %2721 = vsyncpa [#allocation14], 1 }
 0xdae   :  { %2722 = vsyncpa [#allocation17], 1 }
 0xdaf   :  { %2723 = vsyncpa [#allocation20], 1 }
 0xdb0   :  { %2724 = vsyncpa [#allocation23], 1 }
 0xdb1   :  { %2725 = vsyncpa [#allocation26], 1 }
 0xdb2   :  { %2726 = vsyncpa [#allocation29], 1 }
 0xdb3   :  { %2727 = vsyncpa [#allocation32], 1 }
 0xdb4   :  { %2728 = vsyncpa [#allocation35], 1 }
 0xdb5   :  { %2729 = vsyncpa [#allocation38], 1 }
 0xdb6   :  { %2730 = vsyncpa [#allocation41], 1 }
 0xdb7   :  { %2731 = vsyncpa [#allocation6], 1 }

</bundles_post_ra>
